<compile_context>
chip_gen: v7x
topology: tpu7x:2x2x1
jax: 0.10.0
libtpu: 0.0.40
codegen_flags: <defaults>
</compile_context>

<pallas_src>
import functools
import math

import jax
import jax.numpy as jnp
import numpy as np
from jax import lax
from jax.experimental import pallas as pl
from jax.experimental.pallas import tpu as pltpu

LEAKY_SLOPE = 0.1            # nn.LeakyReLU(0.1)
INV_SQRT2 = float(2.0 ** -0.5)


def _vmem_limit_bytes():
    # Generation-aware scoped-VMEM limit: ~48 MiB on v7x (64 MiB physical),
    # ~96 MiB on the 128 MiB v5e/v6e parts; conservative fallback otherwise.
    try:
        cap = int(pltpu.get_tpu_info().vmem_capacity_bytes)
    except Exception:
        return 32 * 1024 * 1024
    return int(min(96 * 1024 * 1024, max(32 * 1024 * 1024, cap * 3 // 4)))


_VMEM_LIMIT = _vmem_limit_bytes()


def _cout_tile(cout):
    # Second "parallel" grid axis over output-channel tiles (keeps both v7x
    # TensorCores busy at small batch for wide layers); single tile otherwise.
    for t in (256, 128):
        if cout % t == 0:
            return t
    return cout


# ---------------------------------------------------------------------------
# Fused 3x3 "same" conv (stride 1) + bias + optional LeakyReLU
#   + optional fused 1x1 conv_res + (x + res) * 2**-0.5  (last block).
# One grid step = one (batch, Cout-tile).  Activations are flat (M=H*W, C)
# bf16; halo handled via result-side pltpu.roll + iota edge masks.
# ---------------------------------------------------------------------------
def _conv3x3_kernel(*refs, hdim, wdim, lrelu, fuse_res):
    if fuse_res:
        x_ref, w_ref, b_ref, rx_ref, rw_ref, rb_ref, o_ref = refs
    else:
        x_ref, w_ref, b_ref, o_ref = refs

    m = hdim * wdim
    x = x_ref[0]                                     # (M, Cin) bf16, loaded once

    # Flat-position iota -> column index (float trick avoids vector int div).
    idx = lax.broadcasted_iota(jnp.int32, (m, 1), 0)
    q = jnp.floor((idx.astype(jnp.float32) + 0.5) * (1.0 / wdim)).astype(jnp.int32)
    col = idx - q * wdim                             # == idx % wdim (exact, m < 2**24)

    acc = None
    for dy in range(3):
        for dx in range(3):
            oy, ox = dy - 1, dx - 1
            # Full-map tap matmul on the unshifted input (MXU, bf16 -> f32).
            p = jnp.dot(x, w_ref[dy * 3 + dx], preferred_element_type=jnp.float32)
            # Spatial shift applied to the f32 result: flat offset oy*W + ox.
            d = oy * wdim + ox
            if d != 0:
                p = pltpu.roll(p, shift=(-d) % m, axis=0)
            # Zero contributions whose source pixel lies outside the image
            # ("same" padding handled in-register; no padded copy anywhere).
            valid = None
            if oy == -1:
                valid = idx >= wdim
            elif oy == 1:
                valid = idx < (m - wdim)
            if ox == -1:
                c = col >= 1
                valid = c if valid is None else jnp.logical_and(valid, c)
            elif ox == 1:
                c = col < (wdim - 1)
                valid = c if valid is None else jnp.logical_and(valid, c)
            if valid is not None:
                p = p * valid.astype(jnp.float32)
            acc = p if acc is None else acc + p

    acc = acc + b_ref[...]
    if lrelu:
        acc = jnp.where(acc >= 0, acc, acc * LEAKY_SLOPE)
    if fuse_res:
        # Fused 1x1 conv_res of the block input, then (x + res) * 2**-0.5 (f32).
        r = jnp.dot(rx_ref[0], rw_ref[...], preferred_element_type=jnp.float32)
        acc = (acc + r + rb_ref[...]) * INV_SQRT2
    o_ref[0] = acc.astype(o_ref.dtype)


def conv3x3(x, hdim, wdim, w9, b, *, lrelu=False, res_x=None, res_w=None, res_b=None):
    """3x3 stride-1 'same' conv on flat (N, H*W, Cin) bf16 activations."""
    n, m, cin = x.shape
    assert m == hdim * wdim
    cout = w9.shape[-1]
    tco = _cout_tile(cout)
    fuse_res = res_x is not None
    kernel = functools.partial(_conv3x3_kernel, hdim=hdim, wdim=wdim,
                               lrelu=lrelu, fuse_res=fuse_res)
    in_specs = [
        pl.BlockSpec((1, m, cin), lambda i, j: (i, 0, 0)),
        pl.BlockSpec((9, cin, tco), lambda i, j: (0, 0, j)),
        pl.BlockSpec((1, tco), lambda i, j: (0, j)),
    ]
    args = [x, w9, b.reshape(1, cout)]
    if fuse_res:
        cr = res_x.shape[-1]
        in_specs += [
            pl.BlockSpec((1, m, cr), lambda i, j: (i, 0, 0)),
            pl.BlockSpec((cr, tco), lambda i, j: (0, j)),
            pl.BlockSpec((1, tco), lambda i, j: (0, j)),
        ]
        args += [res_x, res_w, res_b.reshape(1, cout)]
    return pl.pallas_call(
        kernel,
        out_shape=jax.ShapeDtypeStruct((n, m, cout), jnp.bfloat16),
        grid=(n, cout // tco),
        in_specs=in_specs,
        out_specs=pl.BlockSpec((1, m, tco), lambda i, j: (i, 0, j)),
        compiler_params=pltpu.CompilerParams(
            dimension_semantics=("parallel", "parallel"),
            vmem_limit_bytes=_VMEM_LIMIT),
    )(*args)


# ---------------------------------------------------------------------------
# Fused downsample tail of a DiscriminatorBlock:
#   space_to_depth + Conv1x1(4C->C)  ==  2x2 stride-2 conv on h2
#   + fused 1x1 stride-2 conv_res(x) + (x + res) * 2**-0.5.
# Inputs arrive through *free* row-major reshapes (N,H*W,C)->(N,H/2,2,W/2,2C);
# the p1 (row-parity) index is a major-dim slice -> no s2d transpose in HBM.
# ---------------------------------------------------------------------------
def _down_res_kernel(h_ref, x_ref, wd_ref, wr_ref, b_ref, o_ref, *, ho, wo):
    mo = ho * wo
    acc = None
    for p1 in range(2):
        # (ho, wo, 2*Ch) slab = image rows 2*yo + p1 (major-dim index).
        # f32 round trip keeps the (ho,wo,c)->(ho*wo,c) reshape on a 32-bit
        # layout (robust when wo % 8 != 0); negligible cost at these sizes.
        slab = h_ref[0, :, p1, :, :].astype(jnp.float32)
        slab = slab.reshape(mo, slab.shape[-1]).astype(jnp.bfloat16)
        t = jnp.dot(slab, wd_ref[p1], preferred_element_type=jnp.float32)
        acc = t if acc is None else acc + t
    # Fused 1x1 stride-2 conv_res: only even rows (p1=0); the odd-column half
    # of wr is zero-padded, so a single slab + single matmul suffices.
    xs = x_ref[0, :, 0, :, :].astype(jnp.float32)
    xs = xs.reshape(mo, xs.shape[-1]).astype(jnp.bfloat16)
    acc = acc + jnp.dot(xs, wr_ref[...], preferred_element_type=jnp.float32)
    acc = (acc + b_ref[...]) * INV_SQRT2
    o_ref[0] = acc.astype(o_ref.dtype)


def down_residual(h, x, hdim, wdim, wd, wr, b):
    """h, x: flat (N, H*W, C) bf16.  Returns (N, (H/2)*(W/2), Cout) bf16."""
    n, m, ch = h.shape
    cx = x.shape[-1]
    assert m == hdim * wdim and hdim % 2 == 0 and wdim % 2 == 0
    ho, wo = hdim // 2, wdim // 2
    cout = wd.shape[-1]
    tco = _cout_tile(cout)
    hv = h.reshape(n, ho, 2, wo, 2 * ch)        # free row-major reshapes
    xv = x.reshape(n, ho, 2, wo, 2 * cx)
    kernel = functools.partial(_down_res_kernel, ho=ho, wo=wo)
    return pl.pallas_call(
        kernel,
        out_shape=jax.ShapeDtypeStruct((n, ho * wo, cout), jnp.bfloat16),
        grid=(n, cout // tco),
        in_specs=[
            pl.BlockSpec((1, ho, 2, wo, 2 * ch), lambda i, j: (i, 0, 0, 0, 0)),
            pl.BlockSpec((1, ho, 2, wo, 2 * cx), lambda i, j: (i, 0, 0, 0, 0)),
            pl.BlockSpec((2, 2 * ch, tco), lambda i, j: (0, 0, j)),
            pl.BlockSpec((2 * cx, tco), lambda i, j: (0, j)),
            pl.BlockSpec((1, tco), lambda i, j: (0, j)),
        ],
        out_specs=pl.BlockSpec((1, ho * wo, tco), lambda i, j: (i, 0, j)),
        compiler_params=pltpu.CompilerParams(
            dimension_semantics=("parallel", "parallel"),
            vmem_limit_bytes=_VMEM_LIMIT),
    )(hv, xv, wd, wr, b.reshape(1, cout))


# ---------------------------------------------------------------------------
# MGDiscriminator forward
# ---------------------------------------------------------------------------
def discriminator_block(x, hdim, wdim, p):
    h1 = conv3x3(x, hdim, wdim, p["w1"], p["b1"], lrelu=True)
    if p["downsample"]:
        h2 = conv3x3(h1, hdim, wdim, p["w2"], p["b2"], lrelu=True)
        out = down_residual(h2, x, hdim, wdim, p["down_w"], p["res_w"], p["down_b"])
        return out, hdim // 2, wdim // 2
    # Last block: fuse the 1x1 conv_res + (x + res) * 2**-0.5 into the 2nd conv.
    out = conv3x3(h1, hdim, wdim, p["w2"], p["b2"], lrelu=True,
                  res_x=x, res_w=p["res_w"], res_b=p["res_b"])
    return out, hdim, wdim


def mg_discriminator_forward(x_nchw, prep):
    n, c, hh, ww = x_nchw.shape
    # NCHW (PyTorch) -> flat NHWC bf16 once at the entry.
    x = jnp.transpose(x_nchw, (0, 2, 3, 1)).reshape(n, hh * ww, c).astype(jnp.bfloat16)
    for p in prep["blocks"]:
        x, hh, ww = discriminator_block(x, hh, ww, p)
    # to_logits: Conv3x3 -> LeakyReLU -> flatten 'b c h w' -> Linear -> 'b 1 -> b'
    h = conv3x3(x, hh, ww, prep["head_w"], prep["head_b"], lrelu=True)
    c_last = h.shape[-1]
    # Fold torch's channel-major flatten into a permutation of the linear
    # weight; the (batch, 1) matmul is a pure reduction -> tiny f32 XLA op.
    w_lin = prep["lin_w"][:, 0].reshape(c_last, hh, ww).transpose(1, 2, 0).reshape(-1)
    logits = h.reshape(n, -1).astype(jnp.float32) @ w_lin.astype(jnp.float32)
    return logits + prep["lin_b"][0]


# ---------------------------------------------------------------------------
# One-time weight re-layout / bf16 cast for the Pallas kernels
# ---------------------------------------------------------------------------
def prepare_params(params):
    def conv9(w):
        kh, kw, ci, co = w.shape
        return w.reshape(kh * kw, ci, co).astype(jnp.bfloat16)

    prep = {"blocks": []}
    for p in params["blocks"]:
        q = {"downsample": p["downsample"],
             "w1": conv9(p["w1"]), "b1": p["b1"].astype(jnp.float32),
             "w2": conv9(p["w2"]), "b2": p["b2"].astype(jnp.float32)}
        rw = p["res_w"][0, 0]                                    # (Cin, Cout)
        if p["downsample"]:
            cf = p["down_w"].shape[-1]
            # down_w row index is c*4 + p1*2 + p2 (einops 'b (c p1 p2) h w').
            dw = p["down_w"][0, 0].reshape(cf, 2, 2, cf)
            dw = dw.transpose(1, 2, 0, 3).reshape(2, 2 * cf, cf)
            q["down_w"] = dw.astype(jnp.bfloat16)                # [p1, p2*Cf+c, co]
            q["res_w"] = jnp.concatenate(
                [rw, jnp.zeros_like(rw)], axis=0).astype(jnp.bfloat16)  # [p2*Cin+c, co]
            q["down_b"] = (p["down_b"] + p["res_b"]).astype(jnp.float32)
        else:
            q["res_w"] = rw.astype(jnp.bfloat16)
            q["res_b"] = p["res_b"].astype(jnp.float32)
        prep["blocks"].append(q)
    prep["head_w"] = conv9(params["head_w"])
    prep["head_b"] = params["head_b"].astype(jnp.float32)
    prep["lin_w"] = params["lin_w"].astype(jnp.float32)
    prep["lin_b"] = params["lin_b"].astype(jnp.float32)
    return prep


# ---------------------------------------------------------------------------
# Deterministic parameter construction (shapes follow MGDiscriminator.__init__)
# ---------------------------------------------------------------------------
def init_params(key, *, dim, image_size, channels, max_dim):
    num_layers = int(math.log2(image_size) - 2)
    layer_dims = [channels] + [min(dim * 4 * 2 ** i, max_dim) for i in range(num_layers + 1)]
    in_out = list(zip(layer_dims[:-1], layer_dims[1:]))

    def winit(k, shape):
        fan_in = int(np.prod(shape[:-1]))
        return jax.random.normal(k, shape, jnp.float32) / np.sqrt(fan_in)

    def binit(k, nch):
        return 0.01 * jax.random.normal(k, (nch,), jnp.float32)

    blocks = []
    for ind, (cin, cout) in enumerate(in_out):
        downsample = ind != (len(in_out) - 1)
        ks = jax.random.split(jax.random.fold_in(key, ind), 8)
        p = {
            "downsample": downsample,
            "res_w": winit(ks[0], (1, 1, cin, cout)), "res_b": binit(ks[1], cout),
            "w1": winit(ks[2], (3, 3, cin, cout)),    "b1": binit(ks[3], cout),
            "w2": winit(ks[4], (3, 3, cout, cout)),   "b2": binit(ks[5], cout),
        }
        if downsample:
            p["down_w"] = winit(ks[6], (1, 1, cout * 4, cout))
            p["down_b"] = binit(ks[7], cout)
        blocks.append(p)

    dim_last = layer_dims[-1]
    fmap = image_size // (2 ** num_layers)
    latent_dim = fmap * fmap * dim_last
    kh = jax.random.split(jax.random.fold_in(key, 1000), 4)
    return {
        "blocks": blocks,
        "head_w": winit(kh[0], (3, 3, dim_last, dim_last)),
        "head_b": binit(kh[1], dim_last),
        "lin_w": winit(kh[2], (latent_dim, 1)),
        "lin_b": binit(kh[3], 1),
    }


# ---------------------------------------------------------------------------
# Pure-JAX reference (lax.conv, f32) for validation of the Pallas path
# ---------------------------------------------------------------------------
def _lrelu(v):
    return jnp.where(v >= 0, v, v * LEAKY_SLOPE)


def _ref_conv(x, w, b, *, stride=1, pad=0):
    out = lax.conv_general_dilated(
        x, w, (stride, stride), [(pad, pad), (pad, pad)],
        dimension_numbers=("NHWC", "HWIO", "NHWC"))
    return out + b


def space_to_depth(x):
    """'b c (h p1) (w p2) -> b (c p1 p2) h w' expressed in NHWC: out channel
    index = c*4 + p1*2 + p2."""
    n, hh, ww, c = x.shape
    x = x.reshape(n, hh // 2, 2, ww // 2, 2, c)          # n, h, p1, w, p2, c
    x = jnp.transpose(x, (0, 1, 3, 5, 2, 4))              # n, h, w, c, p1, p2
    return x.reshape(n, hh // 2, ww // 2, c * 4)


def reference_forward(x_nchw, params):
    x = jnp.transpose(x_nchw, (0, 2, 3, 1)).astype(jnp.float32)
    for p in params["blocks"]:
        stride = 2 if p["downsample"] else 1
        res = _ref_conv(x, p["res_w"], p["res_b"], stride=stride)
        h = _lrelu(_ref_conv(x, p["w1"], p["b1"], pad=1))
        h = _lrelu(_ref_conv(h, p["w2"], p["b2"], pad=1))
        if p["downsample"]:
            h = space_to_depth(h)
            h = _ref_conv(h, p["down_w"], p["down_b"])
        x = (h + res) * INV_SQRT2
    h = _lrelu(_ref_conv(x, params["head_w"], params["head_b"], pad=1))
    n = h.shape[0]
    flat = jnp.transpose(h, (0, 3, 1, 2)).reshape(n, -1)
    return (flat @ params["lin_w"] + params["lin_b"])[:, 0]


# ---------------------------------------------------------------------------
if __name__ == "__main__":
    DIM, IMAGE_SIZE, CHANNELS, MAX_DIM, BATCH = 8, 16, 3, 64, 2
    key = jax.random.PRNGKey(0)
    kx, kp = jax.random.split(key)
    x = jax.random.normal(kx, (BATCH, CHANNELS, IMAGE_SIZE, IMAGE_SIZE), jnp.float32)
    params = init_params(kp, dim=DIM, image_size=IMAGE_SIZE,
                         channels=CHANNELS, max_dim=MAX_DIM)
    prep = prepare_params(params)

    out = jax.block_until_ready(mg_discriminator_forward(x, prep))
    assert out.shape == (BATCH,), out.shape

    ref = jax.block_until_ready(reference_forward(x, params))
    err = float(jnp.max(jnp.abs(out.astype(jnp.float32) - ref)))
    scale = float(jnp.max(jnp.abs(ref)))
    # bf16 activations vs f32 reference: rtol 5e-2 with a small atol floor.
    assert err <= 5e-2 * scale + 2.5e-2, (err, scale, np.asarray(out), np.asarray(ref))

    print("KERNEL_OK")
</pallas_src>

<mosaic_0001>
module attributes {stable_mosaic.version = 11 : i64} {
  func.func @_conv3x3_kernel(%arg0: i32, %arg1: i32, %arg2: memref<1x256x3xbf16, #tpu.memory_space<vmem>>, %arg3: memref<9x3x32xbf16, #tpu.memory_space<vmem>>, %arg4: memref<1x32xf32, #tpu.memory_space<vmem>>, %arg5: memref<1x256x32xbf16, #tpu.memory_space<vmem>>) attributes {dimension_semantics = [#tpu.dimension_semantics<parallel>, #tpu.dimension_semantics<parallel>], iteration_bounds = array<i64: 2, 1>, scalar_prefetch = 0 : i64, scratch_operands = 0 : i64, tpu.core_type = #tpu.core_type<tc>, window_params = [{transform_indices = @transform_0, window_bounds = array<i64: 1, 256, 3>}, {transform_indices = @transform_1, window_bounds = array<i64: 9, 3, 32>}, {transform_indices = @transform_2, window_bounds = array<i64: 1, 32>}, {transform_indices = @transform_3, window_bounds = array<i64: 1, 256, 32>}]} {
    %c0 = arith.constant 0 : index
    %c0_0 = arith.constant 0 : index
    %c0_1 = arith.constant 0 : index
    %0 = vector.load %arg2[%c0, %c0_0, %c0_1] : memref<1x256x3xbf16, #tpu.memory_space<vmem>>, vector<1x256x3xbf16>
    %1 = vector.shape_cast %0 : vector<1x256x3xbf16> to vector<256x3xbf16>
    %2 = tpu.iota {dimensions = array<i32: 0>} : vector<256x1xi32>
    %3 = arith.sitofp %2 : vector<256x1xi32> to vector<256x1xf32>
    %cst = arith.constant 5.000000e-01 : f32
    %4 = vector.broadcast %cst : f32 to vector<256x1xf32>
    %5 = arith.addf %3, %4 : vector<256x1xf32>
    %cst_2 = arith.constant 6.250000e-02 : f32
    %6 = vector.broadcast %cst_2 : f32 to vector<256x1xf32>
    %7 = arith.mulf %5, %6 : vector<256x1xf32>
    %8 = math.floor %7 : vector<256x1xf32>
    %9 = arith.fptosi %8 : vector<256x1xf32> to vector<256x1xi32>
    %c16_i32 = arith.constant 16 : i32
    %10 = vector.broadcast %c16_i32 : i32 to vector<256x1xi32>
    %11 = arith.muli %9, %10 : vector<256x1xi32>
    %12 = arith.subi %2, %11 : vector<256x1xi32>
    %c0_3 = arith.constant 0 : index
    %c0_4 = arith.constant 0 : index
    %c0_5 = arith.constant 0 : index
    %13 = vector.load %arg3[%c0_3, %c0_4, %c0_5] : memref<9x3x32xbf16, #tpu.memory_space<vmem>>, vector<1x3x32xbf16>
    %14 = vector.shape_cast %13 : vector<1x3x32xbf16> to vector<3x32xbf16>
    %cst_6 = arith.constant dense<0.000000e+00> : vector<256x32xf32>
    %15 = tpu.matmul %1, %14, %cst_6 {dimension_numbers = #tpu.dot_dimension_numbers<[1], [0], [0], [1], [0, 0, 1, 1], [], []>} : vector<256x3xbf16>, vector<3x32xbf16>, vector<256x32xf32> -> vector<256x32xf32>
    %c17_i32 = arith.constant 17 : i32
    %16 = tpu.dynamic_rotate %15 by %c17_i32 dim 0 : vector<256x32xf32>, i32 -> vector<256x32xf32>
    %c16_i32_7 = arith.constant 16 : i32
    %17 = vector.broadcast %c16_i32_7 : i32 to vector<256x1xi32>
    %18 = arith.cmpi sge, %2, %17 : vector<256x1xi32>
    %c1_i32 = arith.constant 1 : i32
    %19 = vector.broadcast %c1_i32 : i32 to vector<256x1xi32>
    %20 = arith.cmpi sge, %12, %19 : vector<256x1xi32>
    %21 = arith.andi %18, %20 : vector<256x1xi1>
    %22 = arith.extui %21 : vector<256x1xi1> to vector<256x1xi32>
    %23 = arith.sitofp %22 : vector<256x1xi32> to vector<256x1xf32>
    %24 = vector.broadcast %23 : vector<256x1xf32> to vector<256x32xf32>
    %25 = arith.mulf %16, %24 : vector<256x32xf32>
    %c1 = arith.constant 1 : index
    %c0_8 = arith.constant 0 : index
    %c0_9 = arith.constant 0 : index
    %26 = vector.load %arg3[%c1, %c0_8, %c0_9] : memref<9x3x32xbf16, #tpu.memory_space<vmem>>, vector<1x3x32xbf16>
    %27 = vector.shape_cast %26 : vector<1x3x32xbf16> to vector<3x32xbf16>
    %cst_10 = arith.constant dense<0.000000e+00> : vector<256x32xf32>
    %28 = tpu.matmul %1, %27, %cst_10 {dimension_numbers = #tpu.dot_dimension_numbers<[1], [0], [0], [1], [0, 0, 1, 1], [], []>} : vector<256x3xbf16>, vector<3x32xbf16>, vector<256x32xf32> -> vector<256x32xf32>
    %c16_i32_11 = arith.constant 16 : i32
    %29 = tpu.dynamic_rotate %28 by %c16_i32_11 dim 0 : vector<256x32xf32>, i32 -> vector<256x32xf32>
    %c16_i32_12 = arith.constant 16 : i32
    %30 = vector.broadcast %c16_i32_12 : i32 to vector<256x1xi32>
    %31 = arith.cmpi sge, %2, %30 : vector<256x1xi32>
    %32 = arith.extui %31 : vector<256x1xi1> to vector<256x1xi32>
    %33 = arith.sitofp %32 : vector<256x1xi32> to vector<256x1xf32>
    %34 = vector.broadcast %33 : vector<256x1xf32> to vector<256x32xf32>
    %35 = arith.mulf %29, %34 : vector<256x32xf32>
    %36 = arith.addf %25, %35 : vector<256x32xf32>
    %c2 = arith.constant 2 : index
    %c0_13 = arith.constant 0 : index
    %c0_14 = arith.constant 0 : index
    %37 = vector.load %arg3[%c2, %c0_13, %c0_14] : memref<9x3x32xbf16, #tpu.memory_space<vmem>>, vector<1x3x32xbf16>
    %38 = vector.shape_cast %37 : vector<1x3x32xbf16> to vector<3x32xbf16>
    %cst_15 = arith.constant dense<0.000000e+00> : vector<256x32xf32>
    %39 = tpu.matmul %1, %38, %cst_15 {dimension_numbers = #tpu.dot_dimension_numbers<[1], [0], [0], [1], [0, 0, 1, 1], [], []>} : vector<256x3xbf16>, vector<3x32xbf16>, vector<256x32xf32> -> vector<256x32xf32>
    %c15_i32 = arith.constant 15 : i32
    %40 = tpu.dynamic_rotate %39 by %c15_i32 dim 0 : vector<256x32xf32>, i32 -> vector<256x32xf32>
    %c16_i32_16 = arith.constant 16 : i32
    %41 = vector.broadcast %c16_i32_16 : i32 to vector<256x1xi32>
    %42 = arith.cmpi sge, %2, %41 : vector<256x1xi32>
    %c15_i32_17 = arith.constant 15 : i32
    %43 = vector.broadcast %c15_i32_17 : i32 to vector<256x1xi32>
    %44 = arith.cmpi slt, %12, %43 : vector<256x1xi32>
    %45 = arith.andi %42, %44 : vector<256x1xi1>
    %46 = arith.extui %45 : vector<256x1xi1> to vector<256x1xi32>
    %47 = arith.sitofp %46 : vector<256x1xi32> to vector<256x1xf32>
    %48 = vector.broadcast %47 : vector<256x1xf32> to vector<256x32xf32>
    %49 = arith.mulf %40, %48 : vector<256x32xf32>
    %50 = arith.addf %36, %49 : vector<256x32xf32>
    %c3 = arith.constant 3 : index
    %c0_18 = arith.constant 0 : index
    %c0_19 = arith.constant 0 : index
    %51 = vector.load %arg3[%c3, %c0_18, %c0_19] : memref<9x3x32xbf16, #tpu.memory_space<vmem>>, vector<1x3x32xbf16>
    %52 = vector.shape_cast %51 : vector<1x3x32xbf16> to vector<3x32xbf16>
    %cst_20 = arith.constant dense<0.000000e+00> : vector<256x32xf32>
    %53 = tpu.matmul %1, %52, %cst_20 {dimension_numbers = #tpu.dot_dimension_numbers<[1], [0], [0], [1], [0, 0, 1, 1], [], []>} : vector<256x3xbf16>, vector<3x32xbf16>, vector<256x32xf32> -> vector<256x32xf32>
    %c1_i32_21 = arith.constant 1 : i32
    %54 = tpu.dynamic_rotate %53 by %c1_i32_21 dim 0 : vector<256x32xf32>, i32 -> vector<256x32xf32>
    %c1_i32_22 = arith.constant 1 : i32
    %55 = vector.broadcast %c1_i32_22 : i32 to vector<256x1xi32>
    %56 = arith.cmpi sge, %12, %55 : vector<256x1xi32>
    %57 = arith.extui %56 : vector<256x1xi1> to vector<256x1xi32>
    %58 = arith.sitofp %57 : vector<256x1xi32> to vector<256x1xf32>
    %59 = vector.broadcast %58 : vector<256x1xf32> to vector<256x32xf32>
    %60 = arith.mulf %54, %59 : vector<256x32xf32>
    %61 = arith.addf %50, %60 : vector<256x32xf32>
    %c4 = arith.constant 4 : index
    %c0_23 = arith.constant 0 : index
    %c0_24 = arith.constant 0 : index
    %62 = vector.load %arg3[%c4, %c0_23, %c0_24] : memref<9x3x32xbf16, #tpu.memory_space<vmem>>, vector<1x3x32xbf16>
    %63 = vector.shape_cast %62 : vector<1x3x32xbf16> to vector<3x32xbf16>
    %cst_25 = arith.constant dense<0.000000e+00> : vector<256x32xf32>
    %64 = tpu.matmul %1, %63, %cst_25 {dimension_numbers = #tpu.dot_dimension_numbers<[1], [0], [0], [1], [0, 0, 1, 1], [], []>} : vector<256x3xbf16>, vector<3x32xbf16>, vector<256x32xf32> -> vector<256x32xf32>
    %65 = arith.addf %61, %64 : vector<256x32xf32>
    %c5 = arith.constant 5 : index
    %c0_26 = arith.constant 0 : index
    %c0_27 = arith.constant 0 : index
    %66 = vector.load %arg3[%c5, %c0_26, %c0_27] : memref<9x3x32xbf16, #tpu.memory_space<vmem>>, vector<1x3x32xbf16>
    %67 = vector.shape_cast %66 : vector<1x3x32xbf16> to vector<3x32xbf16>
    %cst_28 = arith.constant dense<0.000000e+00> : vector<256x32xf32>
    %68 = tpu.matmul %1, %67, %cst_28 {dimension_numbers = #tpu.dot_dimension_numbers<[1], [0], [0], [1], [0, 0, 1, 1], [], []>} : vector<256x3xbf16>, vector<3x32xbf16>, vector<256x32xf32> -> vector<256x32xf32>
    %c255_i32 = arith.constant 255 : i32
    %69 = tpu.dynamic_rotate %68 by %c255_i32 dim 0 : vector<256x32xf32>, i32 -> vector<256x32xf32>
    %c15_i32_29 = arith.constant 15 : i32
    %70 = vector.broadcast %c15_i32_29 : i32 to vector<256x1xi32>
    %71 = arith.cmpi slt, %12, %70 : vector<256x1xi32>
    %72 = arith.extui %71 : vector<256x1xi1> to vector<256x1xi32>
    %73 = arith.sitofp %72 : vector<256x1xi32> to vector<256x1xf32>
    %74 = vector.broadcast %73 : vector<256x1xf32> to vector<256x32xf32>
    %75 = arith.mulf %69, %74 : vector<256x32xf32>
    %76 = arith.addf %65, %75 : vector<256x32xf32>
    %c6 = arith.constant 6 : index
    %c0_30 = arith.constant 0 : index
    %c0_31 = arith.constant 0 : index
    %77 = vector.load %arg3[%c6, %c0_30, %c0_31] : memref<9x3x32xbf16, #tpu.memory_space<vmem>>, vector<1x3x32xbf16>
    %78 = vector.shape_cast %77 : vector<1x3x32xbf16> to vector<3x32xbf16>
    %cst_32 = arith.constant dense<0.000000e+00> : vector<256x32xf32>
    %79 = tpu.matmul %1, %78, %cst_32 {dimension_numbers = #tpu.dot_dimension_numbers<[1], [0], [0], [1], [0, 0, 1, 1], [], []>} : vector<256x3xbf16>, vector<3x32xbf16>, vector<256x32xf32> -> vector<256x32xf32>
    %c241_i32 = arith.constant 241 : i32
    %80 = tpu.dynamic_rotate %79 by %c241_i32 dim 0 : vector<256x32xf32>, i32 -> vector<256x32xf32>
    %c240_i32 = arith.constant 240 : i32
    %81 = vector.broadcast %c240_i32 : i32 to vector<256x1xi32>
    %82 = arith.cmpi slt, %2, %81 : vector<256x1xi32>
    %c1_i32_33 = arith.constant 1 : i32
    %83 = vector.broadcast %c1_i32_33 : i32 to vector<256x1xi32>
    %84 = arith.cmpi sge, %12, %83 : vector<256x1xi32>
    %85 = arith.andi %82, %84 : vector<256x1xi1>
    %86 = arith.extui %85 : vector<256x1xi1> to vector<256x1xi32>
    %87 = arith.sitofp %86 : vector<256x1xi32> to vector<256x1xf32>
    %88 = vector.broadcast %87 : vector<256x1xf32> to vector<256x32xf32>
    %89 = arith.mulf %80, %88 : vector<256x32xf32>
    %90 = arith.addf %76, %89 : vector<256x32xf32>
    %c7 = arith.constant 7 : index
    %c0_34 = arith.constant 0 : index
    %c0_35 = arith.constant 0 : index
    %91 = vector.load %arg3[%c7, %c0_34, %c0_35] : memref<9x3x32xbf16, #tpu.memory_space<vmem>>, vector<1x3x32xbf16>
    %92 = vector.shape_cast %91 : vector<1x3x32xbf16> to vector<3x32xbf16>
    %cst_36 = arith.constant dense<0.000000e+00> : vector<256x32xf32>
    %93 = tpu.matmul %1, %92, %cst_36 {dimension_numbers = #tpu.dot_dimension_numbers<[1], [0], [0], [1], [0, 0, 1, 1], [], []>} : vector<256x3xbf16>, vector<3x32xbf16>, vector<256x32xf32> -> vector<256x32xf32>
    %c240_i32_37 = arith.constant 240 : i32
    %94 = tpu.dynamic_rotate %93 by %c240_i32_37 dim 0 : vector<256x32xf32>, i32 -> vector<256x32xf32>
    %c240_i32_38 = arith.constant 240 : i32
    %95 = vector.broadcast %c240_i32_38 : i32 to vector<256x1xi32>
    %96 = arith.cmpi slt, %2, %95 : vector<256x1xi32>
    %97 = arith.extui %96 : vector<256x1xi1> to vector<256x1xi32>
    %98 = arith.sitofp %97 : vector<256x1xi32> to vector<256x1xf32>
    %99 = vector.broadcast %98 : vector<256x1xf32> to vector<256x32xf32>
    %100 = arith.mulf %94, %99 : vector<256x32xf32>
    %101 = arith.addf %90, %100 : vector<256x32xf32>
    %c8 = arith.constant 8 : index
    %c0_39 = arith.constant 0 : index
    %c0_40 = arith.constant 0 : index
    %102 = vector.load %arg3[%c8, %c0_39, %c0_40] : memref<9x3x32xbf16, #tpu.memory_space<vmem>>, vector<1x3x32xbf16>
    %103 = vector.shape_cast %102 : vector<1x3x32xbf16> to vector<3x32xbf16>
    %cst_41 = arith.constant dense<0.000000e+00> : vector<256x32xf32>
    %104 = tpu.matmul %1, %103, %cst_41 {dimension_numbers = #tpu.dot_dimension_numbers<[1], [0], [0], [1], [0, 0, 1, 1], [], []>} : vector<256x3xbf16>, vector<3x32xbf16>, vector<256x32xf32> -> vector<256x32xf32>
    %c239_i32 = arith.constant 239 : i32
    %105 = tpu.dynamic_rotate %104 by %c239_i32 dim 0 : vector<256x32xf32>, i32 -> vector<256x32xf32>
    %c240_i32_42 = arith.constant 240 : i32
    %106 = vector.broadcast %c240_i32_42 : i32 to vector<256x1xi32>
    %107 = arith.cmpi slt, %2, %106 : vector<256x1xi32>
    %c15_i32_43 = arith.constant 15 : i32
    %108 = vector.broadcast %c15_i32_43 : i32 to vector<256x1xi32>
    %109 = arith.cmpi slt, %12, %108 : vector<256x1xi32>
    %110 = arith.andi %107, %109 : vector<256x1xi1>
    %111 = arith.extui %110 : vector<256x1xi1> to vector<256x1xi32>
    %112 = arith.sitofp %111 : vector<256x1xi32> to vector<256x1xf32>
    %113 = vector.broadcast %112 : vector<256x1xf32> to vector<256x32xf32>
    %114 = arith.mulf %105, %113 : vector<256x32xf32>
    %115 = arith.addf %101, %114 : vector<256x32xf32>
    %c0_44 = arith.constant 0 : index
    %c0_45 = arith.constant 0 : index
    %116 = vector.load %arg4[%c0_44, %c0_45] : memref<1x32xf32, #tpu.memory_space<vmem>>, vector<1x32xf32>
    %117 = vector.broadcast %116 : vector<1x32xf32> to vector<256x32xf32>
    %118 = arith.addf %115, %117 : vector<256x32xf32>
    %cst_46 = arith.constant 0.000000e+00 : f32
    %119 = vector.broadcast %cst_46 : f32 to vector<256x32xf32>
    %120 = arith.cmpf oge, %118, %119 : vector<256x32xf32>
    %cst_47 = arith.constant 1.000000e-01 : f32
    %121 = vector.broadcast %cst_47 : f32 to vector<256x32xf32>
    %122 = arith.mulf %118, %121 : vector<256x32xf32>
    %123 = arith.select %120, %118, %122 : vector<256x32xi1>, vector<256x32xf32>
    %124 = arith.truncf %123 : vector<256x32xf32> to vector<256x32xbf16>
    %c0_48 = arith.constant 0 : index
    %c0_49 = arith.constant 0 : index
    %c0_50 = arith.constant 0 : index
    %125 = vector.load %arg5[%c0_48, %c0_49, %c0_50] : memref<1x256x32xbf16, #tpu.memory_space<vmem>>, vector<1x256x32xbf16>
    %126 = vector.shape_cast %125 : vector<1x256x32xbf16> to vector<256x32xbf16>
    %127 = vector.shape_cast %124 : vector<256x32xbf16> to vector<1x256x32xbf16>
    tpu.vector_store %arg5[%c0_48, %c0_49, %c0_50], %127 {strides = array<i32>} : memref<1x256x32xbf16, #tpu.memory_space<vmem>>, vector<1x256x32xbf16>,
    return
  }
  func.func @transform_0(%arg0: i32, %arg1: i32) -> (i32, i32, i32) {
    %c0_i32 = arith.constant 0 : i32
    %c0_i32_0 = arith.constant 0 : i32
    %c0_i32_1 = arith.constant 0 : i32
    return %arg0, %c0_i32, %c0_i32_0 : i32, i32, i32
  }
  func.func @transform_1(%arg0: i32, %arg1: i32) -> (i32, i32, i32) {
    %c0_i32 = arith.constant 0 : i32
    %c0_i32_0 = arith.constant 0 : i32
    %c0_i32_1 = arith.constant 0 : i32
    return %c0_i32, %c0_i32_0, %arg1 : i32, i32, i32
  }
  func.func @transform_2(%arg0: i32, %arg1: i32) -> (i32, i32) {
    %c0_i32 = arith.constant 0 : i32
    %c0_i32_0 = arith.constant 0 : i32
    return %c0_i32, %arg1 : i32, i32
  }
  func.func @transform_3(%arg0: i32, %arg1: i32) -> (i32, i32, i32) {
    %c0_i32 = arith.constant 0 : i32
    %c0_i32_0 = arith.constant 0 : i32
    return %arg0, %c0_i32, %arg1 : i32, i32, i32
  }
}

</mosaic_0001>

<bundles_post_ra>
// kernel: tpu_custom_call.1
= control target key start
LH: loop header
LB: loop body
LE: loop exit
PB: predicated region body
PF: predicated region fallthrough
CT: control target
= control target key end

     0   :  { %s5265_s12 = smov 0   ;;  %s5267_s13 = smov 0   ;;  %s7480_s0 = inlined_call_operand.vmem [shape: bf16[2,256,3], index: 0, kind: input, shape index: {}]   ;;  %s7481_s1 = inlined_call_operand.vmem [shape: bf16[9,3,32], index: 1, kind: input, shape index: {}]   ;;  %s7482_s2 = inlined_call_operand.vmem [shape: f32[1,32], index: 2, kind: input, shape index: {}]   ;;  %s7483_s3 = inlined_call_operand.vmem [shape: bf16[2,256,32], index: 3, kind: output, shape index: {}]  }
   0x1   :  { %s5269_s14 = smov 0  }
   0x2 LB: > { %s25_s15 = sadd.s32 1, %s5237_s13  ;;  %p4211_p0 = scmp.ge.s32.totalorder %s5241_s14, 1  ;;  %s5241_s14 = sphi %s5269_s14, %s13_s14   ;;  %s5237_s13 = sphi %s5267_s13, %s7847_s13   ;;  %s5233_s12 = sphi %s5265_s12, %s7846_s12  }
   0x3   : > { %p27_p1 = scmp.ge.s32.totalorder %s25_s15, 2  ;;  %p168_p2 = scmp.lt.s32.totalorder %s5241_s14, 3 }
   0x5   : > { %s7849_s15 = smov (%p27_p1, %s25_s15), 0  ;;  %p169_p3 = pnand %p4211_p0, %p168_p2 }
   0x7   : > { %172 = sbr.rel (%p169_p3) target bundleno = 552 (0x228), region = 32 }
   0xe   : > { %v512_v0 = vld [vmem:[%s7481_s1] sm:$0x3]  ;;  %vm642_vm0 = vcmask 1040384   ;;  %vm643_vm1 = vcmask 1041408   ;;  %p202_p4 = scmp.lt.s32.totalorder %s5233_s12, 1  ;;  %v5243_v1 = vmov 65535   ;;  %v255_v37 = vlaneseq }
   0xf   : > { %v644_v2 = vsel %vm642_vm0, 4294967295, %v5243_v1  ;;  %v4295_v3 = vld [vmem:[%s7481_s1 + $0x4] sm:$0x3]  ;;  %v4278_v4 = vld [vmem:[%s7481_s1 + $0x2] sm:$0x3]  ;;  %vm593_vm2 = vcmask 23552  }
  0x10   : > { %v5292_v5 = vsel %vm643_vm1, %v644_v2, 0  ;;  %s7851_s12 = smov (!%p202_p4, %s5233_s12), 1  ;;  %v4391_v9 = vld [vmem:[%s7481_s1 + $0x8] sm:$0x3]  ;;  %v4342_v10 = vld [vmem:[%s7481_s1 + $0x6] sm:$0x3] }
  0x11   : > { %v647_v6 = vand.u32 %v5292_v5, %v512_v0  ;;  %v1364_v7 = vand.u32 %v4295_v3, %v5292_v5  ;;  %v1070_v8 = vand.u32 %v4278_v4, %v5292_v5  ;;  %s4603_s22 = sshll.u32 %s7851_s12, 7  ;;  %v2145_v15 = vand.u32 %v4391_v9, %v5292_v5  ;;  %v4457_v29 = vld [vmem:[%s7481_s1 + $0xc] sm:$0x3]  ;;  %v4408_v30 = vld [vmem:[%s7481_s1 + $0xa] sm:$0x3] }
  0x12   : > { %s5305_s25 = scalar_lea.vmem %s7480_s0, %s4603_s22  ;;  %v1787_v17 = vand.u32 %v4342_v10, %v5292_v5  ;;  %v2701_v31 = vand.u32 %v4457_v29, %v5292_v5  ;;  %v2343_v32 = vand.u32 %v4408_v30, %v5292_v5  ;;  %v4521_v33 = vld [vmem:[%s7481_s1 + $0x10] sm:$0x3]  ;;  %v4504_v34 = vld [vmem:[%s7481_s1 + $0xe] sm:$0x3]  ;;  %v5519_v38 = vshrl.u32 %v255_v37, 7  ;;  %s7179_s19 = scalar_lea.vmem %s7483_s3, %s4603_s22 }
  0x13   : > { %4790 = vmatprep.subr.bf16.mxu0 %v647_v6  ;;  %5096 = vmatprep.subr.bf16.mxu1 %v647_v6  ;;  %v5314_v11 = vld [vmem:[%s5305_s25] sm:$0xff]   ;;  %v5322_v13 = vld [vmem:[%s5305_s25 + $0x8] sm:$0xff]   ;;  %v5333_v16 = vld [vmem:[%s5305_s25 + $0x10] sm:$0xff]   ;;  %v5478_v35 = vand.u32 %v4521_v33, %v5292_v5  ;;  %v5483_v36 = vand.u32 %v4504_v34, %v5292_v5 }
  0x14   : > { %4791 = vmatpush3.bf16.msra.mxu0 %v647_v6  ;;  %5097 = vmatpush3.bf16.msra.mxu1 %v647_v6  ;;  %v5317_v12 = vld [vmem:[%s5305_s25 + $0x40] sm:$0xff]   ;;  %v5327_v14 = vld [vmem:[%s5305_s25 + $0x48] sm:$0xff]   ;;  %v5339_v18 = vld [vmem:[%s5305_s25 + $0x50] sm:$0xff]   ;;  %v5528_v39 = vadd.s32 40, %v5519_v38  ;;  %v5531_v40 = vadd.s32 32, %v5519_v38  ;;  %v5534_v41 = vadd.s32 24, %v5519_v38 }
  0x15   : > { %4858 = vmatprep.subr.bf16.mxu0 %v1364_v7  ;;  %4824 = vmatprep.subr.bf16.mxu1 %v1070_v8  ;;  %v5346_v19 = vld [vmem:[%s5305_s25 + $0x18] sm:$0xff]   ;;  %v5352_v21 = vld [vmem:[%s5305_s25 + $0x20] sm:$0xff]   ;;  %v5366_v23 = vld [vmem:[%s5305_s25 + $0x28] sm:$0xff]   ;;  %v5548_v45 = vadd.s32 160, %v5519_v38  ;;  %v5551_v47 = vadd.s32 48, %v5519_v38  ;;  %v5554_v50 = vadd.s32 64, %v5519_v38 }
  0x16   : > { %4792 = vmatprep.mubr.msk.bf16.mxu0 %vm593_vm2, %v5314_v11  ;;  %4808 = vmatprep.mubr.msk.bf16.mxu1 %vm593_vm2, %v5317_v12  ;;  %v5349_v20 = vld [vmem:[%s5305_s25 + $0x58] sm:$0xff]   ;;  %v5355_v22 = vld [vmem:[%s5305_s25 + $0x60] sm:$0xff]   ;;  %v5369_v24 = vld [vmem:[%s5305_s25 + $0x68] sm:$0xff]   ;;  %v293_v42 = vcvt.s32.f32 %v5528_v39  ;;  %v292_v43 = vcvt.s32.f32 %v5531_v40  ;;  %v291_v44 = vcvt.s32.f32 %v5534_v41  ;;  %v5557_v51 = vadd.s32 72, %v5519_v38 }
  0x17   : > { %4793 = vmatmul.mubr.msk.bf16.vlgmr.msra.gmra.mrb[0].mxu0 %vm593_vm2, %v5322_v13  ;;  %4809 = vmatmul.mubr.msk.bf16.vlgmr.msra.gmra.mrb[0].mxu1 %vm593_vm2, %v5327_v14  ;;  %v5372_v25 = vld [vmem:[%s5305_s25 + $0x30] sm:$0xff]   ;;  %v5386_v27 = vld [vmem:[%s5305_s25 + $0x38] sm:$0xff]   ;;  %v308_v52 = vcvt.s32.f32 %v5548_v45  ;;  %v5563_v54 = vadd.s32 56, %v5519_v38  ;;  %v5566_v55 = vadd.s32 168, %v5519_v38  ;;  %v294_v56 = vcvt.s32.f32 %v5551_v47 }
  0x18   : > { %4859 = vmatpush3.bf16.msra.mxu0 %v1364_v7  ;;  %4825 = vmatpush3.bf16.msra.mxu1 %v1070_v8  ;;  %v5375_v26 = vld [vmem:[%s5305_s25 + $0x70] sm:$0xff]   ;;  %v5389_v28 = vld [vmem:[%s5305_s25 + $0x78] sm:$0xff]   ;;  %v325_v46 = vadd.f32 0.5, %v293_v42  ;;  %v324_v48 = vadd.f32 0.5, %v292_v43  ;;  %v323_v49 = vadd.f32 0.5, %v291_v44  ;;  %v296_v59 = vcvt.s32.f32 %v5554_v50 }
  0x19   : > { %4796 = vmatprep.mubr.msk.bf16.mxu0 %vm593_vm2, %v5333_v16  ;;  %4812 = vmatprep.mubr.msk.bf16.mxu1 %vm593_vm2, %v5339_v18  ;;  %v297_v60 = vcvt.s32.f32 %v5557_v51  ;;  %v340_v61 = vadd.f32 0.5, %v308_v52  ;;  %v295_v63 = vcvt.s32.f32 %v5563_v54  ;;  %v309_v0 = vcvt.s32.f32 %v5566_v55 }
  0x1a   : > { %4926 = vmatprep.subr.bf16.mxu0 %v2145_v15  ;;  %4892 = vmatprep.subr.bf16.mxu1 %v1787_v17  ;;  %v357_v53 = vmul.f32 0.0625, %v325_v46  ;;  %v356_v57 = vmul.f32 0.0625, %v324_v48  ;;  %v355_v58 = vmul.f32 0.0625, %v323_v49  ;;  %v5580_v1 = vadd.s32 152, %v5519_v38 }
  0x1b   : > { %v326_v2 = vadd.f32 0.5, %v294_v56  ;;  %v5583_v3 = vadd.s32 80, %v5519_v38  ;;  %v328_v6 = vadd.f32 0.5, %v296_v59  ;;  %v329_v7 = vadd.f32 0.5, %v297_v60 }
  0x1c   : > { %v389_v62 = vfloor.f32 %v357_v53  ;;  %v388_v4 = vfloor.f32 %v356_v57  ;;  %v387_v5 = vfloor.f32 %v355_v58  ;;  %v5586_v8 = vadd.s32 96, %v5519_v38 }
  0x1d   : > { %v372_v9 = vmul.f32 0.0625, %v340_v61  ;;  %v307_v29 = vcvt.s32.f32 %v5580_v1  ;;  %v358_v30 = vmul.f32 0.0625, %v326_v2  ;;  %v360_v37 = vmul.f32 0.0625, %v328_v6 }
  0x1e   : > { %v5108_v10 = vtrunc.f32 %v389_v62  ;;  %v5106_v33 = vtrunc.f32 %v388_v4  ;;  %v5104_v34 = vtrunc.f32 %v387_v5  ;;  %v361_v42 = vmul.f32 0.0625, %v329_v7 }
  0x1f   : > { %4797 = vmatmul.mubr.msk.bf16.gmra.mrb[4].mxu0 %vm593_vm2, %v5346_v19  ;;  %4813 = vmatmul.mubr.msk.bf16.gmra.mrb[4].mxu1 %vm593_vm2, %v5349_v20  ;;  %v5602_v43 = vadd.s32 16, %v5519_v38  ;;  %v300_v44 = vcvt.s32.f32 %v5586_v8  ;;  %v5606_v46 = vadd.s32 88, %v5519_v38  ;;  %v404_v48 = vfloor.f32 %v372_v9 }
  0x20   : > { %4800 = vmatprep.mubr.msk.bf16.mxu0 %vm593_vm2, %v5352_v21  ;;  %4816 = vmatprep.mubr.msk.bf16.mxu1 %vm593_vm2, %v5355_v22  ;;  %v5109_v49 = vcvt.f32.s32 %v5108_v10  ;;  %v339_v56 = vadd.f32 0.5, %v307_v29  ;;  %v390_v57 = vfloor.f32 %v358_v30  ;;  %v5612_v60 = vadd.s32 128, %v5519_v38 }
  0x21   : > { %v5107_v61 = vcvt.f32.s32 %v5106_v33  ;;  %v5105_v62 = vcvt.f32.s32 %v5104_v34  ;;  %v290_v2 = vcvt.s32.f32 %v5602_v43  ;;  %v332_v4 = vadd.f32 0.5, %v300_v44 }
  0x22   : > { %v299_v5 = vcvt.s32.f32 %v5606_v46  ;;  %v5616_v6 = vtrunc.f32 %v404_v48  ;;  %v453_v7 = vmul.u32 16, %v5109_v49  ;;  %v5621_v10 = vadd.s32 112, %v5519_v38 }
  0x23   : > { %v452_v33 = vmul.u32 16, %v5107_v61  ;;  %v451_v34 = vmul.u32 16, %v5105_v62  ;;  %v364_v44 = vmul.f32 0.0625, %v332_v4 }
  0x24   : > { %v5139_v48 = vcvt.f32.s32 %v5616_v6  ;;  %v5636_v49 = vsub.s32 %v5528_v39, %v453_v7 }
  0x25   : > { %v5646_v62 = vsub.s32 %v5534_v41, %v451_v34 }
  0x26   : > { %vm912_vm3 = vcmp.ge.s32.totalorder %v5636_v49, 1 }
  0x27   : > { %4801 = vmatmul.mubr.msk.bf16.gmra.mrb[8].mxu0 %vm593_vm2, %v5366_v23  ;;  %4817 = vmatmul.mubr.msk.bf16.gmra.mrb[8].mxu1 %vm593_vm2, %v5369_v24  ;;  %vm910_vm5 = vcmp.ge.s32.totalorder %v5646_v62, 1 }
  0x28   : > { %4804 = vmatprep.mubr.msk.bf16.mxu0 %vm593_vm2, %v5372_v25  ;;  %4820 = vmatprep.mubr.msk.bf16.mxu1 %vm593_vm2, %v5375_v26 }
  0x2f   : > { %4805 = vmatmul.mubr.msk.bf16.gmra.mrb[12].mxu0 %vm593_vm2, %v5386_v27  ;;  %4821 = vmatmul.mubr.msk.bf16.gmra.mrb[12].mxu1 %vm593_vm2, %v5389_v28 }
  0x30   : > { %4860 = vmatprep.mubr.msk.bf16.mxu0 %vm593_vm2, %v5314_v11  ;;  %4826 = vmatprep.mubr.msk.bf16.mxu1 %vm593_vm2, %v5314_v11 }
  0x37   : > { %4861 = vmatmul.mubr.msk.bf16.vlgmr.msra.gmra.mrb[16].mxu0 %vm593_vm2, %v5322_v13  ;;  %4827 = vmatmul.mubr.msk.bf16.vlgmr.msra.gmra.mrb[16].mxu1 %vm593_vm2, %v5322_v13 }
  0x38   : > { %4927 = vmatpush3.bf16.msra.mxu0 %v2145_v15  ;;  %4893 = vmatpush3.bf16.msra.mxu1 %v1787_v17  ;;  %v327_v15 = vadd.f32 0.5, %v295_v63  ;;  %v341_v17 = vadd.f32 0.5, %v309_v0  ;;  %v392_v63 = vfloor.f32 %v360_v37  ;;  %v393_v0 = vfloor.f32 %v361_v42 }
  0x39   : > { %4830 = vmatprep.mubr.msk.bf16.mxu1 %vm593_vm2, %v5333_v16  ;;  %4864 = vmatprep.mubr.msk.bf16.mxu0 %vm593_vm2, %v5333_v16 }
  0x3a   : > { %4994 = vmatprep.subr.bf16.mxu0 %v2701_v31  ;;  %4960 = vmatprep.subr.bf16.mxu1 %v2343_v32  ;;  %v359_v52 = vmul.f32 0.0625, %v327_v15  ;;  %v5608_v53 = vmul.f32 0.0625, %v341_v17  ;;  %v5623_v15 = vmul.f32 0.0625, %v339_v56  ;;  %v5110_v17 = vtrunc.f32 %v390_v57 }
  0x3b   : > { %v5114_v37 = vtrunc.f32 %v392_v63  ;;  %v5116_v42 = vtrunc.f32 %v393_v0  ;;  %v5640_v56 = vadd.s32 136, %v5519_v38 }
  0x3c   : > { %v391_v9 = vfloor.f32 %v359_v52  ;;  %v5111_v57 = vcvt.f32.s32 %v5110_v17 }
  0x3d   : > { %v5115_v63 = vcvt.f32.s32 %v5114_v37  ;;  %v5117_v0 = vcvt.f32.s32 %v5116_v42  ;;  %v5663_v42 = vadd.s32 144, %v5519_v38 }
  0x3e   : > { %v5112_v52 = vtrunc.f32 %v391_v9  ;;  %v305_v9 = vcvt.s32.f32 %v5640_v56 }
  0x3f   : > { %4865 = vmatmul.mubr.msk.bf16.gmra.mrb[20].mxu0 %vm593_vm2, %v5346_v19  ;;  %4831 = vmatmul.mubr.msk.bf16.gmra.mrb[20].mxu1 %vm593_vm2, %v5346_v19 }
  0x40   : > { %4868 = vmatprep.mubr.msk.bf16.mxu0 %vm593_vm2, %v5352_v21  ;;  %4834 = vmatprep.mubr.msk.bf16.mxu1 %vm593_vm2, %v5352_v21 }
  0x47   : > { %4869 = vmatmul.mubr.msk.bf16.gmra.mrb[24].mxu0 %vm593_vm2, %v5366_v23  ;;  %4835 = vmatmul.mubr.msk.bf16.gmra.mrb[24].mxu1 %vm593_vm2, %v5366_v23 }
  0x48   : > { %4872 = vmatprep.mubr.msk.bf16.mxu0 %vm593_vm2, %v5372_v25  ;;  %4838 = vmatprep.mubr.msk.bf16.mxu1 %vm593_vm2, %v5372_v25 }
  0x4f   : > { %4873 = vmatmul.mubr.msk.bf16.gmra.mrb[28].mxu0 %vm593_vm2, %v5386_v27  ;;  %4839 = vmatmul.mubr.msk.bf16.gmra.mrb[28].mxu1 %vm593_vm2, %v5386_v27 }
  0x50   : > { %4876 = vmatprep.mubr.msk.bf16.mxu0 %vm593_vm2, %v5317_v12  ;;  %4842 = vmatprep.mubr.msk.bf16.mxu1 %vm593_vm2, %v5317_v12 }
  0x57   : > { %4877 = vmatmul.mubr.msk.bf16.gmra.mrb[32].mxu0 %vm593_vm2, %v5327_v14  ;;  %4843 = vmatmul.mubr.msk.bf16.gmra.mrb[32].mxu1 %vm593_vm2, %v5327_v14 }
  0x58   : > { %4880 = vmatprep.mubr.msk.bf16.mxu0 %vm593_vm2, %v5339_v18  ;;  %4846 = vmatprep.mubr.msk.bf16.mxu1 %vm593_vm2, %v5339_v18 }
  0x5f   : > { %4881 = vmatmul.mubr.msk.bf16.gmra.mrb[36].mxu0 %vm593_vm2, %v5349_v20  ;;  %4847 = vmatmul.mubr.msk.bf16.gmra.mrb[36].mxu1 %vm593_vm2, %v5349_v20 }
  0x60   : > { %4884 = vmatprep.mubr.msk.bf16.mxu0 %vm593_vm2, %v5355_v22  ;;  %4850 = vmatprep.mubr.msk.bf16.mxu1 %vm593_vm2, %v5355_v22 }
  0x67   : > { %4885 = vmatmul.mubr.msk.bf16.gmra.mrb[40].mxu0 %vm593_vm2, %v5369_v24  ;;  %4851 = vmatmul.mubr.msk.bf16.gmra.mrb[40].mxu1 %vm593_vm2, %v5369_v24 }
  0x68   : > { %4888 = vmatprep.mubr.msk.bf16.mxu0 %vm593_vm2, %v5375_v26  ;;  %4854 = vmatprep.mubr.msk.bf16.mxu1 %vm593_vm2, %v5375_v26 }
  0x6f   : > { %4889 = vmatmul.mubr.msk.bf16.gmra.mrb[44].mxu0 %vm593_vm2, %v5389_v28  ;;  %4855 = vmatmul.mubr.msk.bf16.gmra.mrb[44].mxu1 %vm593_vm2, %v5389_v28 }
  0x70   : > { %4928 = vmatprep.mubr.msk.bf16.mxu0 %vm593_vm2, %v5314_v11  ;;  %4894 = vmatprep.mubr.msk.bf16.mxu1 %vm593_vm2, %v5314_v11 }
  0x77   : > { %4929 = vmatmul.mubr.msk.bf16.vlgmr.msra.gmra.mrb[48].mxu0 %vm593_vm2, %v5322_v13  ;;  %4895 = vmatmul.mubr.msk.bf16.vlgmr.msra.gmra.mrb[48].mxu1 %vm593_vm2, %v5322_v13 }
  0x78   : > { %4995 = vmatpush3.bf16.msra.mxu0 %v2701_v31  ;;  %4961 = vmatpush3.bf16.msra.mxu1 %v2343_v32  ;;  %v298_v31 = vcvt.s32.f32 %v5583_v3  ;;  %v5597_v32 = vadd.s32 104, %v5519_v38 }
  0x79   : > { %4898 = vmatprep.mubr.msk.bf16.mxu1 %vm593_vm2, %v5333_v16  ;;  %4932 = vmatprep.mubr.msk.bf16.mxu0 %vm593_vm2, %v5333_v16 }
  0x7a   : > { %5062 = vmatprep.subr.bf16.mxu0 %v5478_v35  ;;  %5028 = vmatprep.subr.bf16.mxu1 %v5483_v36  ;;  %v330_v58 = vadd.f32 0.5, %v298_v31  ;;  %v301_v59 = vcvt.s32.f32 %v5597_v32  ;;  %v304_v31 = vcvt.s32.f32 %v5612_v60 }
  0x7c   : > { %v362_v29 = vmul.f32 0.0625, %v330_v58  ;;  %v333_v30 = vadd.f32 0.5, %v301_v59  ;;  %v336_v61 = vadd.f32 0.5, %v304_v31  ;;  %v457_v31 = vmul.u32 16, %v5117_v0 }
  0x7e   : > { %v394_v58 = vfloor.f32 %v362_v29  ;;  %v365_v59 = vmul.f32 0.0625, %v333_v30  ;;  %v368_v29 = vmul.f32 0.0625, %v336_v61  ;;  %v456_v30 = vmul.u32 16, %v5115_v63 }
  0x7f   : > { %4933 = vmatmul.mubr.msk.bf16.gmra.mrb[52].mxu0 %vm593_vm2, %v5346_v19  ;;  %4899 = vmatmul.mubr.msk.bf16.gmra.mrb[52].mxu1 %vm593_vm2, %v5346_v19  ;;  %v5678_v63 = vsub.s32 %v5557_v51, %v457_v31 }
  0x80   : > { %4936 = vmatprep.mubr.msk.bf16.mxu0 %vm593_vm2, %v5352_v21  ;;  %4902 = vmatprep.mubr.msk.bf16.mxu1 %vm593_vm2, %v5352_v21  ;;  %v5118_v41 = vtrunc.f32 %v394_v58  ;;  %v397_v17 = vfloor.f32 %v365_v59  ;;  %v400_v59 = vfloor.f32 %v368_v29  ;;  %v5675_v61 = vsub.s32 %v5554_v50, %v456_v30 }
  0x81   : > { %vm916_vm8 = vcmp.ge.s32.totalorder %v5678_v63, 1 }
  0x82   : > { %v5124_v58 = vtrunc.f32 %v397_v17  ;;  %vm915_vm7 = vcmp.ge.s32.totalorder %v5675_v61, 1 }
  0x87   : > { %4937 = vmatmul.mubr.msk.bf16.gmra.mrb[56].mxu0 %vm593_vm2, %v5366_v23  ;;  %4903 = vmatmul.mubr.msk.bf16.gmra.mrb[56].mxu1 %vm593_vm2, %v5366_v23 }
  0x88   : > { %4940 = vmatprep.mubr.msk.bf16.mxu0 %vm593_vm2, %v5372_v25  ;;  %4906 = vmatprep.mubr.msk.bf16.mxu1 %vm593_vm2, %v5372_v25 }
  0x8f   : > { %4941 = vmatmul.mubr.msk.bf16.gmra.mrb[60].mxu0 %vm593_vm2, %v5386_v27  ;;  %4907 = vmatmul.mubr.msk.bf16.gmra.mrb[60].mxu1 %vm593_vm2, %v5386_v27 }
  0x90   : > { %4944 = vmatprep.mubr.msk.bf16.mxu0 %vm593_vm2, %v5317_v12  ;;  %4910 = vmatprep.mubr.msk.bf16.mxu1 %vm593_vm2, %v5317_v12 }
  0x97   : > { %4945 = vmatmul.mubr.msk.bf16.gmra.mrb[64].mxu0 %vm593_vm2, %v5327_v14  ;;  %4911 = vmatmul.mubr.msk.bf16.gmra.mrb[64].mxu1 %vm593_vm2, %v5327_v14 }
  0x98   : > { %4948 = vmatprep.mubr.msk.bf16.mxu0 %vm593_vm2, %v5339_v18  ;;  %4914 = vmatprep.mubr.msk.bf16.mxu1 %vm593_vm2, %v5339_v18 }
  0x9f   : > { %4949 = vmatmul.mubr.msk.bf16.gmra.mrb[68].mxu0 %vm593_vm2, %v5349_v20  ;;  %4915 = vmatmul.mubr.msk.bf16.gmra.mrb[68].mxu1 %vm593_vm2, %v5349_v20 }
  0xa0   : > { %4952 = vmatprep.mubr.msk.bf16.mxu0 %vm593_vm2, %v5355_v22  ;;  %4918 = vmatprep.mubr.msk.bf16.mxu1 %vm593_vm2, %v5355_v22 }
  0xa7   : > { %4953 = vmatmul.mubr.msk.bf16.gmra.mrb[72].mxu0 %vm593_vm2, %v5369_v24  ;;  %4919 = vmatmul.mubr.msk.bf16.gmra.mrb[72].mxu1 %vm593_vm2, %v5369_v24 }
  0xa8   : > { %4956 = vmatprep.mubr.msk.bf16.mxu0 %vm593_vm2, %v5375_v26  ;;  %4922 = vmatprep.mubr.msk.bf16.mxu1 %vm593_vm2, %v5375_v26 }
  0xaf   : > { %4957 = vmatmul.mubr.msk.bf16.gmra.mrb[76].mxu0 %vm593_vm2, %v5389_v28  ;;  %4923 = vmatmul.mubr.msk.bf16.gmra.mrb[76].mxu1 %vm593_vm2, %v5389_v28 }
  0xb0   : > { %4996 = vmatprep.mubr.msk.bf16.mxu0 %vm593_vm2, %v5314_v11  ;;  %4962 = vmatprep.mubr.msk.bf16.mxu1 %vm593_vm2, %v5314_v11 }
  0xb7   : > { %4997 = vmatmul.mubr.msk.bf16.vlgmr.msra.gmra.mrb[80].mxu0 %vm593_vm2, %v5322_v13  ;;  %4963 = vmatmul.mubr.msk.bf16.vlgmr.msra.gmra.mrb[80].mxu1 %vm593_vm2, %v5322_v13  ;;  %v322_v13 = vadd.f32 0.5, %v290_v2  ;;  %v396_v2 = vfloor.f32 %v364_v44 }
  0xb8   : > { %5063 = vmatpush3.bf16.msra.mxu0 %v5478_v35  ;;  %5029 = vmatpush3.bf16.msra.mxu1 %v5483_v36  ;;  %v331_v35 = vadd.f32 0.5, %v299_v5  ;;  %v302_v36 = vcvt.s32.f32 %v5621_v10  ;;  %v5113_v5 = vcvt.f32.s32 %v5112_v52  ;;  %v337_v52 = vadd.f32 0.5, %v305_v9 }
  0xb9   : > { %4966 = vmatprep.mubr.msk.bf16.mxu1 %vm593_vm2, %v5333_v16  ;;  %5000 = vmatprep.mubr.msk.bf16.mxu0 %vm593_vm2, %v5333_v16  ;;  %v5643_v16 = vsub.s32 %v5531_v40, %v452_v33  ;;  %v354_v39 = vmul.f32 0.0625, %v322_v13  ;;  %v454_v40 = vmul.u32 16, %v5111_v57  ;;  %v5660_v33 = vadd.s32 120, %v5519_v38 }
  0xba   : > { %v363_v4 = vmul.f32 0.0625, %v331_v35  ;;  %v334_v7 = vadd.f32 0.5, %v302_v36  ;;  %v5122_v37 = vtrunc.f32 %v396_v2  ;;  %v7486_v13 = vmov 0.0  }
  0xbb   : > { %vm911_vm4 = vcmp.ge.s32.totalorder %v5643_v16, 1  ;;  %v386_v34 = vfloor.f32 %v354_v39  ;;  %v5668_v44 = vsel %vm912_vm3, 1.0, %v7486_v13  ;;  %v5671_v36 = vsub.s32 %v5551_v47, %v454_v40 }
  0xbc   : > { %7581 = vst [vmem:[#allocation2_spill] sm:$0xff] %v5668_v44  ;;  %v366_v35 = vmul.f32 0.0625, %v334_v7  ;;  %v5119_v57 = vcvt.f32.s32 %v5118_v41  ;;  %v303_v0 = vcvt.s32.f32 %v5660_v33  ;;  %v5123_v2 = vcvt.f32.s32 %v5122_v37 }
  0xbd   : > { %v5102_v39 = vtrunc.f32 %v386_v34  ;;  %v5687_v47 = vsel %vm911_vm4, 1.0, %v7486_v13  ;;  %v369_v7 = vmul.f32 0.0625, %v337_v52  ;;  %vm913_vm6 = vcmp.ge.s32.totalorder %v5671_v36, 1 }
  0xbe   : > { %7582 = vst [vmem:[#allocation3_spill] sm:$0xff] %v5687_v47  ;;  %v398_v51 = vfloor.f32 %v366_v35  ;;  %v458_v9 = vmul.u32 16, %v5119_v57  ;;  %v5125_v40 = vcvt.f32.s32 %v5124_v58  ;;  %v5130_v41 = vtrunc.f32 %v400_v59 }
  0xbf   : > { %5001 = vmatmul.mubr.msk.bf16.gmra.mrb[84].mxu0 %vm593_vm2, %v5346_v19  ;;  %4967 = vmatmul.mubr.msk.bf16.gmra.mrb[84].mxu1 %vm593_vm2, %v5346_v19  ;;  %v395_v19 = vfloor.f32 %v363_v4  ;;  %v5103_v17 = vcvt.f32.s32 %v5102_v39  ;;  %v460_v29 = vmul.u32 16, %v5123_v2  ;;  %v5707_v34 = vsel %vm913_vm6, 1.0, %v7486_v13 }
  0xc0   : > { %5004 = vmatprep.mubr.msk.bf16.mxu0 %vm593_vm2, %v5352_v21  ;;  %4970 = vmatprep.mubr.msk.bf16.mxu1 %vm593_vm2, %v5352_v21  ;;  %v455_v21 = vmul.u32 16, %v5113_v5  ;;  %v306_v5 = vcvt.s32.f32 %v5663_v42  ;;  %7584 = vst [vmem:[#allocation5_spill] sm:$0xff] %v5707_v34  ;;  %v401_v37 = vfloor.f32 %v369_v7  ;;  %v5131_v35 = vcvt.f32.s32 %v5130_v41 }
  0xc1   : > { %v5120_v4 = vtrunc.f32 %v395_v19  ;;  %v5711_v19 = vsub.s32 %v5583_v3, %v458_v9  ;;  %v5714_v52 = vadd.s32 192, %v5519_v38  ;;  %v5717_v57 = vsel %vm915_vm7, 1.0, %v7486_v13 }
  0xc2   : > { %v5690_v50 = vsub.s32 %v5563_v54, %v455_v21  ;;  %v5702_v54 = vsel %vm910_vm5, 1.0, %v7486_v13  ;;  %v338_v31 = vadd.f32 0.5, %v306_v5  ;;  %v461_v21 = vmul.u32 16, %v5125_v40 }
  0xc3   : > { %7583 = vst [vmem:[#allocation4_spill] sm:$0xff] %v5702_v54  ;;  %v5121_v30 = vcvt.f32.s32 %v5120_v4  ;;  %v5720_v58 = vsel %vm916_vm8, 1.0, %v7486_v13  ;;  %v450_v39 = vmul.u32 16, %v5103_v17  ;;  %v5724_v2 = vsub.s32 %v5586_v8, %v460_v29 }
  0xc4   : > { %vm914_vm9 = vcmp.ge.s32.totalorder %v5690_v50, 1  ;;  %7585 = vst [vmem:[#allocation6_spill] sm:$0xff] %v5720_v58  ;;  %v370_v4 = vmul.f32 0.0625, %v338_v31  ;;  %v5132_v7 = vtrunc.f32 %v401_v37  ;;  %v5734_v9 = vadd.s32 176, %v5519_v38 }
  0xc5   : > { %v459_v3 = vmul.u32 16, %v5121_v30  ;;  %v5731_v5 = vsel %vm914_vm9, 1.0, %v7486_v13  ;;  %vm917_vm10 = vcmp.ge.s32.totalorder %v5711_v19, 1  ;;  %v5742_v8 = vsub.s32 %v5597_v32, %v461_v21 }
  0xc6   : > { %7586 = vst [vmem:[#allocation7_spill] sm:$0xff] %v5731_v5  ;;  %v312_v40 = vcvt.s32.f32 %v5714_v52  ;;  %v5751_v29 = vsub.s32 %v5602_v43, %v450_v39  ;;  %vm919_vm11 = vcmp.ge.s32.totalorder %v5724_v2, 1  ;;  %v402_v30 = vfloor.f32 %v370_v4 }
  0xc7   : > { %5005 = vmatmul.mubr.msk.bf16.gmra.mrb[88].mxu0 %vm593_vm2, %v5366_v23  ;;  %4971 = vmatmul.mubr.msk.bf16.gmra.mrb[88].mxu1 %vm593_vm2, %v5366_v23  ;;  %v335_v23 = vadd.f32 0.5, %v303_v0  ;;  %v405_v0 = vfloor.f32 %v5608_v53  ;;  %v464_v53 = vmul.u32 16, %v5131_v35  ;;  %v5755_v32 = vsub.s32 %v5606_v46, %v459_v3 }
  0xc8   : > { %5008 = vmatprep.mubr.msk.bf16.mxu0 %vm593_vm2, %v5372_v25  ;;  %4974 = vmatprep.mubr.msk.bf16.mxu1 %vm593_vm2, %v5372_v25  ;;  %v5126_v25 = vtrunc.f32 %v398_v51  ;;  %v5759_v37 = vadd.s32 200, %v5519_v38  ;;  %v5764_v6 = vsel %vm917_vm10, 1.0, %v7486_v13  ;;  %vm920_vm12 = vcmp.ge.s32.totalorder %v5742_v8, 1 }
  0xc9   : > { %v367_v59 = vmul.f32 0.0625, %v335_v23  ;;  %v468_v23 = vmul.u32 16, %v5139_v48  ;;  %v5140_v17 = vtrunc.f32 %v405_v0  ;;  %7587 = vst [vmem:[#allocation8_spill] sm:$0xff] %v5764_v6  ;;  %v5768_v43 = vsub.s32 %v5612_v60, %v464_v53 }
  0xca   : > { %v5127_v51 = vcvt.f32.s32 %v5126_v25  ;;  %v5133_v25 = vcvt.f32.s32 %v5132_v7  ;;  %v344_v46 = vadd.f32 0.5, %v312_v40  ;;  %vm909_vm13 = vcmp.ge.s32.totalorder %v5751_v29, 1 }
  0xcb   : > { %v399_v41 = vfloor.f32 %v367_v59  ;;  %v5771_v48 = vsub.s32 %v5548_v45, %v468_v23  ;;  %v5141_v21 = vcvt.f32.s32 %v5140_v17  ;;  %v5777_v59 = vsel %vm919_vm11, 1.0, %v7486_v13 }
  0xcc   : > { %v462_v31 = vmul.u32 16, %v5127_v51  ;;  %7588 = vst [vmem:[#allocation9_spill] sm:$0xff] %v5777_v59  ;;  %vm918_vm14 = vcmp.ge.s32.totalorder %v5755_v32, 1  ;;  %v5134_v0 = vtrunc.f32 %v402_v30  ;;  %v465_v45 = vmul.u32 16, %v5133_v25  ;;  %v5204_v59 = vld [vmem:[%s5305_s25 + $0x8] sm:$0xff]  }
  0xcd   : > { %v313_v3 = vcvt.s32.f32 %v5759_v37  ;;  %v5793_v4 = vsel %vm920_vm12, 1.0, %v7486_v13  ;;  %vm923_vm15 = vcmp.ge.s32.totalorder %v5768_v43, 1  ;;  %v376_v51 = vmul.f32 0.0625, %v344_v46 }
  0xce   : > { %v5783_v60 = vsub.s32 %v5621_v10, %v462_v31  ;;  %7589 = vst [vmem:[#allocation10_spill] sm:$0xff] %v5793_v4  ;;  %v5797_v10 = vadd.s32 184, %v5519_v38  ;;  %vm927_vm0 = vcmp.ge.s32.totalorder %v5771_v48, 1  ;;  %v5805_v40 = vsel %vm909_vm13, 1.0, %v7486_v13 }
  0xcf   : > { %5009 = vmatmul.mubr.msk.bf16.gmra.mrb[92].mxu0 %vm593_vm2, %v5386_v27  ;;  %4975 = vmatmul.mubr.msk.bf16.gmra.mrb[92].mxu1 %vm593_vm2, %v5386_v27  ;;  %v403_v27 = vfloor.f32 %v5623_v15  ;;  %v5128_v15 = vtrunc.f32 %v399_v41  ;;  %7590 = vst [vmem:[#allocation11_spill] sm:$0xff] %v5805_v40  ;;  %vm1596_vm1 = vcmp.lt.s32.totalorder %v5643_v16, 15  ;;  %v5811_v41 = vsel %vm918_vm14, 1.0, %v7486_v13 }
  0xd0   : > { %5012 = vmatprep.mubr.msk.bf16.mxu0 %vm593_vm2, %v5317_v12  ;;  %4978 = vmatprep.mubr.msk.bf16.mxu1 %vm593_vm2, %v5317_v12  ;;  %v310_v12 = vcvt.s32.f32 %v5734_v9  ;;  %7591 = vst [vmem:[#allocation12_spill] sm:$0xff] %v5811_v41  ;;  %v5135_v23 = vcvt.f32.s32 %v5134_v0  ;;  %vm921_vm3 = vcmp.ge.s32.totalorder %v5783_v60, 1  ;;  %v5820_v30 = vsel %vm923_vm15, 1.0, %v7486_v13 }
  0xd1   : > { %v5136_v35 = vtrunc.f32 %v403_v27  ;;  %v5129_v7 = vcvt.f32.s32 %v5128_v15  ;;  %v345_v27 = vadd.f32 0.5, %v313_v3  ;;  %7592 = vst [vmem:[#allocation13_spill] sm:$0xff] %v5820_v30  ;;  %v5823_v16 = vsel %vm927_vm0, 1.0, %v7486_v13 }
  0xd2   : > { %v342_v39 = vadd.f32 0.5, %v310_v12  ;;  %7593 = vst [vmem:[#allocation14_spill] sm:$0xff] %v5823_v16  ;;  %v408_v31 = vfloor.f32 %v376_v51  ;;  %v311_v25 = vcvt.s32.f32 %v5797_v10  ;;  %vm1594_vm4 = vcmp.lt.s32.totalorder %v5751_v29, 15 }
  0xd3   : > { %v5137_v53 = vcvt.f32.s32 %v5136_v35  ;;  %v463_v12 = vmul.u32 16, %v5129_v7  ;;  %v5831_v15 = vsel %vm1596_vm1, 1.0, %v7486_v13  ;;  %vm1595_vm5 = vcmp.lt.s32.totalorder %v5646_v62, 15 }
  0xd4   : > { %v374_v17 = vmul.f32 0.0625, %v342_v39  ;;  %7594 = vst [vmem:[#allocation15_spill] sm:$0xff] %v5831_v15  ;;  %v466_v35 = vmul.u32 16, %v5135_v23  ;;  %v377_v0 = vmul.f32 0.0625, %v345_v27  ;;  %vm1597_vm7 = vcmp.lt.s32.totalorder %v5636_v49, 15 }
  0xd5   : > { %v5146_v39 = vtrunc.f32 %v408_v31  ;;  %v343_v3 = vadd.f32 0.5, %v311_v25  ;;  %vm1600_vm8 = vcmp.lt.s32.totalorder %v5675_v61, 15  ;;  %v5855_v51 = vsub.s32 %v5660_v33, %v463_v12 }
  0xd6   : > { %v406_v29 = vfloor.f32 %v374_v17  ;;  %v5864_v7 = vsel %vm1595_vm5, 1.0, %v7486_v13  ;;  %vm1598_vm10 = vcmp.lt.s32.totalorder %v5671_v36, 15  ;;  %v5873_v49 = vsub.s32 %v5663_v42, %v466_v35 }
  0xd7   : > { %5013 = vmatmul.mubr.msk.bf16.gmra.mrb[96].mxu0 %vm593_vm2, %v5327_v14  ;;  %4979 = vmatmul.mubr.msk.bf16.gmra.mrb[96].mxu1 %vm593_vm2, %v5327_v14  ;;  %v469_v14 = vmul.u32 16, %v5141_v21  ;;  %v5835_v21 = vsel %vm921_vm3, 1.0, %v7486_v13  ;;  %7597 = vst [vmem:[#allocation18_spill] sm:$0xff] %v5864_v7  ;;  %v5876_v33 = vsel %vm1597_vm7, 1.0, %v7486_v13  ;;  %v409_v61 = vfloor.f32 %v377_v0 }
  0xd8   : > { %5016 = vmatprep.mubr.msk.bf16.mxu0 %vm593_vm2, %v5339_v18  ;;  %4982 = vmatprep.mubr.msk.bf16.mxu1 %vm593_vm2, %v5339_v18  ;;  %v5815_v18 = vsub.s32 %v5640_v56, %v465_v45  ;;  %v467_v56 = vmul.u32 16, %v5137_v53  ;;  %7595 = vst [vmem:[#allocation16_spill] sm:$0xff] %v5835_v21  ;;  %v5848_v45 = vsel %vm1594_vm4, 1.0, %v7486_v13  ;;  %7599 = vst [vmem:[#allocation20_spill] sm:$0xff] %v5876_v33  ;;  %vm842_vm11 = vcmp.lt.s32.totalorder %v5519_v38, 1 }
  0xd9   : > { %v5828_v46 = vsub.s32 %v5566_v55, %v469_v14  ;;  %v5841_v55 = vadd.s32 224, %v5519_v38  ;;  %7596 = vst [vmem:[#allocation17_spill] sm:$0xff] %v5848_v45  ;;  %v5881_v62 = vsel %vm1600_vm8, 1.0, %v7486_v13  ;;  %v5147_v53 = vcvt.f32.s32 %v5146_v39 }
  0xda   : > { %vm924_vm6 = vcmp.ge.s32.totalorder %v5815_v18, 1  ;;  %7600 = vst [vmem:[#allocation21_spill] sm:$0xff] %v5881_v62  ;;  %v375_v23 = vmul.f32 0.0625, %v343_v3  ;;  %vm1599_vm12 = vcmp.lt.s32.totalorder %v5690_v50, 15  ;;  %v5888_v42 = vsel %vm1598_vm10, 1.0, %v7486_v13 }
  0xdb   : > { %vm928_vm9 = vcmp.ge.s32.totalorder %v5828_v46, 1  ;;  %v316_v14 = vcvt.s32.f32 %v5841_v55  ;;  %7602 = vst [vmem:[#allocation23_spill] sm:$0xff] %v5888_v42  ;;  %vm922_vm13 = vcmp.ge.s32.totalorder %v5855_v51, 1  ;;  %vm1601_vm15 = vcmp.lt.s32.totalorder %v5678_v63, 15 }
  0xdc   : > { %v5884_v36 = vsel %vm928_vm9, 1.0, %v7486_v13  ;;  %vm1604_vm0 = vcmp.lt.s32.totalorder %v5724_v2, 15  ;;  %vm1602_vm1 = vcmp.lt.s32.totalorder %v5711_v19, 15  ;;  %vm925_vm3 = vcmp.ge.s32.totalorder %v5873_v49, 1 }
  0xdd   : > { %7601 = vst [vmem:[#allocation22_spill] sm:$0xff] %v5884_v36  ;;  %vm1603_vm4 = vcmp.lt.s32.totalorder %v5755_v32, 15  ;;  %v5148_v17 = vtrunc.f32 %v409_v61  ;;  %v348_v27 = vadd.f32 0.5, %v316_v14  ;;  %v5904_v31 = vsel %vm1599_vm12, 1.0, %v7486_v13 }
  0xde   : > { %7603 = vst [vmem:[#allocation24_spill] sm:$0xff] %v5904_v31  ;;  %v472_v25 = vmul.u32 16, %v5147_v53  ;;  %v407_v12 = vfloor.f32 %v375_v23  ;;  %v5914_v35 = vsel %vm1601_vm15, 1.0, %v7486_v13  ;;  %v5937_v63 = vsel %vm1602_vm1, 1.0, %v7486_v13 }
  0xdf   : > { %5017 = vmatmul.mubr.msk.bf16.gmra.mrb[100].mxu0 %vm593_vm2, %v5349_v20  ;;  %4983 = vmatmul.mubr.msk.bf16.gmra.mrb[100].mxu1 %vm593_vm2, %v5349_v20  ;;  %v5859_v20 = vsub.s32 %v5580_v1, %v467_v56  ;;  %v5142_v1 = vtrunc.f32 %v406_v29  ;;  %v5907_v56 = vadd.s32 208, %v5519_v38  ;;  %7604 = vst [vmem:[#allocation25_spill] sm:$0xff] %v5914_v35  ;;  %v5922_v29 = vsel %vm925_vm3, 1.0, %v7486_v13  ;;  %7609 = vst [vmem:[#allocation30_spill] sm:$0xff] %v5937_v63 }
  0xe0   : > { %5020 = vmatprep.mubr.msk.bf16.mxu0 %vm593_vm2, %v5355_v22  ;;  %4986 = vmatprep.mubr.msk.bf16.mxu1 %vm593_vm2, %v5355_v22  ;;  %v5870_v22 = vsel %vm924_vm6, 1.0, %v7486_v13  ;;  %7606 = vst [vmem:[#allocation27_spill] sm:$0xff] %v5922_v29  ;;  %v5942_v3 = vsel %vm1603_vm4, 1.0, %v7486_v13  ;;  %v5149_v2 = vcvt.f32.s32 %v5148_v17  ;;  %v380_v23 = vmul.f32 0.0625, %v348_v27 }
  0xe1   : > { %7598 = vst [vmem:[#allocation19_spill] sm:$0xff] %v5870_v22  ;;  %vm926_vm14 = vcmp.ge.s32.totalorder %v5859_v20, 1  ;;  %v5143_v50 = vcvt.f32.s32 %v5142_v1  ;;  %7610 = vst [vmem:[#allocation31_spill] sm:$0xff] %v5942_v3  ;;  %v5945_v1 = vadd.s32 232, %v5519_v38  ;;  %vm1605_vm5 = vcmp.lt.s32.totalorder %v5742_v8, 15 }
  0xe2   : > { %v5927_v0 = vsel %vm926_vm14, 1.0, %v7486_v13  ;;  %v5956_v32 = vsub.s32 %v5714_v52, %v472_v25  ;;  %v314_v29 = vcvt.s32.f32 %v5907_v56  ;;  %vm1608_vm6 = vcmp.lt.s32.totalorder %v5768_v43, 15 }
  0xe3   : > { %7607 = vst [vmem:[#allocation28_spill] sm:$0xff] %v5927_v0  ;;  %v470_v53 = vmul.u32 16, %v5143_v50  ;;  %v5950_v0 = vadd.s32 216, %v5519_v38  ;;  %vm1606_vm7 = vcmp.lt.s32.totalorder %v5783_v60, 15  ;;  %vm1607_vm8 = vcmp.lt.s32.totalorder %v5855_v51, 15 }
  0xe4   : > { %vm931_vm9 = vcmp.ge.s32.totalorder %v5956_v32, 1  ;;  %vm1612_vm14 = vcmp.lt.s32.totalorder %v5771_v48, 15  ;;  %vm1610_vm15 = vcmp.lt.s32.totalorder %v5873_v49, 15  ;;  %vm1559_vm3 = vcmp.lt.s32.totalorder %v5519_v38, 7 }
  0xe5   : > { %7611 = vst [vmem:[#allocation32_spill] sm:$0xff] %v5950_v0 }
  0xe7   : > { %5021 = vmatmul.mubr.msk.bf16.gmra.mrb[104].mxu0 %vm593_vm2, %v5369_v24  ;;  %4987 = vmatmul.mubr.msk.bf16.gmra.mrb[104].mxu1 %vm593_vm2, %v5369_v24  ;;  %v5919_v24 = vsel %vm922_vm13, 1.0, %v7486_v13  ;;  %vm1609_vm13 = vcmp.lt.s32.totalorder %v5815_v18, 15 }
  0xe8   : > { %5024 = vmatprep.mubr.msk.bf16.mxu0 %vm593_vm2, %v5375_v26  ;;  %4990 = vmatprep.mubr.msk.bf16.mxu1 %vm593_vm2, %v5375_v26  ;;  %7605 = vst [vmem:[#allocation26_spill] sm:$0xff] %v5919_v24  ;;  %v5932_v26 = vsel %vm1604_vm0, 1.0, %v7486_v13  ;;  %v5958_v13 = vtrunc.f32 %v407_v12  ;;  %v473_v12 = vmul.u32 16, %v5149_v2  ;;  %vm1611_vm0 = vcmp.lt.s32.totalorder %v5859_v20, 15 }
  0xe9   : > { %7608 = vst [vmem:[#allocation29_spill] sm:$0xff] %v5932_v26 }
  0xea   : > { %v4794_v39 = vpop.f32.mrb[0].mxu0  ;;  %v4810_v61 = vpop.f32.mrb[0].mxu1  ;;  %v6020_v43 = vsub.s32 %v5759_v37, %v473_v12 }
  0xeb   : > { %v5947_v14 = vpop.f32.mrb[1].mxu0  ;;  %v5952_v19 = vpop.f32.mrb[1].mxu1  ;;  %v812_v16 = vrot.slane %v4794_v39, 7  ;;  %v828_v24 = vrot.slane %v4810_v61, 7  ;;  %v412_v61 = vfloor.f32 %v380_v23 }
  0xec   : > { %v4795_v36 = vpop.f32.mrb[2].mxu0  ;;  %v4811_v17 = vpop.f32.mrb[2].mxu1  ;;  %v7496_v22 = vrot.slane %v5947_v14, 7  ;;  %v7500_v21 = vrot.slane %v5952_v19, 7  ;;  %7618 = vst [vmem:[#allocation38_spill] sm:$0xff] %v6020_v43  ;;  %vm932_vm12 = vcmp.ge.s32.totalorder %v6020_v43, 1 }
  0xed   : > { %v813_v50 = vrot.slane %v4795_v36, 7  ;;  %v686_v27 = vpop.f32.mrb[3].mxu0  ;;  %v829_v30 = vrot.slane %v4811_v17, 7  ;;  %v750_v63 = vpop.f32.mrb[3].mxu1  ;;  %v5971_v36 = vsub.s32 %v5734_v9, %v470_v53  ;;  %v317_v9 = vcvt.s32.f32 %v5945_v1  ;;  %v5208_v43 = vld [vmem:[%s5305_s25 + $0x28] sm:$0xff]  }
  0xee   : > { %v811_v3 = vrot.slane %v686_v27, 7  ;;  %v827_v52 = vrot.slane %v750_v63, 7  ;;  %v5145_v27 = vcvt.f32.s32 %v5958_v13 }
  0xef   : > { %5025 = vmatmul.mubr.msk.bf16.gmra.mrb[108].mxu0 %vm593_vm2, %v5389_v28  ;;  %v5968_v25 = vsel %vm842_vm11, %v812_v16, %v813_v50  ;;  %4991 = vmatmul.mubr.msk.bf16.gmra.mrb[108].mxu1 %vm593_vm2, %v5389_v28  ;;  %v7612_v28 = vmov 0.0   ;;  %v6001_v2 = vsel %vm842_vm11, %v828_v24, %v829_v30  ;;  %vm929_vm10 = vcmp.ge.s32.totalorder %v5971_v36, 1 }
  0xf0   : > { %5064 = vmatprep.mubr.msk.bf16.mxu0 %vm593_vm2, %v5314_v11  ;;  %v5979_v39 = vsel %vm842_vm11, %v811_v3, %v812_v16  ;;  %v5985_v63 = vsel %vm842_vm11, %v7496_v22, %v811_v3  ;;  %5030 = vmatprep.mubr.msk.bf16.mxu1 %vm593_vm2, %v5314_v11  ;;  %v5993_v53 = vsel %vm1605_vm5, 1.0, %v7612_v28  ;;  %v5997_v16 = vsel %vm842_vm11, %v827_v52, %v828_v24 }
  0xf1   : > { %7613 = vst [vmem:[#allocation33_spill] sm:$0xff] %v5993_v53  ;;  %7614 = vst [vmem:[#allocation34_spill] sm:$0xff] %v5997_v16  ;;  %v315_v3 = vcvt.s32.f32 %v5950_v0  ;;  %v6007_v11 = vsel %vm1608_vm6, 1.0, %v7612_v28  ;;  %v6015_v8 = vsel %vm842_vm11, %v7500_v21, %v827_v52  ;;  %v346_v53 = vadd.f32 0.5, %v314_v29 }
  0xf2   : > { %7615 = vst [vmem:[#allocation35_spill] sm:$0xff] %v6001_v2  ;;  %v4798_v23 = vpop.f32.mrb[4].mxu0  ;;  %7616 = vst [vmem:[#allocation36_spill] sm:$0xff] %v6007_v11  ;;  %v4814_v24 = vpop.f32.mrb[4].mxu1  ;;  %v5154_v11 = vtrunc.f32 %v412_v61  ;;  %v349_v26 = vadd.f32 0.5, %v317_v9  ;;  %v6074_v60 = vsel %vm929_vm10, 1.0, %v7612_v28 }
  0xf3   : > { %7617 = vst [vmem:[#allocation37_spill] sm:$0xff] %v6015_v8  ;;  %v699_v17 = vpop.f32.mrb[5].mxu0  ;;  %v763_v2 = vpop.f32.mrb[5].mxu1  ;;  %v816_v52 = vrot.slane %v4798_v23, 7  ;;  %v832_v21 = vrot.slane %v4814_v24, 7  ;;  %v347_v12 = vadd.f32 0.5, %v315_v3 }
  0xf4   : > { %v814_v22 = vrot.slane %v699_v17, 7  ;;  %v4799_v16 = vpop.f32.mrb[6].mxu0  ;;  %v830_v8 = vrot.slane %v763_v2, 7  ;;  %v4815_v35 = vpop.f32.mrb[6].mxu1  ;;  %v5155_v2 = vcvt.f32.s32 %v5154_v11  ;;  %7625 = vst [vmem:[#allocation45_spill] sm:$0xff] %v6074_v60  ;;  %v6144_v49 = vsel %vm1609_vm13, 1.0, %v7612_v28 }
  0xf5   : > { %v817_v0 = vrot.slane %v4799_v16, 7  ;;  %v702_v41 = vpop.f32.mrb[7].mxu0  ;;  %v833_v4 = vrot.slane %v4815_v35, 7  ;;  %v766_v37 = vpop.f32.mrb[7].mxu1  ;;  %v5205_v35 = vld [vmem:[%s5305_s25 + $0x10] sm:$0xff]   ;;  %v471_v16 = vmul.u32 16, %v5145_v27 }
  0xf6   : > { %v815_v6 = vrot.slane %v702_v41, 7  ;;  %v6025_v13 = vsel %vm842_vm11, %v813_v50, %v814_v22  ;;  %v831_v17 = vrot.slane %v766_v37, 7  ;;  %v6035_v61 = vsel %vm842_vm11, %v829_v30, %v830_v8  ;;  %7631 = vst [vmem:[#allocation51_spill] sm:$0xff] %v6144_v49 }
  0xf7   : > { %5065 = vmatmul.mubr.msk.bf16.vlgmr.msra.gmra.mrb[112].mxu0 %vm593_vm2, %v5204_v59  ;;  %v6031_v29 = vsel %vm842_vm11, %v816_v52, %v817_v0  ;;  %7619 = vst [vmem:[#allocation39_spill] sm:$0xff] %v6035_v61  ;;  %v6038_v41 = vadd.s32 240, %v5519_v38  ;;  %5031 = vmatmul.mubr.msk.bf16.vlgmr.msra.gmra.mrb[112].mxu1 %vm593_vm2, %v5204_v59  ;;  %v6055_v30 = vsel %vm1606_vm7, 1.0, %v7612_v28  ;;  %v6060_v59 = vsel %vm1607_vm8, 1.0, %v7612_v28 }
  0xf8   : > { %5068 = vmatprep.mubr.msk.bf16.mxu0 %vm593_vm2, %v5205_v35  ;;  %v6045_v50 = vsel %vm842_vm11, %v815_v6, %v816_v52  ;;  %v6049_v9 = vsel %vm842_vm11, %v814_v22, %v815_v6  ;;  %5034 = vmatprep.mubr.msk.bf16.mxu1 %vm593_vm2, %v5205_v35  ;;  %7621 = vst [vmem:[#allocation41_spill] sm:$0xff] %v6055_v30  ;;  %7622 = vst [vmem:[#allocation42_spill] sm:$0xff] %v6060_v59  ;;  %v6069_v6 = vsel %vm931_vm9, 1.0, %v7612_v28 }
  0xf9   : > { %7620 = vst [vmem:[#allocation40_spill] sm:$0xff] %v6038_v41  ;;  %v6064_v3 = vsel %vm842_vm11, %v831_v17, %v832_v21  ;;  %7624 = vst [vmem:[#allocation44_spill] sm:$0xff] %v6069_v6  ;;  %v6078_v51 = vsel %vm842_vm11, %v832_v21, %v833_v4  ;;  %v6083_v23 = vsel %vm842_vm11, %v830_v8, %v831_v17  ;;  %v378_v27 = vmul.f32 0.0625, %v346_v53 }
  0xfa   : > { %7623 = vst [vmem:[#allocation43_spill] sm:$0xff] %v6064_v3  ;;  %v4802_v22 = vpop.f32.mrb[8].mxu0  ;;  %7626 = vst [vmem:[#allocation46_spill] sm:$0xff] %v6078_v51  ;;  %v4818_v11 = vpop.f32.mrb[8].mxu1  ;;  %v381_v52 = vmul.f32 0.0625, %v349_v26  ;;  %v6086_v37 = vmul.f32 0.0625, %v347_v12  ;;  %v6091_v21 = vsub.s32 %v5797_v10, %v471_v16  ;;  %v318_v8 = vcvt.s32.f32 %v6038_v41 }
  0xfb   : > { %7627 = vst [vmem:[#allocation47_spill] sm:$0xff] %v6083_v23  ;;  %v715_v24 = vpop.f32.mrb[9].mxu0  ;;  %v779_v60 = vpop.f32.mrb[9].mxu1  ;;  %v476_v51 = vmul.u32 16, %v5155_v2  ;;  %v820_v17 = vrot.slane %v4802_v22, 7  ;;  %v836_v23 = vrot.slane %v4818_v11, 7  ;;  %v410_v22 = vfloor.f32 %v378_v27 }
  0xfc   : > { %v818_v35 = vrot.slane %v715_v24, 7  ;;  %v6088_v61 = vpop.f32.mrb[10].mxu0  ;;  %v834_v6 = vrot.slane %v779_v60, 7  ;;  %v6095_v26 = vpop.f32.mrb[10].mxu1  ;;  %v5206_v2 = vld [vmem:[%s5305_s25 + $0x18] sm:$0xff]   ;;  %v5207_v11 = vld [vmem:[%s5305_s25 + $0x20] sm:$0xff]   ;;  %v413_v27 = vfloor.f32 %v381_v52 }
  0xfd   : > { %v821_v53 = vrot.slane %v6088_v61, 7  ;;  %v718_v12 = vpop.f32.mrb[11].mxu0  ;;  %v7511_v24 = vrot.slane %v6095_v26, 7  ;;  %v782_v59 = vpop.f32.mrb[11].mxu1  ;;  %v6149_v52 = vsel %vm1612_vm14, 1.0, %v7612_v28  ;;  %v6163_v18 = vsel %vm1610_vm15, 1.0, %v7612_v28 }
  0xfe   : > { %v819_v3 = vrot.slane %v718_v12, 7  ;;  %v6100_v10 = vsel %vm842_vm11, %v817_v0, %v818_v35  ;;  %v835_v16 = vrot.slane %v782_v59, 7  ;;  %v6111_v60 = vsel %vm842_vm11, %v833_v4, %v834_v6  ;;  %7632 = vst [vmem:[#allocation52_spill] sm:$0xff] %v6149_v52  ;;  %7635 = vst [vmem:[#allocation55_spill] sm:$0xff] %v6163_v18 }
  0xff   : > { %5069 = vmatmul.mubr.msk.bf16.gmra.mrb[116].mxu0 %vm593_vm2, %v5206_v2  ;;  %v6107_v61 = vsel %vm842_vm11, %v820_v17, %v821_v53  ;;  %7628 = vst [vmem:[#allocation48_spill] sm:$0xff] %v6111_v60  ;;  %5035 = vmatmul.mubr.msk.bf16.gmra.mrb[116].mxu1 %vm593_vm2, %v5206_v2  ;;  %v6129_v4 = vsel %vm932_vm12, 1.0, %v7612_v28  ;;  %v6132_v12 = vsub.s32 %v5841_v55, %v476_v51  ;;  %vm930_vm1 = vcmp.ge.s32.totalorder %v6091_v21, 1 }
 0x100   : > { %5072 = vmatprep.mubr.msk.bf16.mxu0 %vm593_vm2, %v5207_v11  ;;  %v6118_v0 = vsel %vm842_vm11, %v819_v3, %v820_v17  ;;  %v6122_v59 = vsel %vm842_vm11, %v818_v35, %v819_v3  ;;  %5038 = vmatprep.mubr.msk.bf16.mxu1 %vm593_vm2, %v5207_v11  ;;  %7629 = vst [vmem:[#allocation49_spill] sm:$0xff] %v6129_v4  ;;  %v6139_v3 = vadd.s32 248, %v5519_v38  ;;  %v6166_v48 = vtrunc.f32 %v410_v22 }
 0x101   : > { %v6136_v17 = vsel %vm842_vm11, %v835_v16, %v836_v23  ;;  %v6155_v55 = vsel %vm842_vm11, %v836_v23, %v7511_v24  ;;  %v6159_v51 = vsel %vm842_vm11, %v834_v6, %v835_v16  ;;  %v6169_v23 = vtrunc.f32 %v413_v27 }
 0x102   : > { %7630 = vst [vmem:[#allocation50_spill] sm:$0xff] %v6136_v17  ;;  %v4806_v35 = vpop.f32.mrb[12].mxu0  ;;  %7633 = vst [vmem:[#allocation53_spill] sm:$0xff] %v6155_v55  ;;  %v4822_v2 = vpop.f32.mrb[12].mxu1  ;;  %v411_v6 = vfloor.f32 %v6086_v37  ;;  %v350_v16 = vadd.f32 0.5, %v318_v8  ;;  %vm935_vm4 = vcmp.ge.s32.totalorder %v6132_v12, 1  ;;  %v5151_v20 = vcvt.f32.s32 %v6166_v48 }
 0x103   : > { %7634 = vst [vmem:[#allocation54_spill] sm:$0xff] %v6159_v51  ;;  %v731_v11 = vpop.f32.mrb[13].mxu0  ;;  %v795_v17 = vpop.f32.mrb[13].mxu1  ;;  %v824_v24 = vrot.slane %v4806_v35, 7  ;;  %v840_v51 = vrot.slane %v4822_v2, 7  ;;  %v7636_v8 = vrot.slane %v5952_v19, 7  ;;  %v1039_v2 = vmul.f32 %v5687_v47, %v5979_v39 }
 0x104   : > { %v822_v60 = vrot.slane %v731_v11, 7  ;;  %v4807_v4 = vpop.f32.mrb[14].mxu0  ;;  %v4823_v41 = vpop.f32.mrb[14].mxu1  ;;  %v838_v22 = vrot.slane %v795_v17, 7  ;;  %v5209_v35 = vld [vmem:[%s5305_s25 + $0x30] sm:$0xff]   ;;  %v6204_v19 = vsel %vm1611_vm0, 1.0, %v7612_v28  ;;  %v6242_v39 = vtrunc.f32 %v411_v6 }
 0x105   : > { %v825_v55 = vrot.slane %v4807_v4, 7  ;;  %v734_v18 = vpop.f32.mrb[15].mxu0  ;;  %v841_v11 = vrot.slane %v4823_v41, 7  ;;  %v798_v49 = vpop.f32.mrb[15].mxu1  ;;  %v319_v41 = vcvt.s32.f32 %v6139_v3  ;;  %7638 = vst [vmem:[#allocation56_spill] sm:$0xff] %v6204_v19  ;;  %v6244_v47 = vmul.f32 0.0625, %v350_v16 }
 0x106   : > { %v823_v52 = vrot.slane %v734_v18, 7  ;;  %v6175_v30 = vsel %vm842_vm11, %v821_v53, %v822_v60  ;;  %v839_v27 = vrot.slane %v798_v49, 7  ;;  %v7637_v53 = vrot.slane %v5947_v14, 7 }
 0x107   : > { %5073 = vmatmul.mubr.msk.bf16.gmra.mrb[120].mxu0 %vm593_vm2, %v5208_v43  ;;  %v6181_v37 = vsel %vm842_vm11, %v824_v24, %v825_v55  ;;  %v6187_v4 = vsel %vm842_vm11, %v825_v55, %v7636_v8  ;;  %5039 = vmatmul.mubr.msk.bf16.gmra.mrb[120].mxu1 %vm593_vm2, %v5208_v43  ;;  %v6209_v43 = vsel %vm930_vm1, 1.0, %v7612_v28  ;;  %v5157_v55 = vcvt.f32.s32 %v6169_v23 }
 0x108   : > { %v874_v17 = vsel %vm842_vm11, %v841_v11, %v7637_v53  ;;  %5076 = vmatprep.mubr.msk.bf16.mxu0 %vm593_vm2, %v5209_v35  ;;  %v6199_v49 = vsel %vm842_vm11, %v823_v52, %v824_v24  ;;  %7639 = vst [vmem:[#allocation57_spill] sm:$0xff] %v6209_v43  ;;  %5042 = vmatprep.mubr.msk.bf16.mxu1 %vm593_vm2, %v5209_v35  ;;  %v6219_v24 = vsel %vm935_vm4, 1.0, %v7612_v28  ;;  %vm1613_vm5 = vcmp.lt.s32.totalorder %v5828_v46, 15 }
 0x109   : > { %v6214_v14 = vsel %vm842_vm11, %v822_v60, %v823_v52  ;;  %7640 = vst [vmem:[#allocation58_spill] sm:$0xff] %v6219_v24  ;;  %v6227_v8 = vsel %vm842_vm11, %v839_v27, %v840_v51  ;;  %v7642_v60 = vrot.slane %v6095_v26, 7  ;;  %v6237_v53 = vsel %vm842_vm11, %v840_v51, %v841_v11 }
 0x10a   : > { %v4862_v18 = vpop.f32.mrb[16].mxu0  ;;  %7641 = vst [vmem:[#allocation59_spill] sm:$0xff] %v6227_v8  ;;  %7644 = vst [vmem:[#allocation61_spill] sm:$0xff] %v6237_v53  ;;  %v4828_v48 = vpop.f32.mrb[16].mxu1  ;;  %v1037_v23 = vmul.f32 %v5805_v40, %v874_v17  ;;  %v351_v8 = vadd.f32 0.5, %v319_v41  ;;  %v6251_v51 = vsel %vm842_vm11, %v838_v22, %v839_v27  ;;  %v1038_v16 = vmul.f32 %v5702_v54, %v5985_v63 }
 0x10b   : > { %v6233_v52 = vsel %vm842_vm11, %v7642_v60, %v838_v22  ;;  %v6240_v35 = vpop.f32.mrb[17].mxu0  ;;  %v1333_v24 = vadd.f32 %v4828_v48, %v1039_v2  ;;  %v1106_v26 = vpop.f32.mrb[17].mxu1  ;;  %v1040_v60 = vmul.f32 %v5668_v44, %v5968_v25  ;;  %v1529_v11 = vrot.slane %v4862_v18, 1  ;;  %v5210_v18 = vld [vmem:[%s5305_s25 + $0x38] sm:$0xff]  }
 0x10c   : > { %7643 = vst [vmem:[#allocation60_spill] sm:$0xff] %v6233_v52  ;;  %v4863_v52 = vpop.f32.mrb[18].mxu0  ;;  %v1331_v17 = vadd.f32 %v1106_v26, %v1037_v23  ;;  %v4829_v6 = vpop.f32.mrb[18].mxu1  ;;  %v7526_v2 = vrot.slane %v6240_v35, 1  ;;  %v474_v53 = vmul.u32 16, %v5151_v20  ;;  %vm1616_vm6 = vcmp.lt.s32.totalorder %v5956_v32, 15 }
 0x10d   : > { %v1530_v40 = vrot.slane %v4863_v52, 1  ;;  %v1403_v41 = vpop.f32.mrb[19].mxu0  ;;  %v6256_v25 = vadd.f32 %v4829_v6, %v1040_v60  ;;  %v1109_v48 = vpop.f32.mrb[19].mxu1  ;;  %v477_v52 = vmul.u32 16, %v5157_v55  ;;  %v5211_v26 = vld [vmem:[%s5305_s25 + $0x40] sm:$0xff]   ;;  %v5153_v60 = vcvt.f32.s32 %v6242_v39 }
 0x10e   : > { %v1528_v44 = vrot.slane %v1403_v41, 1  ;;  %v1332_v27 = vadd.f32 %v1109_v48, %v1038_v16  ;;  %v1043_v16 = vmul.f32 %v5717_v57, %v6045_v50  ;;  %v6288_v39 = vsel %vm1616_vm6, 1.0, %v7612_v28 }
 0x10f   : > { %v1588_v22 = vsel %vm1559_vm3, %v1529_v11, %v1530_v40  ;;  %5077 = vmatmul.mubr.msk.bf16.gmra.mrb[124].mxu0 %vm593_vm2, %v5210_v18  ;;  %5043 = vmatmul.mubr.msk.bf16.gmra.mrb[124].mxu1 %vm593_vm2, %v5210_v18  ;;  %7646 = vst [vmem:[#allocation63_spill] sm:$0xff] %v6288_v39  ;;  %v6290_v48 = vmul.f32 0.0625, %v351_v8  ;;  %vm1614_vm7 = vcmp.lt.s32.totalorder %v5971_v36, 15  ;;  %v1044_v8 = vmul.f32 %v5720_v58, %v6031_v29 }
 0x110   : > { %v1724_v63 = vmul.f32 %v5831_v15, %v1588_v22  ;;  %v1589_v23 = vsel %vm1559_vm3, %v1528_v44, %v1529_v11  ;;  %v1590_v20 = vsel %vm1559_vm3, %v7526_v2, %v1528_v44  ;;  %5080 = vmatprep.mubr.msk.bf16.mxu0 %vm593_vm2, %v5211_v26  ;;  %5046 = vmatprep.mubr.msk.bf16.mxu1 %vm593_vm2, %v5211_v26  ;;  %v6280_v11 = vsel %vm1613_vm5, 1.0, %v7612_v28 }
 0x111   : > { %v1722_v6 = vmul.f32 %v5848_v45, %v1590_v20  ;;  %v1723_v55 = vmul.f32 %v5864_v7, %v1589_v23  ;;  %7645 = vst [vmem:[#allocation62_spill] sm:$0xff] %v6280_v11  ;;  %v414_v44 = vfloor.f32 %v6244_v47  ;;  %v1041_v23 = vmul.f32 %v5707_v34, %v6025_v13 }
 0x112   : > { %v4866_v41 = vpop.f32.mrb[20].mxu0  ;;  %v6292_v22 = vadd.f32 %v1724_v63, %v1333_v24  ;;  %v4832_v46 = vpop.f32.mrb[20].mxu1  ;;  %vm1615_vm8 = vcmp.lt.s32.totalorder %v6091_v21, 15  ;;  %v1042_v13 = vmul.f32 %v5731_v5, %v6049_v9  ;;  %v475_v21 = vmul.u32 16, %v5153_v60 }
 0x113   : > { %v6294_v18 = vadd.f32 %v1722_v6, %v1331_v17  ;;  %v1416_v47 = vpop.f32.mrb[21].mxu0  ;;  %v6299_v50 = vadd.f32 %v1723_v55, %v1332_v27  ;;  %v1337_v20 = vadd.f32 %v4832_v46, %v1043_v16  ;;  %v1122_v26 = vpop.f32.mrb[21].mxu1  ;;  %v1533_v24 = vrot.slane %v4866_v41, 1 }
 0x114   : > { %v1531_v32 = vrot.slane %v1416_v47, 1  ;;  %v4867_v2 = vpop.f32.mrb[22].mxu0  ;;  %v1335_v17 = vadd.f32 %v1122_v26, %v1041_v23  ;;  %v4833_v63 = vpop.f32.mrb[22].mxu1  ;;  %v6311_v46 = vsub.s32 %v5907_v56, %v474_v53  ;;  %v5212_v47 = vld [vmem:[%s5305_s25 + $0x48] sm:$0xff]   ;;  %v5213_v53 = vld [vmem:[%s5305_s25 + $0x50] sm:$0xff]   ;;  %v6334_v26 = vsel %vm1615_vm8, 1.0, %v7612_v28 }
 0x115   : > { %v1534_v6 = vrot.slane %v4867_v2, 1  ;;  %v1419_v15 = vpop.f32.mrb[23].mxu0  ;;  %v6308_v55 = vadd.f32 %v4833_v63, %v1044_v8  ;;  %v1125_v16 = vpop.f32.mrb[23].mxu1  ;;  %7648 = vst [vmem:[#allocation65_spill] sm:$0xff] %v6334_v26  ;;  %v7649_v63 = vld [vmem:[#allocation9_spill] sm:$0xff]  ;;  %vm1620_vm14 = vcmp.lt.s32.totalorder %v6132_v12, 15 }
 0x116   : > { %v1587_v27 = vsel %vm1559_vm3, %v1530_v40, %v1531_v32  ;;  %v1532_v29 = vrot.slane %v1419_v15, 1  ;;  %v1336_v23 = vadd.f32 %v1125_v16, %v1042_v13  ;;  %v6321_v40 = vsel %vm1614_vm7, 1.0, %v7612_v28 }
 0x117   : > { %v1725_v41 = vmul.f32 %v5876_v33, %v1587_v27  ;;  %v1584_v2 = vsel %vm1559_vm3, %v1533_v24, %v1534_v6  ;;  %5081 = vmatmul.mubr.msk.bf16.gmra.mrb[128].mxu0 %vm593_vm2, %v5212_v47  ;;  %7647 = vst [vmem:[#allocation64_spill] sm:$0xff] %v6321_v40  ;;  %5047 = vmatmul.mubr.msk.bf16.gmra.mrb[128].mxu1 %vm593_vm2, %v5212_v47  ;;  %vm933_vm9 = vcmp.ge.s32.totalorder %v6311_v46, 1  ;;  %v7650_v47 = vld [vmem:[#allocation8_spill] sm:$0xff]  ;;  %vm1618_vm15 = vcmp.lt.s32.totalorder %v6311_v46, 15 }
 0x118   : > { %v1728_v9 = vmul.f32 %v5881_v62, %v1584_v2  ;;  %v1585_v15 = vsel %vm1559_vm3, %v1532_v29, %v1533_v24  ;;  %v1586_v56 = vsel %vm1559_vm3, %v1531_v32, %v1532_v29  ;;  %5084 = vmatprep.mubr.msk.bf16.mxu0 %vm593_vm2, %v5213_v53  ;;  %5050 = vmatprep.mubr.msk.bf16.mxu1 %vm593_vm2, %v5213_v53  ;;  %v7651_v53 = vld [vmem:[#allocation10_spill] sm:$0xff] }
 0x119   : > { %v1726_v36 = vmul.f32 %v5888_v42, %v1586_v56  ;;  %v1727_v8 = vmul.f32 %v5904_v31, %v1585_v15  ;;  %v6340_v24 = vsub.s32 %v5945_v1, %v477_v52  ;;  %v6343_v32 = vadd.f32 %v1725_v41, %v6256_v25 }
 0x11a   : > { %v1047_v13 = vmul.f32 %v7649_v63, %v6118_v0  ;;  %v4870_v27 = vpop.f32.mrb[24].mxu0  ;;  %v6348_v16 = vadd.f32 %v1728_v9, %v1337_v20  ;;  %v4836_v2 = vpop.f32.mrb[24].mxu1  ;;  %v1045_v15 = vmul.f32 %v7650_v47, %v6100_v10  ;;  %v6354_v52 = vtrunc.f32 %v414_v44  ;;  %v7652_v10 = vld [vmem:[#allocation12_spill] sm:$0xff] }
 0x11b   : > { %v6350_v29 = vadd.f32 %v1726_v36, %v1335_v17  ;;  %v1432_v1 = vpop.f32.mrb[25].mxu0  ;;  %v6356_v25 = vadd.f32 %v1727_v8, %v1336_v23  ;;  %v1138_v56 = vpop.f32.mrb[25].mxu1  ;;  %v1048_v62 = vmul.f32 %v7651_v53, %v6107_v61  ;;  %v415_v20 = vfloor.f32 %v6290_v48 }
 0x11c   : > { %v1341_v41 = vadd.f32 %v4836_v2, %v1047_v13  ;;  %v1535_v0 = vrot.slane %v1432_v1, 1  ;;  %v4871_v60 = vpop.f32.mrb[26].mxu0  ;;  %v1537_v17 = vrot.slane %v4870_v27, 1  ;;  %v1339_v9 = vadd.f32 %v1138_v56, %v1045_v15  ;;  %v4837_v36 = vpop.f32.mrb[26].mxu1  ;;  %v7653_v2 = vld [vmem:[#allocation25_spill] sm:$0xff] }
 0x11d   : > { %v1538_v31 = vrot.slane %v4871_v60, 1  ;;  %v1046_v44 = vmul.f32 %v7652_v10, %v6122_v59  ;;  %v1435_v33 = vpop.f32.mrb[27].mxu0  ;;  %v6365_v8 = vadd.f32 %v4837_v36, %v1048_v62  ;;  %v1141_v13 = vpop.f32.mrb[27].mxu1  ;;  %vm936_vm10 = vcmp.ge.s32.totalorder %v6340_v24, 1  ;;  %v5214_v1 = vld [vmem:[%s5305_s25 + $0x58] sm:$0xff]   ;;  %v7654_v59 = vld [vmem:[#allocation32_spill] sm:$0xff] }
 0x11e   : > { %v1583_v23 = vsel %vm1559_vm3, %v1534_v6, %v1535_v0  ;;  %v1536_v61 = vrot.slane %v1435_v33, 1  ;;  %v6374_v56 = vsub.s32 %v7654_v59, %v475_v21  ;;  %v7655_v60 = vld [vmem:[#allocation29_spill] sm:$0xff]  ;;  %v5215_v36 = vld [vmem:[%s5305_s25 + $0x60] sm:$0xff]   ;;  %vm1621_vm1 = vcmp.lt.s32.totalorder %v6340_v24, 15 }
 0x11f   : > { %v1729_v48 = vmul.f32 %v7653_v2, %v1583_v23  ;;  %v1580_v27 = vsel %vm1559_vm3, %v1537_v17, %v1538_v31  ;;  %v1340_v15 = vadd.f32 %v1141_v13, %v1046_v44  ;;  %5085 = vmatmul.mubr.msk.bf16.gmra.mrb[132].mxu0 %vm593_vm2, %v5214_v1  ;;  %5051 = vmatmul.mubr.msk.bf16.gmra.mrb[132].mxu1 %vm593_vm2, %v5214_v1  ;;  %v6387_v44 = vsel %vm933_vm9, 1.0, %v7612_v28  ;;  %v7656_v21 = vld [vmem:[#allocation30_spill] sm:$0xff]  ;;  %v7657_v13 = vld [vmem:[#allocation31_spill] sm:$0xff] }
 0x120   : > { %v1732_v6 = vmul.f32 %v7655_v60, %v1580_v27  ;;  %v1581_v62 = vsel %vm1559_vm3, %v1536_v61, %v1537_v17  ;;  %v1582_v33 = vsel %vm1559_vm3, %v1535_v0, %v1536_v61  ;;  %5088 = vmatprep.mubr.msk.bf16.mxu0 %vm593_vm2, %v5215_v36  ;;  %5054 = vmatprep.mubr.msk.bf16.mxu1 %vm593_vm2, %v5215_v36  ;;  %v6395_v0 = vsel %vm936_vm10, 1.0, %v7612_v28  ;;  %v7660_v61 = vld [vmem:[#allocation13_spill] sm:$0xff] }
 0x121   : > { %v1730_v23 = vmul.f32 %v7656_v21, %v1582_v33  ;;  %v1731_v27 = vmul.f32 %v7657_v13, %v1581_v62  ;;  %7658 = vst [vmem:[#allocation32_spill] sm:$0xff] %v6395_v0  ;;  %v6398_v17 = vadd.f32 %v1729_v48, %v6308_v55  ;;  %v1051_v1 = vmul.f32 %v7660_v61, %v6199_v49  ;;  %v7663_v13 = vld [vmem:[#allocation16_spill] sm:$0xff]  ;;  %v7666_v61 = vld [vmem:[#allocation26_spill] sm:$0xff] }
 0x122   : > { %v4874_v59 = vpop.f32.mrb[28].mxu0  ;;  %v5159_v60 = vcvt.f32.s32 %v6354_v52  ;;  %v6403_v2 = vtrunc.f32 %v415_v20  ;;  %v6405_v33 = vadd.f32 %v1732_v6, %v1341_v41  ;;  %v4840_v36 = vpop.f32.mrb[28].mxu1  ;;  %v1049_v21 = vmul.f32 %v7663_v13, %v6175_v30  ;;  %v7665_v52 = vld [vmem:[#allocation19_spill] sm:$0xff] }
 0x123   : > { %7659 = vst [vmem:[#allocation66_spill] sm:$0xff] %v6398_v17  ;;  %v6407_v62 = vadd.f32 %v1730_v23, %v1339_v9  ;;  %v1448_v42 = vpop.f32.mrb[29].mxu0  ;;  %v6412_v55 = vadd.s32 8, %v5519_v38  ;;  %v6414_v48 = vadd.f32 %v1731_v27, %v1340_v15  ;;  %v1345_v49 = vadd.f32 %v4840_v36, %v1051_v1  ;;  %v1154_v7 = vpop.f32.mrb[29].mxu1  ;;  %v7667_v1 = vld [vmem:[#allocation38_spill] sm:$0xff]  ;;  %v7668_v36 = vld [vmem:[#allocation33_spill] sm:$0xff] }
 0x124   : > { %7661 = vst [vmem:[#allocation67_spill] sm:$0xff] %v6405_v33  ;;  %v1539_v45 = vrot.slane %v1448_v42, 1  ;;  %v1052_v20 = vmul.f32 %v7665_v52, %v6181_v37  ;;  %v4875_v41 = vpop.f32.mrb[30].mxu0  ;;  %vm934_vm12 = vcmp.ge.s32.totalorder %v6374_v56, 1  ;;  %v1541_v9 = vrot.slane %v4874_v59, 1  ;;  %v4841_v23 = vpop.f32.mrb[30].mxu1 }
 0x125   : > { %7662 = vst [vmem:[#allocation68_spill] sm:$0xff] %v6407_v62  ;;  %7664 = vst [vmem:[#allocation69_spill] sm:$0xff] %v6414_v48  ;;  %v1343_v6 = vadd.f32 %v1154_v7, %v1049_v21  ;;  %v1542_v30 = vrot.slane %v4875_v41, 1  ;;  %v1050_v53 = vmul.f32 %v7666_v61, %v6214_v14  ;;  %v1451_v13 = vpop.f32.mrb[31].mxu0  ;;  %v1157_v27 = vpop.f32.mrb[31].mxu1  ;;  %vm1617_vm13 = vcmp.lt.s32.totalorder %v7667_v1, 15 }
 0x126   : > { %v1579_v15 = vsel %vm1559_vm3, %v1538_v31, %v1539_v45  ;;  %v6423_v42 = vadd.f32 %v4841_v23, %v1052_v20  ;;  %v1540_v37 = vrot.slane %v1451_v13, 1  ;;  %v5216_v59 = vld [vmem:[%s5305_s25 + $0x68] sm:$0xff]   ;;  %v289_v14 = vcvt.s32.f32 %v6412_v55  ;;  %v7669_v41 = vld [vmem:[#allocation36_spill] sm:$0xff]  ;;  %v7671_v23 = vld [vmem:[#allocation41_spill] sm:$0xff] }
 0x127   : > { %v1733_v52 = vmul.f32 %v7668_v36, %v1579_v15  ;;  %v1576_v7 = vsel %vm1559_vm3, %v1541_v9, %v1542_v30  ;;  %v1344_v21 = vadd.f32 %v1157_v27, %v1050_v53  ;;  %5089 = vmatmul.mubr.msk.bf16.gmra.mrb[136].mxu0 %vm593_vm2, %v5216_v59  ;;  %5055 = vmatmul.mubr.msk.bf16.gmra.mrb[136].mxu1 %vm593_vm2, %v5216_v59  ;;  %v5217_v20 = vld [vmem:[%s5305_s25 + $0x70] sm:$0xff]   ;;  %v6443_v53 = vsel %vm934_vm12, 1.0, %v7612_v28  ;;  %v7672_v27 = vld [vmem:[#allocation42_spill] sm:$0xff] }
 0x128   : > { %v1736_v33 = vmul.f32 %v7669_v41, %v1576_v7  ;;  %v1577_v31 = vsel %vm1559_vm3, %v1540_v37, %v1541_v9  ;;  %v1578_v13 = vsel %vm1559_vm3, %v1539_v45, %v1540_v37  ;;  %5092 = vmatprep.mubr.msk.bf16.mxu0 %vm593_vm2, %v5217_v20  ;;  %7670 = vst [vmem:[#allocation38_spill] sm:$0xff] %v6443_v53  ;;  %v478_v9 = vmul.u32 16, %v5159_v60  ;;  %v7674_v45 = vld [vmem:[#allocation34_spill] sm:$0xff] }
 0x129   : > { %v1734_v15 = vmul.f32 %v7671_v23, %v1578_v13  ;;  %v1735_v7 = vmul.f32 %v7672_v27, %v1577_v31  ;;  %5058 = vmatprep.mubr.msk.bf16.mxu1 %vm593_vm2, %v5217_v20  ;;  %v6449_v41 = vadd.f32 %v1733_v52, %v6365_v8  ;;  %v7675_v37 = vld [vmem:[#allocation14_spill] sm:$0xff]  ;;  %v5161_v61 = vcvt.f32.s32 %v6403_v2  ;;  %v7678_v31 = vld [vmem:[#allocation27_spill] sm:$0xff] }
 0x12a   : > { %v1055_v59 = vmul.f32 %v7675_v37, %v7674_v45  ;;  %v4878_v36 = vpop.f32.mrb[32].mxu0  ;;  %v6455_v63 = vadd.f32 %v1736_v33, %v1345_v49  ;;  %v4844_v13 = vpop.f32.mrb[32].mxu1  ;;  %v1053_v20 = vmul.f32 %v7678_v31, %v6187_v4  ;;  %v321_v27 = vadd.f32 0.5, %v289_v14  ;;  %v7679_v37 = vld [vmem:[#allocation35_spill] sm:$0xff]  ;;  %v7682_v14 = vld [vmem:[#allocation37_spill] sm:$0xff]  ;;  %v7686_v31 = vld [vmem:[#allocation52_spill] sm:$0xff] }
 0x12b   : > { %7673 = vst [vmem:[#allocation70_spill] sm:$0xff] %v6449_v41  ;;  %v6457_v17 = vadd.f32 %v1734_v15, %v1343_v6  ;;  %v1464_v60 = vpop.f32.mrb[33].mxu0  ;;  %v6461_v8 = vadd.f32 %v1735_v7, %v1344_v21  ;;  %v1170_v23 = vpop.f32.mrb[33].mxu1  ;;  %v7680_v41 = vld [vmem:[#allocation22_spill] sm:$0xff]  ;;  %v6468_v2 = vsel %vm1617_vm13, 1.0, %v7612_v28  ;;  %v1545_v33 = vrot.slane %v4878_v36, 1 }
 0x12c   : > { %7676 = vst [vmem:[#allocation34_spill] sm:$0xff] %v6455_v63  ;;  %v1349_v52 = vadd.f32 %v4844_v13, %v1055_v59  ;;  %v1543_v45 = vrot.slane %v1464_v60, 1  ;;  %v1056_v62 = vmul.f32 %v7680_v41, %v7679_v37  ;;  %v4879_v48 = vpop.f32.mrb[34].mxu0  ;;  %7681 = vst [vmem:[#allocation35_spill] sm:$0xff] %v6468_v2  ;;  %v1347_v49 = vadd.f32 %v1170_v23, %v1053_v20  ;;  %v4845_v4 = vpop.f32.mrb[34].mxu1  ;;  %v7683_v21 = vld [vmem:[#allocation28_spill] sm:$0xff] }
 0x12d   : > { %7677 = vst [vmem:[#allocation71_spill] sm:$0xff] %v6457_v17  ;;  %v1546_v6 = vrot.slane %v4879_v48, 1  ;;  %v1054_v15 = vmul.f32 %v7683_v21, %v7682_v14  ;;  %v1467_v7 = vpop.f32.mrb[35].mxu0  ;;  %v1173_v37 = vpop.f32.mrb[35].mxu1  ;;  %v6477_v1 = vsel %vm1620_vm14, 1.0, %v7612_v28  ;;  %v7685_v41 = vld [vmem:[#allocation51_spill] sm:$0xff] }
 0x12e   : > { %v1575_v59 = vsel %vm1559_vm3, %v1542_v30, %v1543_v45  ;;  %v1350_v13 = vadd.f32 %v4845_v4, %v1056_v62  ;;  %v1544_v60 = vrot.slane %v1467_v7, 1  ;;  %7684 = vst [vmem:[#allocation37_spill] sm:$0xff] %v6477_v1  ;;  %v5218_v20 = vld [vmem:[%s5305_s25 + $0x78] sm:$0xff]   ;;  %v353_v14 = vmul.f32 0.0625, %v321_v27  ;;  %v7687_v4 = vld [vmem:[#allocation55_spill] sm:$0xff] }
 0x12f   : > { %v1737_v36 = vmul.f32 %v7685_v41, %v1575_v59  ;;  %v1572_v48 = vsel %vm1559_vm3, %v1545_v33, %v1546_v6  ;;  %v1348_v23 = vadd.f32 %v1173_v37, %v1054_v15  ;;  %5093 = vmatmul.mubr.msk.bf16.gmra.mrb[140].mxu0 %vm593_vm2, %v5218_v20  ;;  %5059 = vmatmul.mubr.msk.bf16.gmra.mrb[140].mxu1 %vm593_vm2, %v5218_v20  ;;  %vm1619_vm0 = vcmp.lt.s32.totalorder %v6374_v56, 15  ;;  %v7689_v59 = vld [vmem:[#allocation43_spill] sm:$0xff]  ;;  %v7690_v37 = vld [vmem:[#allocation44_spill] sm:$0xff]  ;;  %v7695_v17 = vld [vmem:[#allocation49_spill] sm:$0xff] }
 0x130   : > { %v1740_v30 = vmul.f32 %v7686_v31, %v1572_v48  ;;  %v1573_v62 = vsel %vm1559_vm3, %v1544_v60, %v1545_v33  ;;  %v1574_v12 = vsel %vm1559_vm3, %v1543_v45, %v1544_v60  ;;  %v1059_v48 = vmul.f32 %v7690_v37, %v7689_v59  ;;  %v7691_v31 = vld [vmem:[#allocation40_spill] sm:$0xff]  ;;  %v7694_v37 = vld [vmem:[#allocation46_spill] sm:$0xff] }
 0x131   : > { %v1738_v7 = vmul.f32 %v7687_v4, %v1574_v12  ;;  %v1739_v15 = vmul.f32 %v6204_v19, %v1573_v62  ;;  %v6495_v27 = vadd.f32 %v1737_v36, %v6423_v42  ;;  %v6500_v41 = vsub.s32 %v7691_v31, %v478_v9  ;;  %v7692_v4 = vld [vmem:[#allocation39_spill] sm:$0xff]  ;;  %v7693_v62 = vld [vmem:[#allocation45_spill] sm:$0xff] }
 0x132   : > { %v4882_v33 = vpop.f32.mrb[36].mxu0  ;;  %v479_v45 = vmul.u32 16, %v5161_v61  ;;  %v6502_v60 = vadd.f32 %v1740_v30, %v1349_v52  ;;  %v4848_v12 = vpop.f32.mrb[36].mxu1  ;;  %v1057_v19 = vmul.f32 %v7693_v62, %v7692_v4  ;;  %v385_v21 = vfloor.f32 %v353_v14 }
 0x133   : > { %7688 = vst [vmem:[#allocation72_spill] sm:$0xff] %v6495_v27  ;;  %v6504_v20 = vadd.f32 %v1738_v7, %v1347_v49  ;;  %v1480_v63 = vpop.f32.mrb[37].mxu0  ;;  %v6508_v42 = vadd.f32 %v1739_v15, %v1348_v23  ;;  %v1353_v36 = vadd.f32 %v4848_v12, %v1059_v48  ;;  %v1186_v27 = vpop.f32.mrb[37].mxu1  ;;  %v1060_v9 = vmul.f32 %v7695_v17, %v7694_v37  ;;  %v7697_v7 = vld [vmem:[#allocation47_spill] sm:$0xff] }
 0x134   : > { %v1547_v59 = vrot.slane %v1480_v63, 1  ;;  %v4883_v31 = vpop.f32.mrb[38].mxu0  ;;  %v6515_v61 = vsel %vm1618_vm15, 1.0, %v7612_v28  ;;  %v1549_v52 = vrot.slane %v4882_v33, 1  ;;  %v1351_v49 = vadd.f32 %v1186_v27, %v1057_v19  ;;  %v4849_v30 = vpop.f32.mrb[38].mxu1 }
 0x135   : > { %7696 = vst [vmem:[#allocation43_spill] sm:$0xff] %v6515_v61  ;;  %v1550_v4 = vrot.slane %v4883_v31, 1  ;;  %v1058_v23 = vmul.f32 %v6209_v43, %v7697_v7  ;;  %v1483_v14 = vpop.f32.mrb[39].mxu0  ;;  %v1354_v15 = vadd.f32 %v4849_v30, %v1060_v9  ;;  %v1189_v48 = vpop.f32.mrb[39].mxu1  ;;  %v511_v12 = vsub.s32 %v6139_v3, %v479_v45  ;;  %v7699_v30 = vld [vmem:[#allocation50_spill] sm:$0xff] }
 0x136   : > { %v1571_v63 = vsel %vm1559_vm3, %v1546_v6, %v1547_v59  ;;  %v1548_v37 = vrot.slane %v1483_v14, 1  ;;  %v5100_v27 = vtrunc.f32 %v385_v21  ;;  %v6533_v9 = vsel %vm1619_vm0, 1.0, %v7612_v28 }
 0x137   : > { %v1741_v46 = vmul.f32 %v6280_v11, %v1571_v63  ;;  %v1568_v33 = vsel %vm1559_vm3, %v1549_v52, %v1550_v4  ;;  %v1352_v19 = vadd.f32 %v1189_v48, %v1058_v23  ;;  %7698 = vst [vmem:[#allocation40_spill] sm:$0xff] %v6533_v9  ;;  %vm937_vm2 = vcmp.ge.s32.totalorder %v6500_v41, 1  ;;  %v7700_v23 = vld [vmem:[#allocation58_spill] sm:$0xff]  ;;  %v7701_v48 = vld [vmem:[#allocation48_spill] sm:$0xff] }
 0x138   : > { %v1744_v31 = vmul.f32 %v6288_v39, %v1568_v33  ;;  %v1569_v7 = vsel %vm1559_vm3, %v1548_v37, %v1549_v52  ;;  %v1570_v6 = vsel %vm1559_vm3, %v1547_v59, %v1548_v37  ;;  %v1063_v14 = vmul.f32 %v7700_v23, %v7699_v30  ;;  %v7702_v30 = vld [vmem:[#allocation53_spill] sm:$0xff] }
 0x139   : > { %v1742_v3 = vmul.f32 %v6321_v40, %v1570_v6  ;;  %v1743_v45 = vmul.f32 %v6334_v26, %v1569_v7  ;;  %v6538_v21 = vadd.f32 %v1741_v46, %v1350_v13  ;;  %vm938_vm4 = vcmp.ge.s32.totalorder %v511_v12, 1  ;;  %v7703_v40 = vld [vmem:[#allocation54_spill] sm:$0xff] }
 0x13a   : > { %v4886_v52 = vpop.f32.mrb[40].mxu0  ;;  %v6543_v59 = vadd.f32 %v1744_v31, %v1353_v36  ;;  %v4852_v63 = vpop.f32.mrb[40].mxu1  ;;  %v1061_v37 = vmul.f32 %v6387_v44, %v7701_v48  ;;  %v5101_v7 = vcvt.f32.s32 %v5100_v27  ;;  %v1064_v26 = vmul.f32 %v6395_v0, %v7702_v30 }
 0x13b   : > { %v6545_v56 = vadd.f32 %v1742_v3, %v1351_v49  ;;  %v1496_v33 = vpop.f32.mrb[41].mxu0  ;;  %v6549_v6 = vadd.f32 %v1743_v45, %v1352_v19  ;;  %v1357_v13 = vadd.f32 %v4852_v63, %v1063_v14  ;;  %v1202_v46 = vpop.f32.mrb[41].mxu1  ;;  %vm1622_vm5 = vcmp.lt.s32.totalorder %v6500_v41, 15  ;;  %v7709_v41 = vld [vmem:[#allocation59_spill] sm:$0xff] }
 0x13c   : > { %v1551_v39 = vrot.slane %v1496_v33, 1  ;;  %v4887_v11 = vpop.f32.mrb[42].mxu0  ;;  %v1553_v36 = vrot.slane %v4886_v52, 1  ;;  %v1355_v49 = vadd.f32 %v1202_v46, %v1061_v37  ;;  %v4853_v31 = vpop.f32.mrb[42].mxu1  ;;  %v1062_v48 = vmul.f32 %v6443_v53, %v7703_v40 }
 0x13d   : > { %v1554_v3 = vrot.slane %v4887_v11, 1  ;;  %v1499_v23 = vpop.f32.mrb[43].mxu0  ;;  %v1358_v27 = vadd.f32 %v4853_v31, %v1064_v26  ;;  %v1205_v45 = vpop.f32.mrb[43].mxu1  ;;  %vm1623_vm6 = vcmp.lt.s32.totalorder %v511_v12, 15  ;;  %v449_v37 = vmul.u32 16, %v5101_v7 }
 0x13e   : > { %v1567_v19 = vsel %vm1559_vm3, %v1550_v4, %v1551_v39  ;;  %v1552_v14 = vrot.slane %v1499_v23, 1  ;;  %v1356_v52 = vadd.f32 %v1205_v45, %v1062_v48  ;;  %v6569_v26 = vsel %vm937_vm2, 1.0, %v7612_v28 }
 0x13f   : > { %v1745_v63 = vmul.f32 %v6468_v2, %v1567_v19  ;;  %v1564_v33 = vsel %vm1559_vm3, %v1553_v36, %v1554_v3  ;;  %7704 = vst [vmem:[#allocation39_spill] sm:$0xff] %v6569_v26  ;;  %v6575_v7 = vsel %vm938_vm4, 1.0, %v7612_v28  ;;  %v6591_v48 = vsel %vm1623_vm6, 1.0, %v7612_v28  ;;  %v7710_v2 = vld [vmem:[#allocation61_spill] sm:$0xff] }
 0x140   : > { %v1748_v11 = vmul.f32 %v6477_v1, %v1564_v33  ;;  %v1565_v40 = vsel %vm1559_vm3, %v1552_v14, %v1553_v36  ;;  %v1566_v46 = vsel %vm1559_vm3, %v1551_v39, %v1552_v14  ;;  %v6582_v39 = vsel %vm1621_vm1, 1.0, %v7612_v28  ;;  %7707 = vst [vmem:[#allocation47_spill] sm:$0xff] %v6591_v48  ;;  %v7708_v14 = vld [vmem:[#allocation60_spill] sm:$0xff] }
 0x141   : > { %v1746_v4 = vmul.f32 %v6515_v61, %v1566_v46  ;;  %v1747_v23 = vmul.f32 %v6533_v9, %v1565_v40  ;;  %v6577_v30 = vadd.f32 %v1745_v63, %v1354_v15  ;;  %7705 = vst [vmem:[#allocation46_spill] sm:$0xff] %v6582_v39  ;;  %v6587_v36 = vsel %vm1622_vm5, 1.0, %v7612_v28 }
 0x142   : > { %v4890_v31 = vpop.f32.mrb[44].mxu0  ;;  %7706 = vst [vmem:[#allocation49_spill] sm:$0xff] %v6587_v36  ;;  %v6593_v19 = vadd.f32 %v1748_v11, %v1357_v13  ;;  %v4856_v15 = vpop.f32.mrb[44].mxu1  ;;  %v1065_v63 = vmul.f32 %v6569_v26, %v7708_v14  ;;  %v6600_v33 = vsub.s32 %v6412_v55, %v449_v37  ;;  %v1035_v46 = vmul.f32 0.0, %v7709_v41 }
 0x143   : > { %v6595_v45 = vadd.f32 %v1746_v4, %v1355_v49  ;;  %v1512_v24 = vpop.f32.mrb[45].mxu0  ;;  %v6602_v40 = vadd.f32 %v1747_v23, %v1356_v52  ;;  %v1297_v1 = vmul.f32 0.0, %v4856_v15  ;;  %v1218_v12 = vpop.f32.mrb[45].mxu1  ;;  %v1036_v13 = vmul.f32 0.0, %v7710_v2 }
 0x144   : > { %v1555_v9 = vrot.slane %v1512_v24, 1  ;;  %v4891_v11 = vpop.f32.mrb[46].mxu0  ;;  %v1557_v49 = vrot.slane %v4890_v31, 1  ;;  %v1359_v4 = vadd.f32 %v1218_v12, %v1065_v63  ;;  %v4857_v61 = vpop.f32.mrb[46].mxu1  ;;  %v1066_v14 = vmul.f32 %v6575_v7, %v6251_v51 }
 0x145   : > { %v1558_v0 = vrot.slane %v4891_v11, 1  ;;  %v1515_v26 = vpop.f32.mrb[47].mxu0  ;;  %v1329_v55 = vadd.f32 %v1297_v1, %v1035_v46  ;;  %v1298_v37 = vmul.f32 0.0, %v4857_v61  ;;  %v1221_v23 = vpop.f32.mrb[47].mxu1  ;;  %v7711_v31 = vrot.slane %v6240_v35, 1 }
 0x146   : > { %v1563_v52 = vsel %vm1559_vm3, %v1554_v3, %v1555_v9  ;;  %v1556_v15 = vrot.slane %v1515_v26, 1  ;;  %v1360_v41 = vadd.f32 %v1221_v23, %v1066_v14  ;;  %vm908_vm7 = vcmp.ge.s32.totalorder %v6600_v33, 1 }
 0x147   : > { %v1749_v24 = vmul.f32 %v6582_v39, %v1563_v52  ;;  %v1560_v2 = vsel %vm1559_vm3, %v1557_v49, %v1558_v0  ;;  %v1591_v63 = vsel %vm1559_vm3, %v1558_v0, %v7711_v31  ;;  %v1330_v51 = vadd.f32 %v1298_v37, %v1036_v13 }
 0x148   : > { %v1720_v12 = vmul.f32 0.0, %v1560_v2  ;;  %v1721_v1 = vmul.f32 0.0, %v1591_v63  ;;  %v1561_v3 = vsel %vm1559_vm3, %v1556_v15, %v1557_v49  ;;  %v1562_v61 = vsel %vm1559_vm3, %v1555_v9, %v1556_v15 }
 0x149   : > { %v1751_v26 = vmul.f32 %v6591_v48, %v1561_v3  ;;  %v6622_v46 = vadd.f32 %v1749_v24, %v1358_v27  ;;  %v1750_v35 = vmul.f32 %v6587_v36, %v1562_v61  ;;  %v7714_v3 = vld [vmem:[#allocation11_spill] sm:$0xff]  ;;  %vm1593_vm10 = vcmp.lt.s32.totalorder %v6600_v33, 15 }
 0x14a   : > { %v6624_v11 = vadd.f32 %v1720_v12, %v1329_v55  ;;  %v4930_v52 = vpop.f32.mrb[48].mxu0  ;;  %v1753_v0 = vadd.f32 %v1721_v1, %v1330_v51  ;;  %v4896_v14 = vpop.f32.mrb[48].mxu1  ;;  %v6638_v51 = vsel %vm908_vm7, 1.0, %v7612_v28 }
 0x14b   : > { %7712 = vst [vmem:[#allocation50_spill] sm:$0xff] %v6622_v46  ;;  %v6627_v13 = vpop.f32.mrb[49].mxu0  ;;  %v6629_v37 = vadd.f32 %v1751_v26, %v1360_v41  ;;  %v6631_v23 = vadd.f32 %v1750_v35, %v1359_v4  ;;  %v1952_v49 = vrot.slane %v4896_v14, 7  ;;  %v6633_v2 = vpop.f32.mrb[49].mxu1 }
 0x14c   : > { %7713 = vst [vmem:[#allocation48_spill] sm:$0xff] %v6627_v13  ;;  %v4931_v9 = vpop.f32.mrb[50].mxu0  ;;  %v7567_v27 = vrot.slane %v6633_v2, 7  ;;  %v4897_v55 = vpop.f32.mrb[50].mxu1 }
 0x14d   : > { %v2184_v15 = vpop.f32.mrb[51].mxu0  ;;  %v1953_v24 = vrot.slane %v4897_v55, 7  ;;  %v1826_v31 = vpop.f32.mrb[51].mxu1 }
 0x14e   : > { %v1951_v63 = vrot.slane %v1826_v31, 7 }
 0x14f   : > { %v2010_v4 = vsel %vm842_vm11, %v1952_v49, %v1953_v24 }
 0x150   : > { %v2081_v41 = vmul.f32 %v5702_v54, %v2010_v4  ;;  %v2011_v12 = vsel %vm842_vm11, %v1951_v63, %v1952_v49  ;;  %v2012_v1 = vsel %vm842_vm11, %v7567_v27, %v1951_v63 }
 0x151   : > { %v2080_v61 = vmul.f32 %v7714_v3, %v2011_v12  ;;  %v2079_v26 = vmul.f32 %v6638_v51, %v2012_v1 }
 0x152   : > { %v4934_v35 = vpop.f32.mrb[52].mxu0  ;;  %v2113_v14 = vadd.f32 %v2081_v41, %v6299_v50  ;;  %v4900_v55 = vpop.f32.mrb[52].mxu1 }
 0x153   : > { %v2197_v31 = vpop.f32.mrb[53].mxu0  ;;  %v2112_v39 = vadd.f32 %v2080_v61, %v6294_v18  ;;  %v2111_v4 = vadd.f32 %v2079_v26, %v1753_v0  ;;  %v1956_v48 = vrot.slane %v4900_v55, 7  ;;  %v1839_v36 = vpop.f32.mrb[53].mxu1  ;;  %v7715_v18 = vld [vmem:[#allocation3_spill] sm:$0xff] }
 0x154   : > { %v4935_v49 = vpop.f32.mrb[54].mxu0  ;;  %v6653_v54 = vadd.f32 %v4931_v9, %v2113_v14  ;;  %v1954_v13 = vrot.slane %v1839_v36, 7  ;;  %v4901_v46 = vpop.f32.mrb[54].mxu1 }
 0x155   : > { %v2200_v63 = vpop.f32.mrb[55].mxu0  ;;  %v6655_v27 = vadd.f32 %v2184_v15, %v2111_v4  ;;  %v1957_v12 = vrot.slane %v4901_v46, 7  ;;  %v1842_v1 = vpop.f32.mrb[55].mxu1  ;;  %v6657_v3 = vadd.f32 %v4930_v52, %v2112_v39  ;;  %v7716_v15 = vld [vmem:[#allocation2_spill] sm:$0xff] }
 0x156   : > { %v2009_v50 = vsel %vm842_vm11, %v1953_v24, %v1954_v13  ;;  %v1955_v41 = vrot.slane %v1842_v1, 7 }
 0x157   : > { %v2082_v0 = vmul.f32 %v7715_v18, %v2009_v50  ;;  %v2006_v61 = vsel %vm842_vm11, %v1956_v48, %v1957_v12 }
 0x158   : > { %v2085_v9 = vmul.f32 %v5731_v5, %v2006_v61  ;;  %v2007_v36 = vsel %vm842_vm11, %v1955_v41, %v1956_v48  ;;  %v2008_v46 = vsel %vm842_vm11, %v1954_v13, %v1955_v41 }
 0x159   : > { %v2114_v39 = vadd.f32 %v2082_v0, %v6292_v22  ;;  %v2084_v52 = vmul.f32 %v5707_v34, %v2007_v36  ;;  %v2083_v24 = vmul.f32 %v7716_v15, %v2008_v46 }
 0x15a   : > { %v4938_v26 = vpop.f32.mrb[56].mxu0  ;;  %v2117_v14 = vadd.f32 %v2085_v9, %v6356_v25  ;;  %v4904_v55 = vpop.f32.mrb[56].mxu1 }
 0x15b   : > { %v2213_v4 = vpop.f32.mrb[57].mxu0  ;;  %v6673_v1 = vadd.f32 %v2197_v31, %v2114_v39  ;;  %v2116_v50 = vadd.f32 %v2084_v52, %v6350_v29  ;;  %v2115_v48 = vadd.f32 %v2083_v24, %v6343_v32  ;;  %v1960_v61 = vrot.slane %v4904_v55, 7  ;;  %v1855_v5 = vpop.f32.mrb[57].mxu1 }
 0x15c   : > { %v4939_v13 = vpop.f32.mrb[58].mxu0  ;;  %v6677_v41 = vadd.f32 %v4935_v49, %v2117_v14  ;;  %v1958_v22 = vrot.slane %v1855_v5, 7  ;;  %v4905_v0 = vpop.f32.mrb[58].mxu1  ;;  %v7718_v14 = vld [vmem:[#allocation69_spill] sm:$0xff] }
 0x15d   : > { %v2216_v36 = vpop.f32.mrb[59].mxu0  ;;  %v6679_v46 = vadd.f32 %v2200_v63, %v2115_v48  ;;  %v1961_v34 = vrot.slane %v4905_v0, 7  ;;  %v1858_v25 = vpop.f32.mrb[59].mxu1  ;;  %v6681_v9 = vadd.f32 %v4934_v35, %v2116_v50  ;;  %v288_v0 = vcvt.s32.f32 %v5519_v38 }
 0x15e   : > { %7717 = vst [vmem:[#allocation53_spill] sm:$0xff] %v6677_v41  ;;  %v2005_v31 = vsel %vm842_vm11, %v1957_v12, %v1958_v22  ;;  %v1959_v29 = vrot.slane %v1858_v25, 7 }
 0x15f   : > { %v2086_v32 = vmul.f32 %v5717_v57, %v2005_v31  ;;  %v2002_v39 = vsel %vm842_vm11, %v1960_v61, %v1961_v34  ;;  %v7720_v31 = vld [vmem:[#allocation68_spill] sm:$0xff] }
 0x160   : > { %v2089_v49 = vmul.f32 %v7652_v10, %v2002_v39  ;;  %v2003_v5 = vsel %vm842_vm11, %v1959_v29, %v1960_v61  ;;  %v2004_v63 = vsel %vm842_vm11, %v1958_v22, %v1959_v29  ;;  %v7721_v39 = vld [vmem:[#allocation66_spill] sm:$0xff] }
 0x161   : > { %v2118_v35 = vadd.f32 %v2086_v32, %v6348_v16  ;;  %v2088_v52 = vmul.f32 %v7650_v47, %v2003_v5  ;;  %v2087_v12 = vmul.f32 %v5720_v58, %v2004_v63 }
 0x162   : > { %v4942_v24 = vpop.f32.mrb[60].mxu0  ;;  %v2121_v55 = vadd.f32 %v2089_v49, %v7718_v14  ;;  %v4908_v50 = vpop.f32.mrb[60].mxu1 }
 0x163   : > { %v2229_v48 = vpop.f32.mrb[61].mxu0  ;;  %v6698_v25 = vadd.f32 %v2213_v4, %v2118_v35  ;;  %v2120_v61 = vadd.f32 %v2088_v52, %v7720_v31  ;;  %v2119_v10 = vadd.f32 %v2087_v12, %v7721_v39  ;;  %v1964_v22 = vrot.slane %v4908_v50, 7  ;;  %v1871_v29 = vpop.f32.mrb[61].mxu1  ;;  %v7725_v12 = vld [vmem:[#allocation9_spill] sm:$0xff]  ;;  %v7728_v39 = vld [vmem:[#allocation16_spill] sm:$0xff] }
 0x164   : > { %v4943_v16 = vpop.f32.mrb[62].mxu0  ;;  %v6702_v32 = vadd.f32 %v4939_v13, %v2121_v55  ;;  %v1962_v5 = vrot.slane %v1871_v29, 7  ;;  %v4909_v63 = vpop.f32.mrb[62].mxu1  ;;  %v320_v52 = vadd.f32 0.5, %v288_v0  ;;  %v7726_v55 = vld [vmem:[#allocation26_spill] sm:$0xff] }
 0x165   : > { %7719 = vst [vmem:[#allocation54_spill] sm:$0xff] %v6698_v25  ;;  %v2232_v47 = vpop.f32.mrb[63].mxu0  ;;  %v6704_v41 = vadd.f32 %v2216_v36, %v2119_v10  ;;  %v1965_v49 = vrot.slane %v4909_v63, 7  ;;  %v1874_v14 = vpop.f32.mrb[63].mxu1  ;;  %v6706_v58 = vadd.f32 %v4938_v26, %v2120_v61  ;;  %v7727_v26 = vld [vmem:[#allocation67_spill] sm:$0xff] }
 0x166   : > { %7722 = vst [vmem:[#allocation60_spill] sm:$0xff] %v6702_v32  ;;  %v2001_v4 = vsel %vm842_vm11, %v1961_v34, %v1962_v5  ;;  %v1963_v35 = vrot.slane %v1874_v14, 7  ;;  %v7729_v34 = vld [vmem:[#allocation10_spill] sm:$0xff] }
 0x167   : > { %7723 = vst [vmem:[#allocation59_spill] sm:$0xff] %v6704_v41  ;;  %7724 = vst [vmem:[#allocation61_spill] sm:$0xff] %v6706_v58  ;;  %v2090_v50 = vmul.f32 %v7725_v12, %v2001_v4  ;;  %v1998_v13 = vsel %vm842_vm11, %v1964_v22, %v1965_v49  ;;  %v352_v12 = vmul.f32 0.0625, %v320_v52 }
 0x168   : > { %v2093_v31 = vmul.f32 %v7726_v55, %v1998_v13  ;;  %v1999_v10 = vsel %vm842_vm11, %v1963_v35, %v1964_v22  ;;  %v2000_v36 = vsel %vm842_vm11, %v1962_v5, %v1963_v35  ;;  %v7730_v13 = vld [vmem:[#allocation71_spill] sm:$0xff]  ;;  %v7731_v22 = vld [vmem:[#allocation70_spill] sm:$0xff] }
 0x169   : > { %v2122_v61 = vadd.f32 %v2090_v50, %v7727_v26  ;;  %v2092_v29 = vmul.f32 %v7728_v39, %v1999_v10  ;;  %v2091_v63 = vmul.f32 %v7729_v34, %v2000_v36 }
 0x16a   : > { %v4946_v0 = vpop.f32.mrb[64].mxu0  ;;  %v2125_v14 = vadd.f32 %v2093_v31, %v6461_v8  ;;  %v4912_v4 = vpop.f32.mrb[64].mxu1 }
 0x16b   : > { %v2245_v32 = vpop.f32.mrb[65].mxu0  ;;  %v6722_v41 = vadd.f32 %v2229_v48, %v2122_v61  ;;  %v2124_v55 = vadd.f32 %v2092_v29, %v7730_v13  ;;  %v2123_v25 = vadd.f32 %v2091_v63, %v7731_v22  ;;  %v1968_v58 = vrot.slane %v4912_v4, 7  ;;  %v1887_v5 = vpop.f32.mrb[65].mxu1  ;;  %v7734_v29 = vld [vmem:[#allocation13_spill] sm:$0xff]  ;;  %v7737_v13 = vld [vmem:[#allocation27_spill] sm:$0xff] }
 0x16c   : > { %v4947_v35 = vpop.f32.mrb[66].mxu0  ;;  %v6726_v50 = vadd.f32 %v4943_v16, %v2125_v14  ;;  %v1966_v10 = vrot.slane %v1887_v5, 7  ;;  %v4913_v26 = vpop.f32.mrb[66].mxu1  ;;  %v384_v61 = vfloor.f32 %v352_v12  ;;  %v7735_v14 = vld [vmem:[#allocation28_spill] sm:$0xff] }
 0x16d   : > { %v2248_v36 = vpop.f32.mrb[67].mxu0  ;;  %v6728_v39 = vadd.f32 %v2232_v47, %v2123_v25  ;;  %v1969_v8 = vrot.slane %v4913_v26, 7  ;;  %v1890_v31 = vpop.f32.mrb[67].mxu1  ;;  %v6730_v34 = vadd.f32 %v4942_v24, %v2124_v55  ;;  %v7736_v24 = vld [vmem:[#allocation34_spill] sm:$0xff] }
 0x16e   : > { %7732 = vst [vmem:[#allocation3_spill] sm:$0xff] %v6726_v50  ;;  %v1997_v48 = vsel %vm842_vm11, %v1965_v49, %v1966_v10  ;;  %v1967_v52 = vrot.slane %v1890_v31, 7  ;;  %v7738_v49 = vld [vmem:[#allocation19_spill] sm:$0xff]  ;;  %v5098_v50 = vtrunc.f32 %v384_v61 }
 0x16f   : > { %7733 = vst [vmem:[#allocation2_spill] sm:$0xff] %v6728_v39  ;;  %v2094_v63 = vmul.f32 %v7734_v29, %v1997_v48  ;;  %v1994_v16 = vsel %vm842_vm11, %v1968_v58, %v1969_v8 }
 0x170   : > { %v2097_v4 = vmul.f32 %v7735_v14, %v1994_v16  ;;  %v1995_v47 = vsel %vm842_vm11, %v1967_v52, %v1968_v58  ;;  %v1996_v25 = vsel %vm842_vm11, %v1966_v10, %v1967_v52  ;;  %v7739_v58 = vld [vmem:[#allocation72_spill] sm:$0xff]  ;;  %v5099_v61 = vcvt.f32.s32 %v5098_v50 }
 0x171   : > { %v2126_v55 = vadd.f32 %v2094_v63, %v7736_v24  ;;  %v2096_v22 = vmul.f32 %v7737_v13, %v1995_v47  ;;  %v2095_v5 = vmul.f32 %v7738_v49, %v1996_v25 }
 0x172   : > { %v4950_v12 = vpop.f32.mrb[68].mxu0  ;;  %v2129_v26 = vadd.f32 %v2097_v4, %v6508_v42  ;;  %v4916_v31 = vpop.f32.mrb[68].mxu1 }
 0x173   : > { %v2261_v48 = vpop.f32.mrb[69].mxu0  ;;  %v6746_v29 = vadd.f32 %v2245_v32, %v2126_v55  ;;  %v2128_v16 = vadd.f32 %v2096_v22, %v6504_v20  ;;  %v2127_v14 = vadd.f32 %v2095_v5, %v7739_v58  ;;  %v1972_v39 = vrot.slane %v4916_v31, 7  ;;  %v1903_v10 = vpop.f32.mrb[69].mxu1  ;;  %v7740_v55 = vld [vmem:[#allocation14_spill] sm:$0xff] }
 0x174   : > { %v4951_v52 = vpop.f32.mrb[70].mxu0  ;;  %v6750_v63 = vadd.f32 %v4947_v35, %v2129_v26  ;;  %v1970_v47 = vrot.slane %v1903_v10, 7  ;;  %v4917_v24 = vpop.f32.mrb[70].mxu1 }
 0x175   : > { %v2264_v25 = vpop.f32.mrb[71].mxu0  ;;  %v6752_v13 = vadd.f32 %v2248_v36, %v2127_v14  ;;  %v1973_v42 = vrot.slane %v4917_v24, 7  ;;  %v1906_v4 = vpop.f32.mrb[71].mxu1  ;;  %v6754_v49 = vadd.f32 %v4946_v0, %v2128_v16  ;;  %v448_v24 = vmul.u32 16, %v5099_v61  ;;  %v7742_v61 = vld [vmem:[#allocation44_spill] sm:$0xff] }
 0x176   : > { %v1993_v32 = vsel %vm842_vm11, %v1969_v8, %v1970_v47  ;;  %v1971_v20 = vrot.slane %v1906_v4, 7  ;;  %v7741_v8 = vld [vmem:[#allocation22_spill] sm:$0xff] }
 0x177   : > { %v2098_v22 = vmul.f32 %v7740_v55, %v1993_v32  ;;  %v1990_v35 = vsel %vm842_vm11, %v1972_v39, %v1973_v42 }
 0x178   : > { %v2101_v5 = vmul.f32 %v6209_v43, %v1990_v35  ;;  %v1991_v36 = vsel %vm842_vm11, %v1971_v20, %v1972_v39  ;;  %v1992_v14 = vsel %vm842_vm11, %v1970_v47, %v1971_v20 }
 0x179   : > { %v2130_v0 = vadd.f32 %v2098_v22, %v6502_v60  ;;  %v2100_v26 = vmul.f32 %v7693_v62, %v1991_v36  ;;  %v2099_v31 = vmul.f32 %v7741_v8, %v1992_v14 }
 0x17a   : > { %v4954_v50 = vpop.f32.mrb[72].mxu0  ;;  %v2133_v16 = vadd.f32 %v2101_v5, %v6549_v6  ;;  %v4920_v58 = vpop.f32.mrb[72].mxu1 }
 0x17b   : > { %v2277_v10 = vpop.f32.mrb[73].mxu0  ;;  %v6770_v4 = vadd.f32 %v2261_v48, %v2130_v0  ;;  %v2132_v32 = vadd.f32 %v2100_v26, %v6545_v56  ;;  %v2131_v39 = vadd.f32 %v2099_v31, %v6538_v21  ;;  %v1976_v35 = vrot.slane %v4920_v58, 7  ;;  %v1919_v47 = vpop.f32.mrb[73].mxu1 }
 0x17c   : > { %v4955_v20 = vpop.f32.mrb[74].mxu0  ;;  %v6774_v60 = vadd.f32 %v4951_v52, %v2133_v16  ;;  %v1974_v22 = vrot.slane %v1919_v47, 7  ;;  %v4921_v36 = vpop.f32.mrb[74].mxu1  ;;  %v480_v21 = vsub.s32 %v5519_v38, %v448_v24 }
 0x17d   : > { %v2280_v14 = vpop.f32.mrb[75].mxu0  ;;  %v6776_v43 = vadd.f32 %v2264_v25, %v2131_v39  ;;  %v1977_v6 = vrot.slane %v4921_v36, 7  ;;  %v1922_v5 = vpop.f32.mrb[75].mxu1  ;;  %v6778_v62 = vadd.f32 %v4950_v12, %v2132_v32 }
 0x17e   : > { %v1989_v48 = vsel %vm842_vm11, %v1973_v42, %v1974_v22  ;;  %v1975_v56 = vrot.slane %v1922_v5, 7  ;;  %vm907_vm8 = vcmp.ge.s32.totalorder %v480_v21, 1  ;;  %vm1592_vm9 = vcmp.lt.s32.totalorder %v480_v21, 15 }
 0x17f   : > { %v2102_v0 = vmul.f32 %v7742_v61, %v1989_v48  ;;  %v1986_v52 = vsel %vm842_vm11, %v1976_v35, %v1977_v6 }
 0x180   : > { %v2105_v26 = vmul.f32 %v6443_v53, %v1986_v52  ;;  %v1987_v25 = vsel %vm842_vm11, %v1975_v56, %v1976_v35  ;;  %v1988_v12 = vsel %vm842_vm11, %v1974_v22, %v1975_v56 }
 0x181   : > { %v2134_v31 = vadd.f32 %v2102_v0, %v6543_v59  ;;  %v2104_v42 = vmul.f32 %v6387_v44, %v1987_v25  ;;  %v2103_v16 = vmul.f32 %v7695_v17, %v1988_v12  ;;  %v4359_v12 = vsel %vm907_vm8, 1.0, %v7612_v28 }
 0x182   : > { %v4958_v58 = vpop.f32.mrb[76].mxu0  ;;  %v2137_v24 = vadd.f32 %v2105_v26, %v6602_v40  ;;  %v4924_v32 = vpop.f32.mrb[76].mxu1 }
 0x183   : > { %v2293_v39 = vpop.f32.mrb[77].mxu0  ;;  %v6795_v47 = vadd.f32 %v2277_v10, %v2134_v31  ;;  %v2136_v36 = vadd.f32 %v2104_v42, %v6595_v45  ;;  %v2135_v35 = vadd.f32 %v2103_v16, %v6577_v30  ;;  %v1980_v5 = vrot.slane %v4924_v32, 7  ;;  %v1935_v22 = vpop.f32.mrb[77].mxu1  ;;  %v7744_v31 = vld [vmem:[#allocation58_spill] sm:$0xff] }
 0x184   : > { %v4959_v48 = vpop.f32.mrb[78].mxu0  ;;  %v6799_v59 = vadd.f32 %v4955_v20, %v2137_v24  ;;  %v1978_v56 = vrot.slane %v1935_v22, 7  ;;  %v4925_v0 = vpop.f32.mrb[78].mxu1  ;;  %v7745_v16 = vrot.slane %v6633_v2, 7 }
 0x185   : > { %v2296_v52 = vpop.f32.mrb[79].mxu0  ;;  %v6801_v25 = vadd.f32 %v2280_v14, %v2135_v35  ;;  %v1981_v40 = vrot.slane %v4925_v0, 7  ;;  %v1938_v26 = vpop.f32.mrb[79].mxu1  ;;  %v6804_v10 = vadd.f32 %v4954_v50, %v2136_v36  ;;  %v7746_v35 = vld [vmem:[#allocation39_spill] sm:$0xff]  ;;  %v7747_v0 = vld [vmem:[#allocation32_spill] sm:$0xff] }
 0x186   : > { %7743 = vst [vmem:[#allocation69_spill] sm:$0xff] %v6799_v59  ;;  %v1985_v45 = vsel %vm842_vm11, %v1977_v6, %v1978_v56  ;;  %v1979_v30 = vrot.slane %v1938_v26, 7 }
 0x187   : > { %v2106_v42 = vmul.f32 %v7744_v31, %v1985_v45  ;;  %v1982_v20 = vsel %vm842_vm11, %v1980_v5, %v1981_v40  ;;  %v2013_v14 = vsel %vm842_vm11, %v1981_v40, %v7745_v16 }
 0x188   : > { %v2109_v24 = vmul.f32 %v6575_v7, %v1982_v20  ;;  %v1983_v50 = vsel %vm842_vm11, %v1979_v30, %v1980_v5  ;;  %v1984_v6 = vsel %vm842_vm11, %v1978_v56, %v1979_v30  ;;  %v2078_v32 = vmul.f32 %v4359_v12, %v2013_v14 }
 0x189   : > { %v2138_v36 = vadd.f32 %v2106_v42, %v6593_v19  ;;  %v2108_v22 = vmul.f32 %v7746_v35, %v1983_v50  ;;  %v2107_v26 = vmul.f32 %v7747_v0, %v1984_v6  ;;  %v6828_v5 = vsel %vm1592_vm9, 1.0, %v7612_v28  ;;  %v7749_v42 = vld [vmem:[#allocation50_spill] sm:$0xff] }
 0x18a   : > { %v4998_v2 = vpop.f32.mrb[80].mxu0  ;;  %v2141_v21 = vadd.f32 %v2109_v24, %v6629_v37  ;;  %v4964_v40 = vpop.f32.mrb[80].mxu1  ;;  %7748 = vst [vmem:[#allocation68_spill] sm:$0xff] %v6828_v5  ;;  %v2110_v56 = vadd.f32 %v2078_v32, %v6624_v11 }
 0x18b   : > { %v2866_v7 = vrot.slane %v4998_v2, 7  ;;  %v6825_v45 = vpop.f32.mrb[81].mxu0  ;;  %v6831_v30 = vadd.f32 %v2293_v39, %v2138_v36  ;;  %v2140_v19 = vadd.f32 %v2108_v22, %v6631_v23  ;;  %v2139_v20 = vadd.f32 %v2107_v26, %v7749_v42  ;;  %v6835_v14 = vpop.f32.mrb[81].mxu1  ;;  %v7750_v36 = vld [vmem:[#allocation48_spill] sm:$0xff] }
 0x18c   : > { %v2508_v16 = vrot.slane %v4964_v40, 1  ;;  %v4999_v50 = vpop.f32.mrb[82].mxu0  ;;  %v6837_v37 = vadd.f32 %v4959_v48, %v2141_v21  ;;  %v7577_v24 = vrot.slane %v6835_v14, 1  ;;  %v7576_v6 = vrot.slane %v6825_v45, 7  ;;  %v4965_v35 = vpop.f32.mrb[82].mxu1 }
 0x18d   : > { %v2867_v2 = vrot.slane %v4999_v50, 7  ;;  %v2740_v53 = vpop.f32.mrb[83].mxu0  ;;  %v6841_v11 = vadd.f32 %v2296_v52, %v2139_v20  ;;  %v2509_v39 = vrot.slane %v4965_v35, 1  ;;  %v2382_v32 = vpop.f32.mrb[83].mxu1  ;;  %v2308_v22 = vadd.f32 %v7750_v36, %v2110_v56  ;;  %v7752_v56 = vld [vmem:[#allocation17_spill] sm:$0xff] }
 0x18e   : > { %v2865_v23 = vrot.slane %v2740_v53, 7  ;;  %v2507_v40 = vrot.slane %v2382_v32, 1  ;;  %v6849_v48 = vsel %vm1593_vm10, 1.0, %v7612_v28  ;;  %v6851_v21 = vadd.f32 %v4958_v58, %v2140_v19 }
 0x18f   : > { %v2924_v26 = vsel %vm842_vm11, %v2866_v7, %v2867_v2  ;;  %7751 = vst [vmem:[#allocation66_spill] sm:$0xff] %v6849_v48  ;;  %v2566_v52 = vsel %vm1559_vm3, %v2508_v16, %v2509_v39 }
 0x190   : > { %v2925_v42 = vsel %vm842_vm11, %v2865_v23, %v2866_v7  ;;  %v2926_v53 = vsel %vm842_vm11, %v7576_v6, %v2865_v23  ;;  %v2636_v20 = vmul.f32 %v7752_v56, %v2566_v52  ;;  %v2567_v33 = vsel %vm1559_vm3, %v2507_v40, %v2508_v16 }
 0x191   : > { %v2568_v28 = vsel %vm1559_vm3, %v7577_v24, %v2507_v40  ;;  %v2635_v19 = vmul.f32 %v6849_v48, %v2567_v33  ;;  %v3056_v32 = vmul.f32 %v4359_v12, %v2925_v42  ;;  %v3057_v23 = vmul.f32 %v6638_v51, %v2924_v26 }
 0x192   : > { %v2634_v58 = vmul.f32 %v6828_v5, %v2568_v28  ;;  %v5002_v7 = vpop.f32.mrb[84].mxu0  ;;  %v4968_v50 = vpop.f32.mrb[84].mxu1  ;;  %v2668_v36 = vadd.f32 %v2636_v20, %v6657_v3  ;;  %v6873_v40 = vmul.f32 0.0, %v2926_v53 }
 0x193   : > { %v2753_v35 = vpop.f32.mrb[85].mxu0  ;;  %v2512_v52 = vrot.slane %v4968_v50, 1  ;;  %v2395_v6 = vpop.f32.mrb[85].mxu1  ;;  %v2667_v0 = vadd.f32 %v2635_v19, %v6655_v27  ;;  %v2870_v28 = vrot.slane %v5002_v7, 7  ;;  %v7755_v50 = vld [vmem:[#allocation15_spill] sm:$0xff] }
 0x194   : > { %v2868_v16 = vrot.slane %v2753_v35, 7  ;;  %v5003_v56 = vpop.f32.mrb[86].mxu0  ;;  %v2666_v59 = vadd.f32 %v2634_v58, %v2308_v22  ;;  %v2510_v24 = vrot.slane %v2395_v6, 1  ;;  %v4969_v33 = vpop.f32.mrb[86].mxu1  ;;  %v7753_v6 = vld [vmem:[#allocation18_spill] sm:$0xff] }
 0x195   : > { %v2871_v48 = vrot.slane %v5003_v56, 7  ;;  %v2756_v5 = vpop.f32.mrb[87].mxu0  ;;  %v2513_v51 = vrot.slane %v4969_v33, 1  ;;  %v2398_v26 = vpop.f32.mrb[87].mxu1  ;;  %v6883_v20 = vadd.f32 %v3057_v23, %v2667_v0 }
 0x196   : > { %v2923_v12 = vsel %vm842_vm11, %v2867_v2, %v2868_v16  ;;  %v2869_v3 = vrot.slane %v2756_v5, 7  ;;  %v6877_v42 = vadd.f32 %v3056_v32, %v2666_v59  ;;  %v2565_v22 = vsel %vm1559_vm3, %v2509_v39, %v2510_v24  ;;  %v7754_v5 = vld [vmem:[#allocation23_spill] sm:$0xff]  ;;  %v7756_v32 = vld [vmem:[#allocation20_spill] sm:$0xff] }
 0x197   : > { %v2920_v27 = vsel %vm842_vm11, %v2870_v28, %v2871_v48  ;;  %v2511_v53 = vrot.slane %v2398_v26, 1  ;;  %v2637_v56 = vmul.f32 %v7753_v6, %v2565_v22  ;;  %v2562_v58 = vsel %vm1559_vm3, %v2512_v52, %v2513_v51  ;;  %v7757_v26 = vld [vmem:[#allocation11_spill] sm:$0xff] }
 0x198   : > { %v2921_v2 = vsel %vm842_vm11, %v2869_v3, %v2870_v28  ;;  %v2922_v59 = vsel %vm842_vm11, %v2868_v16, %v2869_v3  ;;  %v2640_v19 = vmul.f32 %v7754_v5, %v2562_v58  ;;  %v3058_v28 = vmul.f32 %v7757_v26, %v2923_v12 }
 0x199   : > { %v2563_v39 = vsel %vm1559_vm3, %v2511_v53, %v2512_v52  ;;  %v2564_v0 = vsel %vm1559_vm3, %v2510_v24, %v2511_v53  ;;  %v3060_v7 = vmul.f32 %v7715_v18, %v2921_v2  ;;  %v3061_v22 = vmul.f32 %v7716_v15, %v2920_v27  ;;  %v7758_v52 = vld [vmem:[#allocation4_spill] sm:$0xff] }
 0x19a   : > { %v2638_v35 = vmul.f32 %v7755_v50, %v2564_v0  ;;  %v2639_v23 = vmul.f32 %v7756_v32, %v2563_v39  ;;  %v5006_v33 = vpop.f32.mrb[88].mxu0  ;;  %v4972_v16 = vpop.f32.mrb[88].mxu1  ;;  %v2669_v5 = vadd.f32 %v2637_v56, %v6653_v54  ;;  %v3059_v6 = vmul.f32 %v7758_v52, %v2922_v59  ;;  %v7764_v52 = vld [vmem:[#allocation21_spill] sm:$0xff] }
 0x19b   : > { %v2874_v3 = vrot.slane %v5006_v33, 7  ;;  %v2769_v58 = vpop.f32.mrb[89].mxu0  ;;  %v2672_v24 = vadd.f32 %v2640_v19, %v6681_v9  ;;  %v2516_v53 = vrot.slane %v4972_v16, 1  ;;  %v2411_v18 = vpop.f32.mrb[89].mxu1  ;;  %v6906_v32 = vadd.f32 %v3058_v28, %v2668_v36 }
 0x19c   : > { %v2872_v2 = vrot.slane %v2769_v58, 7  ;;  %v5007_v0 = vpop.f32.mrb[90].mxu0  ;;  %v2670_v39 = vadd.f32 %v2638_v35, %v6673_v1  ;;  %v2514_v12 = vrot.slane %v2411_v18, 1  ;;  %v4973_v26 = vpop.f32.mrb[90].mxu1  ;;  %v2671_v33 = vadd.f32 %v2639_v23, %v6679_v46  ;;  %v7762_v46 = vld [vmem:[#allocation24_spill] sm:$0xff]  ;;  %v7763_v23 = vld [vmem:[#allocation30_spill] sm:$0xff] }
 0x19d   : > { %7759 = vst [vmem:[#allocation67_spill] sm:$0xff] %v6906_v32  ;;  %v2875_v15 = vrot.slane %v5007_v0, 7  ;;  %v2772_v27 = vpop.f32.mrb[91].mxu0  ;;  %v6909_v50 = vadd.f32 %v3059_v6, %v2669_v5  ;;  %v2517_v9 = vrot.slane %v4973_v26, 1  ;;  %v2414_v56 = vpop.f32.mrb[91].mxu1  ;;  %v7765_v0 = vld [vmem:[#allocation25_spill] sm:$0xff] }
 0x19e   : > { %v2919_v54 = vsel %vm842_vm11, %v2871_v48, %v2872_v2  ;;  %v2873_v59 = vrot.slane %v2772_v27, 7  ;;  %v6913_v19 = vadd.f32 %v3060_v7, %v2670_v39  ;;  %v2561_v1 = vsel %vm1559_vm3, %v2513_v51, %v2514_v12  ;;  %v7766_v27 = vld [vmem:[#allocation5_spill] sm:$0xff] }
 0x19f   : > { %7760 = vst [vmem:[#allocation71_spill] sm:$0xff] %v6909_v50  ;;  %v2916_v36 = vsel %vm842_vm11, %v2874_v3, %v2875_v15  ;;  %v2515_v35 = vrot.slane %v2414_v56, 1  ;;  %v6919_v28 = vadd.f32 %v3061_v22, %v2671_v33  ;;  %v2641_v6 = vmul.f32 %v7762_v46, %v2561_v1  ;;  %v7767_v33 = vld [vmem:[#allocation6_spill] sm:$0xff]  ;;  %v7770_v50 = vld [vmem:[#allocation61_spill] sm:$0xff] }
 0x1a0   : > { %v2558_v5 = vsel %vm1559_vm3, %v2516_v53, %v2517_v9  ;;  %v2917_v48 = vsel %vm842_vm11, %v2873_v59, %v2874_v3  ;;  %v2918_v7 = vsel %vm842_vm11, %v2872_v2, %v2873_v59  ;;  %v3062_v3 = vmul.f32 %v7766_v27, %v2919_v54 }
 0x1a1   : > { %7761 = vst [vmem:[#allocation70_spill] sm:$0xff] %v6919_v28  ;;  %v2644_v16 = vmul.f32 %v7763_v23, %v2558_v5  ;;  %v2559_v51 = vsel %vm1559_vm3, %v2515_v35, %v2516_v53  ;;  %v2560_v22 = vsel %vm1559_vm3, %v2514_v12, %v2515_v35  ;;  %v3064_v58 = vmul.f32 %v5717_v57, %v2917_v48  ;;  %v7768_v5 = vld [vmem:[#allocation53_spill] sm:$0xff]  ;;  %v7769_v53 = vld [vmem:[#allocation7_spill] sm:$0xff] }
 0x1a2   : > { %v2642_v18 = vmul.f32 %v7764_v52, %v2560_v22  ;;  %v2643_v39 = vmul.f32 %v7765_v0, %v2559_v51  ;;  %v5010_v26 = vpop.f32.mrb[92].mxu0  ;;  %v3065_v56 = vmul.f32 %v7767_v33, %v2916_v36  ;;  %v4976_v2 = vpop.f32.mrb[92].mxu1  ;;  %v2673_v23 = vadd.f32 %v2641_v6, %v7768_v5  ;;  %v7771_v52 = vld [vmem:[#allocation54_spill] sm:$0xff] }
 0x1a3   : > { %v2878_v59 = vrot.slane %v5010_v26, 7  ;;  %v2785_v1 = vpop.f32.mrb[93].mxu0  ;;  %v3063_v46 = vmul.f32 %v7769_v53, %v2918_v7  ;;  %v2676_v12 = vadd.f32 %v2644_v16, %v7770_v50  ;;  %v2520_v35 = vrot.slane %v4976_v2, 1  ;;  %v2427_v57 = vpop.f32.mrb[93].mxu1  ;;  %v7772_v26 = vld [vmem:[#allocation59_spill] sm:$0xff] }
 0x1a4   : > { %v2876_v48 = vrot.slane %v2785_v1, 7  ;;  %v5011_v22 = vpop.f32.mrb[94].mxu0  ;;  %v2674_v51 = vadd.f32 %v2642_v18, %v7771_v52  ;;  %v6942_v0 = vadd.f32 %v3062_v3, %v2672_v24  ;;  %v2518_v54 = vrot.slane %v2427_v57, 1  ;;  %v4977_v27 = vpop.f32.mrb[94].mxu1  ;;  %v7776_v1 = vld [vmem:[#allocation41_spill] sm:$0xff] }
 0x1a5   : > { %v2879_v36 = vrot.slane %v5011_v22, 7  ;;  %v2788_v33 = vpop.f32.mrb[95].mxu0  ;;  %v2675_v28 = vadd.f32 %v2643_v39, %v7772_v26  ;;  %v6945_v32 = vadd.f32 %v3063_v46, %v2673_v23  ;;  %v2521_v50 = vrot.slane %v4977_v27, 1  ;;  %v2430_v7 = vpop.f32.mrb[95].mxu1  ;;  %v7775_v39 = vld [vmem:[#allocation31_spill] sm:$0xff]  ;;  %v7778_v57 = vld [vmem:[#allocation29_spill] sm:$0xff] }
 0x1a6   : > { %v2915_v6 = vsel %vm842_vm11, %v2875_v15, %v2876_v48  ;;  %v2877_v16 = vrot.slane %v2788_v33, 7  ;;  %v6949_v2 = vadd.f32 %v3064_v58, %v2674_v51  ;;  %v2557_v24 = vsel %vm1559_vm3, %v2517_v9, %v2518_v54  ;;  %v7779_v51 = vld [vmem:[#allocation33_spill] sm:$0xff]  ;;  %v7780_v26 = vld [vmem:[#allocation8_spill] sm:$0xff] }
 0x1a7   : > { %7773 = vst [vmem:[#allocation34_spill] sm:$0xff] %v6945_v32  ;;  %v2912_v52 = vsel %vm842_vm11, %v2878_v59, %v2879_v36  ;;  %v2519_v18 = vrot.slane %v2430_v7, 1  ;;  %v6955_v3 = vadd.f32 %v3065_v56, %v2675_v28  ;;  %v2645_v46 = vmul.f32 %v7775_v39, %v2557_v24  ;;  %v7777_v56 = vld [vmem:[#allocation9_spill] sm:$0xff]  ;;  %v7781_v7 = vld [vmem:[#allocation10_spill] sm:$0xff] }
 0x1a8   : > { %v2554_v23 = vsel %vm1559_vm3, %v2520_v35, %v2521_v50  ;;  %v2913_v15 = vsel %vm842_vm11, %v2877_v16, %v2878_v59  ;;  %v2914_v58 = vsel %vm842_vm11, %v2876_v48, %v2877_v16  ;;  %v3066_v59 = vmul.f32 %v7780_v26, %v2915_v6 }
 0x1a9   : > { %7774 = vst [vmem:[#allocation72_spill] sm:$0xff] %v6955_v3  ;;  %v2648_v5 = vmul.f32 %v7776_v1, %v2554_v23  ;;  %v2555_v9 = vsel %vm1559_vm3, %v2519_v18, %v2520_v35  ;;  %v2556_v28 = vsel %vm1559_vm3, %v2518_v54, %v2519_v18  ;;  %v3068_v53 = vmul.f32 %v7777_v56, %v2913_v15  ;;  %v7782_v1 = vld [vmem:[#allocation60_spill] sm:$0xff] }
 0x1aa   : > { %v2646_v22 = vmul.f32 %v7778_v57, %v2556_v28  ;;  %v2647_v27 = vmul.f32 %v7779_v51, %v2555_v9  ;;  %v5014_v33 = vpop.f32.mrb[96].mxu0  ;;  %v3069_v24 = vmul.f32 %v7781_v7, %v2912_v52  ;;  %v4980_v48 = vpop.f32.mrb[96].mxu1  ;;  %v2677_v39 = vadd.f32 %v2645_v46, %v7782_v1  ;;  %v7783_v35 = vld [vmem:[#allocation12_spill] sm:$0xff] }
 0x1ab   : > { %v2882_v16 = vrot.slane %v5014_v33, 7  ;;  %v2801_v23 = vpop.f32.mrb[97].mxu0  ;;  %v3067_v32 = vmul.f32 %v7783_v35, %v2914_v58  ;;  %v2680_v54 = vadd.f32 %v2648_v5, %v6730_v34  ;;  %v2524_v18 = vrot.slane %v4980_v48, 1  ;;  %v2443_v15 = vpop.f32.mrb[97].mxu1  ;;  %v7784_v33 = vld [vmem:[#allocation2_spill] sm:$0xff]  ;;  %v7787_v48 = vld [vmem:[#allocation55_spill] sm:$0xff] }
 0x1ac   : > { %v2880_v56 = vrot.slane %v2801_v23, 7  ;;  %v5015_v28 = vpop.f32.mrb[98].mxu0  ;;  %v2678_v9 = vadd.f32 %v2646_v22, %v6722_v41  ;;  %v6978_v51 = vadd.f32 %v3066_v59, %v2676_v12  ;;  %v2522_v6 = vrot.slane %v2443_v15, 1  ;;  %v4981_v26 = vpop.f32.mrb[98].mxu1  ;;  %v7789_v15 = vld [vmem:[#allocation36_spill] sm:$0xff] }
 0x1ad   : > { %v2883_v52 = vrot.slane %v5015_v28, 7  ;;  %v2804_v7 = vpop.f32.mrb[99].mxu0  ;;  %v2679_v57 = vadd.f32 %v2647_v27, %v7784_v33  ;;  %v6981_v3 = vadd.f32 %v3067_v32, %v2677_v39  ;;  %v2525_v34 = vrot.slane %v4981_v26, 1  ;;  %v2446_v58 = vpop.f32.mrb[99].mxu1  ;;  %v7786_v27 = vld [vmem:[#allocation42_spill] sm:$0xff]  ;;  %v7791_v33 = vld [vmem:[#allocation16_spill] sm:$0xff] }
 0x1ae   : > { %v2911_v46 = vsel %vm842_vm11, %v2879_v36, %v2880_v56  ;;  %v2881_v1 = vrot.slane %v2804_v7, 7  ;;  %v6985_v5 = vadd.f32 %v3068_v53, %v2678_v9  ;;  %v2553_v41 = vsel %vm1559_vm3, %v2521_v50, %v2522_v6  ;;  %v7790_v9 = vld [vmem:[#allocation51_spill] sm:$0xff] }
 0x1af   : > { %7785 = vst [vmem:[#allocation14_spill] sm:$0xff] %v6981_v3  ;;  %v2908_v12 = vsel %vm842_vm11, %v2882_v16, %v2883_v52  ;;  %v2523_v22 = vrot.slane %v2446_v58, 1  ;;  %v6991_v59 = vadd.f32 %v3069_v24, %v2679_v57  ;;  %v2649_v32 = vmul.f32 %v7786_v27, %v2553_v41  ;;  %v7788_v24 = vld [vmem:[#allocation13_spill] sm:$0xff]  ;;  %v7792_v58 = vld [vmem:[#allocation19_spill] sm:$0xff] }
 0x1b0   : > { %v2550_v39 = vsel %vm1559_vm3, %v2524_v18, %v2525_v34  ;;  %v2909_v36 = vsel %vm842_vm11, %v2881_v1, %v2882_v16  ;;  %v2910_v53 = vsel %vm842_vm11, %v2880_v56, %v2881_v1  ;;  %v3070_v16 = vmul.f32 %v7791_v33, %v2911_v46 }
 0x1b1   : > { %v2652_v23 = vmul.f32 %v7787_v48, %v2550_v39  ;;  %v2551_v50 = vsel %vm1559_vm3, %v2523_v22, %v2524_v18  ;;  %v2552_v57 = vsel %vm1559_vm3, %v2522_v6, %v2523_v22  ;;  %v3072_v35 = vmul.f32 %v7788_v24, %v2909_v36  ;;  %v7793_v48 = vld [vmem:[#allocation3_spill] sm:$0xff]  ;;  %v7794_v18 = vld [vmem:[#allocation26_spill] sm:$0xff] }
 0x1b2   : > { %v2650_v28 = vmul.f32 %v7789_v15, %v2552_v57  ;;  %v2651_v26 = vmul.f32 %v7790_v9, %v2551_v50  ;;  %v5018_v7 = vpop.f32.mrb[100].mxu0  ;;  %v3073_v41 = vmul.f32 %v7792_v58, %v2908_v12  ;;  %v4984_v56 = vpop.f32.mrb[100].mxu1  ;;  %v2681_v27 = vadd.f32 %v2649_v32, %v7793_v48 }
 0x1b3   : > { %v2886_v1 = vrot.slane %v5018_v7, 7  ;;  %v2817_v39 = vpop.f32.mrb[101].mxu0  ;;  %v3071_v3 = vmul.f32 %v7794_v18, %v2910_v53  ;;  %v2684_v6 = vadd.f32 %v2652_v23, %v6754_v49  ;;  %v2528_v22 = vrot.slane %v4984_v56, 1  ;;  %v2459_v36 = vpop.f32.mrb[101].mxu1  ;;  %v7797_v18 = vld [vmem:[#allocation52_spill] sm:$0xff] }
 0x1b4   : > { %v2884_v24 = vrot.slane %v2817_v39, 7  ;;  %v5019_v57 = vpop.f32.mrb[102].mxu0  ;;  %v2682_v50 = vadd.f32 %v2650_v28, %v6746_v29  ;;  %v7014_v9 = vadd.f32 %v3070_v16, %v2680_v54  ;;  %v2526_v46 = vrot.slane %v2459_v36, 1  ;;  %v4985_v33 = vpop.f32.mrb[102].mxu1 }
 0x1b5   : > { %v2887_v12 = vrot.slane %v5019_v57, 7  ;;  %v2820_v58 = vpop.f32.mrb[103].mxu0  ;;  %v2683_v7 = vadd.f32 %v2651_v26, %v6752_v13  ;;  %v7017_v15 = vadd.f32 %v3071_v3, %v2681_v27  ;;  %v2529_v49 = vrot.slane %v4985_v33, 1  ;;  %v2462_v53 = vpop.f32.mrb[103].mxu1  ;;  %v7795_v13 = vld [vmem:[#allocation56_spill] sm:$0xff]  ;;  %v7798_v57 = vld [vmem:[#allocation62_spill] sm:$0xff] }
 0x1b6   : > { %v2907_v32 = vsel %vm842_vm11, %v2883_v52, %v2884_v24  ;;  %v2885_v48 = vrot.slane %v2820_v58, 7  ;;  %v7021_v23 = vadd.f32 %v3072_v35, %v2682_v50  ;;  %v2549_v29 = vsel %vm1559_vm3, %v2525_v34, %v2526_v46  ;;  %v7796_v26 = vld [vmem:[#allocation64_spill] sm:$0xff]  ;;  %v7799_v58 = vld [vmem:[#allocation27_spill] sm:$0xff] }
 0x1b7   : > { %v2904_v54 = vsel %vm842_vm11, %v2886_v1, %v2887_v12  ;;  %v2527_v28 = vrot.slane %v2462_v53, 1  ;;  %v7027_v16 = vadd.f32 %v3073_v41, %v2683_v7  ;;  %v2653_v3 = vmul.f32 %v7795_v13, %v2549_v29 }
 0x1b8   : > { %v2546_v27 = vsel %vm1559_vm3, %v2528_v22, %v2529_v49  ;;  %v2905_v52 = vsel %vm842_vm11, %v2885_v48, %v2886_v1  ;;  %v2906_v35 = vsel %vm842_vm11, %v2884_v24, %v2885_v48  ;;  %v3074_v1 = vmul.f32 %v7799_v58, %v2907_v32 }
 0x1b9   : > { %v2656_v56 = vmul.f32 %v7796_v26, %v2546_v27  ;;  %v2547_v34 = vsel %vm1559_vm3, %v2527_v28, %v2528_v22  ;;  %v2548_v41 = vsel %vm1559_vm3, %v2526_v46, %v2527_v28  ;;  %v3076_v39 = vmul.f32 %v7740_v55, %v2905_v52  ;;  %v7800_v22 = vld [vmem:[#allocation28_spill] sm:$0xff] }
 0x1ba   : > { %v2654_v36 = vmul.f32 %v7797_v18, %v2548_v41  ;;  %v2655_v50 = vmul.f32 %v7798_v57, %v2547_v34  ;;  %v5022_v33 = vpop.f32.mrb[104].mxu0  ;;  %v3077_v7 = vmul.f32 %v7741_v8, %v2904_v54  ;;  %v4988_v24 = vpop.f32.mrb[104].mxu1  ;;  %v2685_v29 = vadd.f32 %v2653_v3, %v6750_v63 }
 0x1bb   : > { %v2890_v53 = vrot.slane %v5022_v33, 7  ;;  %v2833_v48 = vpop.f32.mrb[105].mxu0  ;;  %v3075_v27 = vmul.f32 %v7800_v22, %v2906_v35  ;;  %v2688_v46 = vadd.f32 %v2656_v56, %v6778_v62  ;;  %v2532_v28 = vrot.slane %v4988_v24, 1  ;;  %v2475_v55 = vpop.f32.mrb[105].mxu1 }
 0x1bc   : > { %v2888_v52 = vrot.slane %v2833_v48, 7  ;;  %v5023_v41 = vpop.f32.mrb[106].mxu0  ;;  %v2686_v34 = vadd.f32 %v2654_v36, %v6770_v4  ;;  %v7050_v26 = vadd.f32 %v3074_v1, %v2684_v6  ;;  %v2530_v32 = vrot.slane %v2475_v55, 1  ;;  %v4989_v58 = vpop.f32.mrb[106].mxu1  ;;  %v7802_v48 = vld [vmem:[#allocation43_spill] sm:$0xff] }
 0x1bd   : > { %v2891_v8 = vrot.slane %v5023_v41, 7  ;;  %v2836_v54 = vpop.f32.mrb[107].mxu0  ;;  %v2687_v33 = vadd.f32 %v2655_v50, %v6776_v43  ;;  %v7053_v57 = vadd.f32 %v3075_v27, %v2685_v29  ;;  %v2533_v62 = vrot.slane %v4989_v58, 1  ;;  %v2478_v3 = vpop.f32.mrb[107].mxu1  ;;  %v7801_v43 = vld [vmem:[#allocation65_spill] sm:$0xff]  ;;  %v7803_v27 = vld [vmem:[#allocation63_spill] sm:$0xff] }
 0x1be   : > { %v2903_v63 = vsel %vm842_vm11, %v2887_v12, %v2888_v52  ;;  %v2889_v35 = vrot.slane %v2836_v54, 7  ;;  %v7057_v56 = vadd.f32 %v3076_v39, %v2686_v34  ;;  %v2545_v4 = vsel %vm1559_vm3, %v2529_v49, %v2530_v32  ;;  %v7804_v41 = vld [vmem:[#allocation35_spill] sm:$0xff]  ;;  %v7805_v54 = vld [vmem:[#allocation45_spill] sm:$0xff] }
 0x1bf   : > { %v2900_v6 = vsel %vm842_vm11, %v2890_v53, %v2891_v8  ;;  %v2531_v36 = vrot.slane %v2478_v3, 1  ;;  %v7063_v1 = vadd.f32 %v3077_v7, %v2687_v33  ;;  %v2657_v50 = vmul.f32 %v7801_v43, %v2545_v4 }
 0x1c0   : > { %v2542_v24 = vsel %vm1559_vm3, %v2532_v28, %v2533_v62  ;;  %v2901_v12 = vsel %vm842_vm11, %v2889_v35, %v2890_v53  ;;  %v2902_v39 = vsel %vm842_vm11, %v2888_v52, %v2889_v35  ;;  %v3078_v53 = vmul.f32 %v7805_v54, %v2903_v63 }
 0x1c1   : > { %v2660_v29 = vmul.f32 %v7802_v48, %v2542_v24  ;;  %v2543_v49 = vsel %vm1559_vm3, %v2531_v36, %v2532_v28  ;;  %v2544_v7 = vsel %vm1559_vm3, %v2530_v32, %v2531_v36  ;;  %v3080_v22 = vmul.f32 %v7742_v61, %v2901_v12  ;;  %v7806_v28 = vld [vmem:[#allocation57_spill] sm:$0xff] }
 0x1c2   : > { %v2658_v55 = vmul.f32 %v7803_v27, %v2544_v7  ;;  %v2659_v34 = vmul.f32 %v7804_v41, %v2543_v49  ;;  %v5026_v58 = vpop.f32.mrb[108].mxu0  ;;  %v3081_v33 = vmul.f32 %v7695_v17, %v2900_v6  ;;  %v4992_v52 = vpop.f32.mrb[108].mxu1  ;;  %v2689_v4 = vadd.f32 %v2657_v50, %v6774_v60 }
 0x1c3   : > { %v2894_v3 = vrot.slane %v5026_v58, 7  ;;  %v2849_v35 = vpop.f32.mrb[109].mxu0  ;;  %v3079_v24 = vmul.f32 %v7806_v28, %v2902_v39  ;;  %v7085_v32 = vadd.f32 %v2660_v29, %v6804_v10  ;;  %v2536_v61 = vrot.slane %v4992_v52, 1  ;;  %v2491_v36 = vpop.f32.mrb[109].mxu1  ;;  %v7810_v28 = vld [vmem:[#allocation49_spill] sm:$0xff] }
 0x1c4   : > { %v2892_v12 = vrot.slane %v2849_v35, 7  ;;  %v5027_v7 = vpop.f32.mrb[110].mxu0  ;;  %v2690_v49 = vadd.f32 %v2658_v55, %v6795_v47  ;;  %v7088_v48 = vadd.f32 %v3078_v53, %v2688_v46  ;;  %v2534_v63 = vrot.slane %v2491_v36, 1  ;;  %v4993_v17 = vpop.f32.mrb[110].mxu1  ;;  %v7808_v53 = vld [vmem:[#allocation40_spill] sm:$0xff]  ;;  %v7811_v36 = vld [vmem:[#allocation47_spill] sm:$0xff] }
 0x1c5   : > { %v2895_v6 = vrot.slane %v5027_v7, 7  ;;  %v2852_v58 = vpop.f32.mrb[111].mxu0  ;;  %v2691_v54 = vadd.f32 %v2659_v34, %v6801_v25  ;;  %v7091_v60 = vadd.f32 %v3079_v24, %v2689_v4  ;;  %v2537_v50 = vrot.slane %v4993_v17, 1  ;;  %v2494_v39 = vpop.f32.mrb[111].mxu1  ;;  %v7812_v17 = vld [vmem:[#allocation37_spill] sm:$0xff] }
 0x1c6   : > { %v2899_v10 = vsel %vm842_vm11, %v2891_v8, %v2892_v12  ;;  %v2893_v29 = vrot.slane %v2852_v58, 7  ;;  %v7095_v52 = vadd.f32 %v3080_v22, %v2690_v49  ;;  %v2541_v47 = vsel %vm1559_vm3, %v2533_v62, %v2534_v63  ;;  %v7813_v58 = vld [vmem:[#allocation46_spill] sm:$0xff] }
 0x1c7   : > { %v2896_v46 = vsel %vm842_vm11, %v2894_v3, %v2895_v6  ;;  %v7807_v55 = vrot.slane %v6825_v45, 7  ;;  %v2535_v34 = vrot.slane %v2494_v39, 1  ;;  %v2661_v35 = vmul.f32 %v7808_v53, %v2541_v47 }
 0x1c8   : > { %v2538_v8 = vsel %vm1559_vm3, %v2536_v61, %v2537_v50  ;;  %v7809_v22 = vrot.slane %v6835_v14, 1  ;;  %v2897_v14 = vsel %vm842_vm11, %v2893_v29, %v2894_v3 }
 0x1c9   : > { %v2927_v25 = vsel %vm842_vm11, %v2895_v6, %v7807_v55  ;;  %v2664_v24 = vmul.f32 %v7810_v28, %v2538_v8  ;;  %v2539_v45 = vsel %vm1559_vm3, %v2535_v34, %v2536_v61  ;;  %v2540_v49 = vsel %vm1559_vm3, %v2534_v63, %v2535_v34 }
 0x1ca   : > { %v2569_v4 = vsel %vm1559_vm3, %v2537_v50, %v7809_v22  ;;  %v3086_v62 = vmul.f32 0.0, %v2927_v25  ;;  %v2662_v6 = vmul.f32 %v7812_v17, %v2540_v49  ;;  %v2663_v39 = vmul.f32 %v7813_v58, %v2539_v45  ;;  %v5066_v47 = vpop.f32.mrb[112].mxu0  ;;  %v5032_v55 = vpop.f32.mrb[112].mxu1 }
 0x1cb   : > { %v2665_v7 = vmul.f32 %v7811_v36, %v2569_v4  ;;  %v2898_v50 = vsel %vm842_vm11, %v2892_v12, %v2893_v29  ;;  %v3582_v25 = vrot.slane %v5066_v47, 1  ;;  %v2696_v8 = vadd.f32 %v2664_v24, %v6851_v21  ;;  %v7125_v22 = vpop.f32.mrb[113].mxu0  ;;  %v3159_v4 = vpop.f32.mrb[113].mxu1 }
 0x1cc   : > { %v7128_v63 = vadd.f32 %v3081_v33, %v2691_v54  ;;  %v3382_v34 = vadd.f32 %v5032_v55, %v6877_v42  ;;  %v7580_v28 = vrot.slane %v7125_v22, 1  ;;  %v5067_v3 = vpop.f32.mrb[114].mxu0  ;;  %v2694_v36 = vadd.f32 %v2662_v6, %v6831_v30  ;;  %v5033_v49 = vpop.f32.mrb[114].mxu1  ;;  %v7814_v6 = vld [vmem:[#allocation68_spill] sm:$0xff] }
 0x1cd   : > { %v2697_v61 = vadd.f32 %v2665_v7, %v6837_v37  ;;  %v3084_v12 = vmul.f32 %v7744_v31, %v2897_v14  ;;  %v3118_v29 = vadd.f32 %v3086_v62, %v2696_v8  ;;  %v3380_v45 = vmul.f32 0.0, %v3159_v4  ;;  %v3456_v47 = vpop.f32.mrb[115].mxu0  ;;  %v3162_v33 = vpop.f32.mrb[115].mxu1 }
 0x1ce   : > { %v3583_v21 = vrot.slane %v5067_v3, 1  ;;  %v3383_v37 = vadd.f32 %v5033_v49, %v6883_v20  ;;  %v3581_v54 = vrot.slane %v3456_v47, 1  ;;  %v3082_v7 = vmul.f32 %v6387_v44, %v2899_v10  ;;  %v7155_v44 = vld [vmem:[%s7482_s2] ss:$0 sm:$0xff] }
 0x1cf   : > { %v3119_v24 = vadd.f32 %v6873_v40, %v2697_v61  ;;  %v7136_v42 = vadd.f32 %v3084_v12, %v2694_v36  ;;  %v3412_v55 = vadd.f32 %v3380_v45, %v3118_v29  ;;  %v3381_v31 = vmul.f32 0.0, %v3162_v33  ;;  %v7815_v61 = vld [vmem:[#allocation32_spill] sm:$0xff]  ;;  %v7816_v36 = vld [vmem:[#allocation69_spill] sm:$0xff]  ;;  %v7817_v29 = vld [vmem:[#allocation38_spill] sm:$0xff] }
 0x1d0   : > { %v3640_v30 = vsel %vm1559_vm3, %v3582_v25, %v3583_v21  ;;  %v2695_v62 = vadd.f32 %v2663_v39, %v6841_v11  ;;  %v3641_v40 = vsel %vm1559_vm3, %v3581_v54, %v3582_v25  ;;  %v3642_v20 = vsel %vm1559_vm3, %v7580_v28, %v3581_v54 }
 0x1d1   : > { %v3740_v14 = vmul.f32 %v7814_v6, %v3640_v30  ;;  %v7150_v8 = vadd.f32 %v3082_v7, %v7085_v32  ;;  %v3413_v10 = vadd.f32 %v3381_v31, %v3119_v24  ;;  %v3770_v11 = vmul.f32 0.0, %v3642_v20 }
 0x1d2   : > { %v3771_v39 = vmul.f32 0.0, %v3641_v40  ;;  %v3085_v4 = vmul.f32 %v7815_v61, %v2896_v46  ;;  %vm4067_vm11 = vcmask 257024   ;;  %v5070_v25 = vpop.f32.mrb[116].mxu0  ;;  %v2693_v12 = vadd.f32 %v2661_v35, %v7816_v36  ;;  %v5036_v47 = vpop.f32.mrb[116].mxu1  ;;  %v7820_v36 = vld [vmem:[#allocation66_spill] sm:$0xff] }
 0x1d3   : > { %v3772_v3 = vadd.f32 %v3740_v14, %v3382_v34  ;;  %v3083_v45 = vmul.f32 %v7817_v29, %v2898_v50  ;;  %v3802_v49 = vadd.f32 %v3770_v11, %v3412_v55  ;;  %v3586_v33 = vrot.slane %v5070_v25, 1  ;;  %v3469_v54 = vpop.f32.mrb[117].mxu0  ;;  %v3175_v31 = vpop.f32.mrb[117].mxu1  ;;  %v7818_v55 = vld [vmem:[#allocation67_spill] sm:$0xff]  ;;  %v7819_v11 = vld [vmem:[#allocation70_spill] sm:$0xff] }
 0x1d4   : > { %v3803_v32 = vadd.f32 %v3771_v39, %v3413_v10  ;;  %v7160_v7 = vadd.f32 %v3085_v4, %v2695_v62  ;;  %v3386_v30 = vadd.f32 %v5036_v47, %v6913_v19  ;;  %v3584_v46 = vrot.slane %v3469_v54, 1  ;;  %v5071_v34 = vpop.f32.mrb[118].mxu0  ;;  %v5037_v40 = vpop.f32.mrb[118].mxu1  ;;  %v7821_v29 = vld [vmem:[#allocation71_spill] sm:$0xff] }
 0x1d5   : > { %v3811_v24 = vadd.f32 %v7155_v44, %v3772_v3  ;;  %v7164_v6 = vadd.f32 %v3083_v45, %v2693_v12  ;;  %v3841_v35 = vadd.f32 %v7155_v44, %v3802_v49  ;;  %v3384_v14 = vadd.f32 %v3175_v31, %v7818_v55  ;;  %v3472_v62 = vpop.f32.mrb[119].mxu0  ;;  %v3178_v61 = vpop.f32.mrb[119].mxu1  ;;  %v7822_v54 = vld [vmem:[#allocation15_spill] sm:$0xff] }
 0x1d6   : > { %v3842_v50 = vadd.f32 %v7155_v44, %v3803_v32  ;;  %v3587_v20 = vrot.slane %v5071_v34, 1  ;;  %v3639_v19 = vsel %vm1559_vm3, %v3583_v21, %v3584_v46  ;;  %v7172_v39 = vadd.f32 %v5037_v40, %v7819_v11 }
 0x1d7   : > { %vm3843_vm12 = vcmp.ge.f32.partialorder %v3811_v24, 0.0  ;;  %v3875_v10 = vmul.f32 0.1, %v3811_v24  ;;  %vm3873_vm13 = vcmp.ge.f32.partialorder %v3841_v35, 0.0  ;;  %v3905_v4 = vmul.f32 0.1, %v3841_v35 }
 0x1d8   : > { %vm3874_vm14 = vcmp.ge.f32.partialorder %v3842_v50, 0.0  ;;  %v3906_v3 = vmul.f32 0.1, %v3842_v50  ;;  %v3741_v12 = vmul.f32 %v7820_v36, %v3639_v19  ;;  %v3636_v21 = vsel %vm1559_vm3, %v3586_v33, %v3587_v20 }
 0x1d9   : > { %v3907_v25 = vsel %vm3843_vm12, %v3811_v24, %v3875_v10  ;;  %v3385_v45 = vadd.f32 %v3178_v61, %v7821_v29  ;;  %v3937_v32 = vsel %vm3873_vm13, %v3841_v35, %v3905_v4  ;;  %v3744_v31 = vmul.f32 %v7822_v54, %v3636_v21 }
 0x1da   : > { %v4605_v49 = vpack.c.bf16 %v3907_v25, %v3907_v25  ;;  %v3938_v47 = vsel %vm3874_vm14, %v3842_v50, %v3906_v3  ;;  %v4635_v34 = vpack.c.bf16 %v3937_v32, %v3937_v32  ;;  %v3773_v40 = vadd.f32 %v3741_v12, %v3383_v37  ;;  %v5074_v28 = vpop.f32.mrb[120].mxu0  ;;  %v5040_v10 = vpop.f32.mrb[120].mxu1  ;;  %v7824_v25 = vld [vmem:[#allocation18_spill] sm:$0xff] }
 0x1db   : > { %v4636_v55 = vpack.c.bf16 %v3938_v47, %v3938_v47  ;;  %v3585_v11 = vrot.slane %v3472_v62, 1  ;;  %v3776_v24 = vadd.f32 %v3744_v31, %v3386_v30  ;;  %v3590_v19 = vrot.slane %v5074_v28, 1  ;;  %v3485_v36 = vpop.f32.mrb[121].mxu0  ;;  %v3191_v61 = vpop.f32.mrb[121].mxu1  ;;  %v7823_v30 = vld [vmem:[#allocation17_spill] sm:$0xff]  ;;  %v7825_v47 = vld [vmem:[#allocation72_spill] sm:$0xff] }
 0x1dc   : > { %4068 = vst.msk [vmem:[%s7179_s19] sm:$0xf] %vm4067_vm11, %v4605_v49  ;;  %4098 = vst.msk [vmem:[%s7179_s19 + $0x78] sm:$0xf] %vm4067_vm11, %v4635_v34  ;;  %v3812_v35 = vadd.f32 %v7155_v44, %v3773_v40  ;;  %v3390_v62 = vadd.f32 %v5040_v10, %v6949_v2  ;;  %v7198_v4 = vpop.f32.mrb[122].mxu0  ;;  %v3388_v21 = vadd.f32 %v3191_v61, %v6942_v0  ;;  %v5041_v29 = vpop.f32.mrb[122].mxu1 }
 0x1dd   : > { %4099 = vst.msk [vmem:[%s7179_s19 + $0x7c] sm:$0xf] %vm4067_vm11, %v4636_v55  ;;  %v3637_v50 = vsel %vm1559_vm3, %v3585_v11, %v3586_v33  ;;  %v3638_v37 = vsel %vm1559_vm3, %v3584_v46, %v3585_v11  ;;  %v3815_v28 = vadd.f32 %v7155_v44, %v3776_v24  ;;  %v3488_v49 = vpop.f32.mrb[123].mxu0  ;;  %v3588_v32 = vrot.slane %v3485_v36, 1  ;;  %v3194_v2 = vpop.f32.mrb[123].mxu1  ;;  %v7826_v11 = vld [vmem:[#allocation34_spill] sm:$0xff] }
 0x1de   : > { %v3742_v3 = vmul.f32 %v7823_v30, %v3638_v37  ;;  %v3743_v12 = vmul.f32 %v7824_v25, %v3637_v50  ;;  %vm3844_vm15 = vcmp.ge.f32.partialorder %v3812_v35, 0.0  ;;  %v3876_v33 = vmul.f32 0.1, %v3812_v35  ;;  %v7827_v30 = vld [vmem:[#allocation20_spill] sm:$0xff] }
 0x1df   : > { %v7205_v46 = vadd.f32 %v5041_v29, %v7825_v47  ;;  %vm3847_vm0 = vcmp.ge.f32.partialorder %v3815_v28, 0.0  ;;  %v3879_v54 = vmul.f32 0.1, %v3815_v28  ;;  %v3635_v40 = vsel %vm1559_vm3, %v3587_v20, %v3588_v32 }
 0x1e0   : > { %v3774_v31 = vadd.f32 %v3742_v3, %v3384_v14  ;;  %v3775_v34 = vadd.f32 %v3743_v12, %v3385_v45  ;;  %v3908_v55 = vsel %vm3844_vm15, %v3812_v35, %v3876_v33  ;;  %v3591_v0 = vrot.slane %v7198_v4, 1  ;;  %v7828_v12 = vld [vmem:[#allocation21_spill] sm:$0xff] }
 0x1e1   : > { %v3389_v24 = vadd.f32 %v3194_v2, %v7826_v11  ;;  %v4606_v10 = vpack.c.bf16 %v3908_v55, %v3908_v55  ;;  %v3911_v36 = vsel %vm3847_vm0, %v3815_v28, %v3879_v54  ;;  %v3745_v25 = vmul.f32 %v7827_v30, %v3635_v40  ;;  %v7830_v40 = vld [vmem:[#allocation24_spill] sm:$0xff] }
 0x1e2   : > { %v3813_v50 = vadd.f32 %v7155_v44, %v3774_v31  ;;  %v3814_v37 = vadd.f32 %v7155_v44, %v3775_v34  ;;  %v4609_v61 = vpack.c.bf16 %v3911_v36, %v3911_v36  ;;  %v3632_v14 = vsel %vm1559_vm3, %v3590_v19, %v3591_v0  ;;  %v7218_v45 = vpop.f32.mrb[124].mxu0  ;;  %v5044_v47 = vpop.f32.mrb[124].mxu1  ;;  %v7829_v34 = vld [vmem:[#allocation23_spill] sm:$0xff] }
 0x1e3   : > { %v3589_v20 = vrot.slane %v3488_v49, 1  ;;  %4069 = vst.msk [vmem:[%s7179_s19 + $0x4] sm:$0xf] %vm4067_vm11, %v4606_v10  ;;  %v3777_v3 = vadd.f32 %v3745_v25, %v7172_v39  ;;  %v3748_v29 = vmul.f32 %v7828_v12, %v3632_v14  ;;  %v7230_v2 = vpop.f32.mrb[125].mxu0  ;;  %v3207_v39 = vpop.f32.mrb[125].mxu1 }
 0x1e4   : > { %vm3845_vm2 = vcmp.ge.f32.partialorder %v3813_v50, 0.0  ;;  %vm3846_vm1 = vcmp.ge.f32.partialorder %v3814_v37, 0.0  ;;  %v3877_v35 = vmul.f32 0.1, %v3813_v50  ;;  %v3878_v28 = vmul.f32 0.1, %v3814_v37 }
 0x1e5   : > { %4072 = vst.msk [vmem:[%s7179_s19 + $0x10] sm:$0xf] %vm4067_vm11, %v4609_v61  ;;  %v3633_v33 = vsel %vm1559_vm3, %v3589_v20, %v3590_v19  ;;  %v3634_v49 = vsel %vm1559_vm3, %v3588_v32, %v3589_v20  ;;  %v7234_v10 = vpop.f32.mrb[126].mxu0  ;;  %v3816_v19 = vadd.f32 %v7155_v44, %v3777_v3  ;;  %v3780_v30 = vadd.f32 %v3748_v29, %v3390_v62  ;;  %v5045_v32 = vpop.f32.mrb[126].mxu1 }
 0x1e6   : > { %v3909_v54 = vsel %vm3845_vm2, %v3813_v50, %v3877_v35  ;;  %v3910_v31 = vsel %vm3846_vm1, %v3814_v37, %v3878_v28  ;;  %v3746_v55 = vmul.f32 %v7829_v34, %v3634_v49  ;;  %v3747_v11 = vmul.f32 %v7830_v40, %v3633_v33  ;;  %v3504_v25 = vpop.f32.mrb[127].mxu0  ;;  %v3210_v35 = vpop.f32.mrb[127].mxu1 }
 0x1e7   : > { %v4607_v36 = vpack.c.bf16 %v3909_v54, %v3909_v54  ;;  %v4608_v61 = vpack.c.bf16 %v3910_v31, %v3910_v31  ;;  %v3394_v50 = vadd.f32 %v5044_v47, %v6985_v5  ;;  %v3594_v37 = vrot.slane %v7218_v45, 1 }
 0x1e8   : > { %v3778_v14 = vadd.f32 %v3746_v55, %v3388_v21  ;;  %v3779_v20 = vadd.f32 %v3747_v11, %v3389_v24  ;;  %vm3848_vm4 = vcmp.ge.f32.partialorder %v3816_v19, 0.0  ;;  %v3880_v28 = vmul.f32 0.1, %v3816_v19 }
 0x1e9   : > { %4070 = vst.msk [vmem:[%s7179_s19 + $0x8] sm:$0xf] %vm4067_vm11, %v4607_v36  ;;  %4071 = vst.msk [vmem:[%s7179_s19 + $0xc] sm:$0xf] %vm4067_vm11, %v4608_v61  ;;  %v3819_v12 = vadd.f32 %v7155_v44, %v3780_v30  ;;  %v3392_v3 = vadd.f32 %v3207_v39, %v6978_v51  ;;  %v3592_v24 = vrot.slane %v7230_v2, 1  ;;  %v7249_v5 = vadd.f32 %v5045_v32, %v6991_v59  ;;  %v7831_v36 = vld [vmem:[#allocation25_spill] sm:$0xff] }
 0x1ea   : > { %v3817_v62 = vadd.f32 %v7155_v44, %v3778_v14  ;;  %v3818_v21 = vadd.f32 %v7155_v44, %v3779_v20  ;;  %v3912_v45 = vsel %vm3848_vm4, %v3816_v19, %v3880_v28  ;;  %v3595_v33 = vrot.slane %v7234_v10, 1  ;;  %v7252_v49 = vpop.f32.mrb[128].mxu0  ;;  %v5048_v54 = vpop.f32.mrb[128].mxu1  ;;  %v7832_v19 = vld [vmem:[#allocation29_spill] sm:$0xff]  ;;  %v7833_v20 = vld [vmem:[#allocation14_spill] sm:$0xff] }
 0x1eb   : > { %vm3851_vm5 = vcmp.ge.f32.partialorder %v3819_v12, 0.0  ;;  %v3883_v29 = vmul.f32 0.1, %v3819_v12  ;;  %v4610_v47 = vpack.c.bf16 %v3912_v45, %v3912_v45  ;;  %v7254_v31 = vpop.f32.mrb[129].mxu0  ;;  %v3631_v59 = vsel %vm1559_vm3, %v3591_v0, %v3592_v24  ;;  %v3223_v40 = vpop.f32.mrb[129].mxu1 }
 0x1ec   : > { %vm3849_vm6 = vcmp.ge.f32.partialorder %v3817_v62, 0.0  ;;  %vm3850_vm7 = vcmp.ge.f32.partialorder %v3818_v21, 0.0  ;;  %v3881_v51 = vmul.f32 0.1, %v3817_v62  ;;  %v3882_v2 = vmul.f32 0.1, %v3818_v21 }
 0x1ed   : > { %v3915_v34 = vsel %vm3851_vm5, %v3819_v12, %v3883_v29  ;;  %v3628_v55 = vsel %vm1559_vm3, %v3594_v37, %v3595_v33  ;;  %v7262_v11 = vpop.f32.mrb[130].mxu0  ;;  %4073 = vst.msk [vmem:[%s7179_s19 + $0x14] sm:$0xf] %vm4067_vm11, %v4610_v47  ;;  %v3749_v61 = vmul.f32 %v7831_v36, %v3631_v59  ;;  %v5049_v4 = vpop.f32.mrb[130].mxu1  ;;  %v3393_v28 = vadd.f32 %v3210_v35, %v7833_v20 }
 0x1ee   : > { %v4613_v39 = vpack.c.bf16 %v3915_v34, %v3915_v34  ;;  %v3913_v10 = vsel %vm3849_vm6, %v3817_v62, %v3881_v51  ;;  %v3752_v30 = vmul.f32 %v7832_v19, %v3628_v55  ;;  %v7268_v32 = vpop.f32.mrb[131].mxu0  ;;  %v3914_v0 = vsel %vm3850_vm7, %v3818_v21, %v3882_v2  ;;  %v3226_v45 = vpop.f32.mrb[131].mxu1 }
 0x1ef   : > { %v4611_v14 = vpack.c.bf16 %v3913_v10, %v3913_v10  ;;  %v3593_v12 = vrot.slane %v3504_v25, 1  ;;  %v4612_v29 = vpack.c.bf16 %v3914_v0, %v3914_v0  ;;  %v3781_v62 = vadd.f32 %v3749_v61, %v7205_v46 }
 0x1f0   : > { %4076 = vst.msk [vmem:[%s7179_s19 + $0x20] sm:$0xf] %vm4067_vm11, %v4613_v39  ;;  %v3784_v47 = vadd.f32 %v3752_v30, %v3394_v50  ;;  %v3398_v51 = vadd.f32 %v5048_v54, %v7021_v23  ;;  %v3598_v35 = vrot.slane %v7252_v49, 1  ;;  %v3396_v25 = vadd.f32 %v3223_v40, %v7014_v9  ;;  %v7834_v50 = vld [vmem:[#allocation30_spill] sm:$0xff]  ;;  %v7835_v54 = vld [vmem:[#allocation31_spill] sm:$0xff] }
 0x1f1   : > { %4074 = vst.msk [vmem:[%s7179_s19 + $0x18] sm:$0xf] %vm4067_vm11, %v4611_v14  ;;  %v3629_v34 = vsel %vm1559_vm3, %v3593_v12, %v3594_v37  ;;  %v3630_v21 = vsel %vm1559_vm3, %v3592_v24, %v3593_v12  ;;  %4075 = vst.msk [vmem:[%s7179_s19 + $0x1c] sm:$0xf] %vm4067_vm11, %v4612_v29  ;;  %v3820_v2 = vadd.f32 %v7155_v44, %v3781_v62  ;;  %v3596_v55 = vrot.slane %v7254_v31, 1  ;;  %v7837_v14 = vld [vmem:[#allocation36_spill] sm:$0xff] }
 0x1f2   : > { %v3823_v46 = vadd.f32 %v7155_v44, %v3784_v47  ;;  %v3750_v23 = vmul.f32 %v7834_v50, %v3630_v21  ;;  %v3751_v59 = vmul.f32 %v7835_v54, %v3629_v34  ;;  %v7292_v37 = vadd.f32 %v5049_v4, %v7027_v16  ;;  %v7296_v9 = vpop.f32.mrb[132].mxu0  ;;  %v5052_v31 = vpop.f32.mrb[132].mxu1  ;;  %v7836_v4 = vld [vmem:[#allocation33_spill] sm:$0xff] }
 0x1f3   : > { %v3599_v24 = vrot.slane %v7262_v11, 1  ;;  %v3397_v49 = vadd.f32 %v3226_v45, %v7017_v15  ;;  %vm3852_vm8 = vcmp.ge.f32.partialorder %v3820_v2, 0.0  ;;  %v3884_v40 = vmul.f32 0.1, %v3820_v2  ;;  %v7304_v19 = vpop.f32.mrb[133].mxu0  ;;  %v3239_v20 = vpop.f32.mrb[133].mxu1 }
 0x1f4   : > { %vm3855_vm9 = vcmp.ge.f32.partialorder %v3823_v46, 0.0  ;;  %v3887_v39 = vmul.f32 0.1, %v3823_v46  ;;  %v3782_v10 = vadd.f32 %v3750_v23, %v3392_v3  ;;  %v3783_v36 = vadd.f32 %v3751_v59, %v3393_v28  ;;  %v7308_v28 = vpop.f32.mrb[134].mxu0  ;;  %v5053_v62 = vpop.f32.mrb[134].mxu1 }
 0x1f5   : > { %v3627_v61 = vsel %vm1559_vm3, %v3595_v33, %v3596_v55  ;;  %v3624_v16 = vsel %vm1559_vm3, %v3598_v35, %v3599_v24  ;;  %v3916_v15 = vsel %vm3852_vm8, %v3820_v2, %v3884_v40  ;;  %v7312_v47 = vpop.f32.mrb[135].mxu0  ;;  %v3597_v2 = vrot.slane %v7268_v32, 1  ;;  %v3242_v50 = vpop.f32.mrb[135].mxu1 }
 0x1f6   : > { %v3919_v30 = vsel %vm3855_vm9, %v3823_v46, %v3887_v39  ;;  %v3753_v0 = vmul.f32 %v7836_v4, %v3627_v61  ;;  %v3756_v3 = vmul.f32 %v7837_v14, %v3624_v16  ;;  %v4614_v33 = vpack.c.bf16 %v3916_v15, %v3916_v15  ;;  %v7838_v39 = vld [vmem:[#allocation41_spill] sm:$0xff] }
 0x1f7   : > { %v4617_v12 = vpack.c.bf16 %v3919_v30, %v3919_v30  ;;  %v3821_v45 = vadd.f32 %v7155_v44, %v3782_v10  ;;  %v3822_v29 = vadd.f32 %v7155_v44, %v3783_v36  ;;  %v7317_v46 = vadd.f32 %v5052_v31, %v7057_v56  ;;  %v7839_v36 = vld [vmem:[#allocation42_spill] sm:$0xff] }
 0x1f8   : > { %v3785_v34 = vadd.f32 %v3753_v0, %v7249_v5  ;;  %v3788_v21 = vadd.f32 %v3756_v3, %v3398_v51  ;;  %4077 = vst.msk [vmem:[%s7179_s19 + $0x24] sm:$0xf] %vm4067_vm11, %v4614_v33  ;;  %v3625_v5 = vsel %vm1559_vm3, %v3597_v2, %v3598_v35  ;;  %v3626_v56 = vsel %vm1559_vm3, %v3596_v55, %v3597_v2 }
 0x1f9   : > { %4080 = vst.msk [vmem:[%s7179_s19 + $0x30] sm:$0xf] %vm4067_vm11, %v4617_v12  ;;  %vm3853_vm10 = vcmp.ge.f32.partialorder %v3821_v45, 0.0  ;;  %vm3854_vm12 = vcmp.ge.f32.partialorder %v3822_v29, 0.0  ;;  %v3885_v23 = vmul.f32 0.1, %v3821_v45  ;;  %v3754_v10 = vmul.f32 %v7838_v39, %v3626_v56 }
 0x1fa   : > { %v3886_v54 = vmul.f32 0.1, %v3822_v29  ;;  %v3824_v59 = vadd.f32 %v7155_v44, %v3785_v34  ;;  %v3827_v40 = vadd.f32 %v7155_v44, %v3788_v21  ;;  %v3755_v61 = vmul.f32 %v7839_v36, %v3625_v5  ;;  %v7331_v16 = vpop.f32.mrb[136].mxu0  ;;  %v5056_v4 = vpop.f32.mrb[136].mxu1 }
 0x1fb   : > { %v3917_v32 = vsel %vm3853_vm10, %v3821_v45, %v3885_v23  ;;  %v7333_v0 = vpop.f32.mrb[137].mxu0  ;;  %v3786_v55 = vadd.f32 %v3754_v10, %v3396_v25  ;;  %v3255_v3 = vpop.f32.mrb[137].mxu1  ;;  %v3602_v45 = vrot.slane %v7296_v9, 1  ;;  %v3600_v34 = vrot.slane %v7304_v19, 1 }
 0x1fc   : > { %v3918_v51 = vsel %vm3854_vm12, %v3822_v29, %v3886_v54  ;;  %v4615_v31 = vpack.c.bf16 %v3917_v32, %v3917_v32  ;;  %vm3856_vm13 = vcmp.ge.f32.partialorder %v3824_v59, 0.0  ;;  %v3888_v30 = vmul.f32 0.1, %v3824_v59  ;;  %v7335_v33 = vpop.f32.mrb[138].mxu0  ;;  %v5057_v21 = vpop.f32.mrb[138].mxu1 }
 0x1fd   : > { %v4616_v15 = vpack.c.bf16 %v3918_v51, %v3918_v51  ;;  %vm3859_vm14 = vcmp.ge.f32.partialorder %v3827_v40, 0.0  ;;  %v3891_v35 = vmul.f32 0.1, %v3827_v40  ;;  %v3787_v14 = vadd.f32 %v3755_v61, %v3397_v49  ;;  %v7344_v2 = vpop.f32.mrb[139].mxu0  ;;  %v3258_v5 = vpop.f32.mrb[139].mxu1 }
 0x1fe   : > { %4078 = vst.msk [vmem:[%s7179_s19 + $0x28] sm:$0xf] %vm4067_vm11, %v4615_v31  ;;  %v3920_v12 = vsel %vm3856_vm13, %v3824_v59, %v3888_v30  ;;  %v3400_v29 = vadd.f32 %v3239_v20, %v7050_v26  ;;  %v3825_v23 = vadd.f32 %v7155_v44, %v3786_v55  ;;  %v3623_v9 = vsel %vm1559_vm3, %v3599_v24, %v3600_v34  ;;  %v7841_v55 = vld [vmem:[#allocation55_spill] sm:$0xff] }
 0x1ff   : > { %4079 = vst.msk [vmem:[%s7179_s19 + $0x2c] sm:$0xf] %vm4067_vm11, %v4616_v15  ;;  %v4618_v25 = vpack.c.bf16 %v3920_v12, %v3920_v12  ;;  %v3923_v49 = vsel %vm3859_vm14, %v3827_v40, %v3891_v35  ;;  %v3826_v54 = vadd.f32 %v7155_v44, %v3787_v14  ;;  %v3403_v26 = vadd.f32 %v5053_v62, %v7063_v1  ;;  %v7840_v40 = vld [vmem:[#allocation51_spill] sm:$0xff] }
 0x200   : > { %v4621_v56 = vpack.c.bf16 %v3923_v49, %v3923_v49  ;;  %v3603_v19 = vrot.slane %v7308_v28, 1  ;;  %vm3857_vm15 = vcmp.ge.f32.partialorder %v3825_v23, 0.0  ;;  %v3889_v20 = vmul.f32 0.1, %v3825_v23 }
 0x201   : > { %4081 = vst.msk [vmem:[%s7179_s19 + $0x34] sm:$0xf] %vm4067_vm11, %v4618_v25  ;;  %vm3858_vm0 = vcmp.ge.f32.partialorder %v3826_v54, 0.0  ;;  %v3890_v59 = vmul.f32 0.1, %v3826_v54  ;;  %v3757_v32 = vmul.f32 %v7840_v40, %v3623_v9  ;;  %v3401_v51 = vadd.f32 %v3242_v50, %v7053_v57  ;;  %v7842_v9 = vld [vmem:[#allocation62_spill] sm:$0xff] }
 0x202   : > { %4084 = vst.msk [vmem:[%s7179_s19 + $0x40] sm:$0xf] %vm4067_vm11, %v4621_v56  ;;  %v3620_v11 = vsel %vm1559_vm3, %v3602_v45, %v3603_v19  ;;  %v3601_v24 = vrot.slane %v7312_v47, 1  ;;  %v3921_v1 = vsel %vm3857_vm15, %v3825_v23, %v3889_v20  ;;  %v3406_v39 = vadd.f32 %v5056_v4, %v7095_v52  ;;  %v7365_v10 = vpop.f32.mrb[140].mxu0  ;;  %v5060_v57 = vpop.f32.mrb[140].mxu1 }
 0x203   : > { %v3922_v62 = vsel %vm3858_vm0, %v3826_v54, %v3890_v59  ;;  %v3760_v28 = vmul.f32 %v7797_v18, %v3620_v11  ;;  %v4619_v36 = vpack.c.bf16 %v3921_v1, %v3921_v1  ;;  %v3789_v31 = vadd.f32 %v3757_v32, %v7292_v37  ;;  %v7370_v50 = vpop.f32.mrb[141].mxu0  ;;  %v3271_v4 = vpop.f32.mrb[141].mxu1 }
 0x204   : > { %v4620_v61 = vpack.c.bf16 %v3922_v62, %v3922_v62  ;;  %v3621_v15 = vsel %vm1559_vm3, %v3601_v24, %v3602_v45  ;;  %v3622_v18 = vsel %vm1559_vm3, %v3600_v34, %v3601_v24  ;;  %v3606_v52 = vrot.slane %v7331_v16, 1  ;;  %v7377_v35 = vpop.f32.mrb[142].mxu0  ;;  %v5061_v45 = vpop.f32.mrb[142].mxu1 }
 0x205   : > { %v3792_v47 = vadd.f32 %v3760_v28, %v7317_v46  ;;  %v3759_v30 = vmul.f32 %v7795_v13, %v3621_v15  ;;  %4082 = vst.msk [vmem:[%s7179_s19 + $0x38] sm:$0xf] %vm4067_vm11, %v4619_v36  ;;  %v3828_v37 = vadd.f32 %v7155_v44, %v3789_v31  ;;  %v3758_v14 = vmul.f32 %v7841_v55, %v3622_v18  ;;  %v7387_v34 = vpop.f32.mrb[143].mxu0  ;;  %v3274_v23 = vpop.f32.mrb[143].mxu1 }
 0x206   : > { %4083 = vst.msk [vmem:[%s7179_s19 + $0x3c] sm:$0xf] %vm4067_vm11, %v4620_v61  ;;  %v3404_v46 = vadd.f32 %v3255_v3, %v7088_v48  ;;  %v3604_v12 = vrot.slane %v7333_v0, 1  ;;  %v7391_v25 = vadd.f32 %v5057_v21, %v7128_v63  ;;  %v3607_v49 = vrot.slane %v7335_v33, 1 }
 0x207   : > { %v3831_v13 = vadd.f32 %v7155_v44, %v3792_v47  ;;  %v3791_v16 = vadd.f32 %v3759_v30, %v3401_v51  ;;  %vm3860_vm2 = vcmp.ge.f32.partialorder %v3828_v37, 0.0  ;;  %v3892_v54 = vmul.f32 0.1, %v3828_v37 }
 0x208   : > { %v3790_v56 = vadd.f32 %v3758_v14, %v3400_v29  ;;  %v3619_v48 = vsel %vm1559_vm3, %v3603_v19, %v3604_v12  ;;  %v3616_v33 = vsel %vm1559_vm3, %v3606_v52, %v3607_v49  ;;  %v3405_v21 = vadd.f32 %v3258_v5, %v7091_v60 }
 0x209   : > { %vm3863_vm1 = vcmp.ge.f32.partialorder %v3831_v13, 0.0  ;;  %v3895_v0 = vmul.f32 0.1, %v3831_v13  ;;  %v3830_v3 = vadd.f32 %v7155_v44, %v3791_v16  ;;  %v3761_v20 = vmul.f32 %v7842_v9, %v3619_v48 }
 0x20a   : > { %v3924_v59 = vsel %vm3860_vm2, %v3828_v37, %v3892_v54  ;;  %v3829_v63 = vadd.f32 %v7155_v44, %v3790_v56  ;;  %v3764_v1 = vmul.f32 %v7803_v27, %v3616_v33  ;;  %v3605_v62 = vrot.slane %v7344_v2, 1  ;;  %v7843_v2 = vld [vmem:[#allocation64_spill] sm:$0xff] }
 0x20b   : > { %v4622_v29 = vpack.c.bf16 %v3924_v59, %v3924_v59  ;;  %v3927_v40 = vsel %vm3863_vm1, %v3831_v13, %v3895_v0  ;;  %vm3862_vm4 = vcmp.ge.f32.partialorder %v3830_v3, 0.0  ;;  %v3894_v19 = vmul.f32 0.1, %v3830_v3 }
 0x20c   : > { %v4625_v32 = vpack.c.bf16 %v3927_v40, %v3927_v40  ;;  %vm3861_vm5 = vcmp.ge.f32.partialorder %v3829_v63, 0.0  ;;  %v3893_v11 = vmul.f32 0.1, %v3829_v63  ;;  %v3793_v51 = vadd.f32 %v3761_v20, %v3403_v26 }
 0x20d   : > { %4085 = vst.msk [vmem:[%s7179_s19 + $0x44] sm:$0xf] %vm4067_vm11, %v4622_v29  ;;  %v3926_v24 = vsel %vm3862_vm4, %v3830_v3, %v3894_v19  ;;  %v3410_v28 = vadd.f32 %v5060_v57, %v7136_v42  ;;  %v3610_v61 = vrot.slane %v7365_v10, 1  ;;  %v3796_v26 = vadd.f32 %v3764_v1, %v3406_v39 }
 0x20e   : > { %4088 = vst.msk [vmem:[%s7179_s19 + $0x50] sm:$0xf] %vm4067_vm11, %v4625_v32  ;;  %v3925_v60 = vsel %vm3861_vm5, %v3829_v63, %v3893_v11  ;;  %v4624_v5 = vpack.c.bf16 %v3926_v24, %v3926_v24  ;;  %v3832_v36 = vadd.f32 %v7155_v44, %v3793_v51  ;;  %v3617_v15 = vsel %vm1559_vm3, %v3605_v62, %v3606_v52 }
 0x20f   : > { %v4623_v31 = vpack.c.bf16 %v3925_v60, %v3925_v60  ;;  %v3618_v27 = vsel %vm1559_vm3, %v3604_v12, %v3605_v62  ;;  %v3763_v47 = vmul.f32 %v7801_v43, %v3617_v15  ;;  %v3835_v10 = vadd.f32 %v7155_v44, %v3796_v26 }
 0x210   : > { %4087 = vst.msk [vmem:[%s7179_s19 + $0x4c] sm:$0xf] %vm4067_vm11, %v4624_v5  ;;  %vm3864_vm6 = vcmp.ge.f32.partialorder %v3832_v36, 0.0  ;;  %v3896_v42 = vmul.f32 0.1, %v3832_v36  ;;  %v3762_v57 = vmul.f32 %v7843_v2, %v3618_v27  ;;  %v3408_v39 = vadd.f32 %v3271_v4, %v7150_v8 }
 0x211   : > { %4086 = vst.msk [vmem:[%s7179_s19 + $0x48] sm:$0xf] %vm4067_vm11, %v4623_v31  ;;  %v3608_v18 = vrot.slane %v7370_v50, 1  ;;  %v3411_v30 = vadd.f32 %v5061_v45, %v7160_v7  ;;  %v3795_v55 = vadd.f32 %v3763_v47, %v3405_v21  ;;  %v3611_v14 = vrot.slane %v7377_v35, 1  ;;  %v7845_v21 = vld [vmem:[#allocation43_spill] sm:$0xff] }
 0x212   : > { %v3928_v52 = vsel %vm3864_vm6, %v3832_v36, %v3896_v42  ;;  %v3794_v37 = vadd.f32 %v3762_v57, %v3404_v46  ;;  %vm3867_vm7 = vcmp.ge.f32.partialorder %v3835_v10, 0.0  ;;  %v3899_v13 = vmul.f32 0.1, %v3835_v10 }
 0x213   : > { %v4626_v12 = vpack.c.bf16 %v3928_v52, %v3928_v52  ;;  %v3615_v43 = vsel %vm1559_vm3, %v3607_v49, %v3608_v18  ;;  %v3834_v54 = vadd.f32 %v7155_v44, %v3795_v55  ;;  %v3612_v7 = vsel %vm1559_vm3, %v3610_v61, %v3611_v14 }
 0x214   : > { %v3833_v16 = vadd.f32 %v7155_v44, %v3794_v37  ;;  %v3765_v8 = vmul.f32 %v7804_v41, %v3615_v43  ;;  %v3931_v50 = vsel %vm3867_vm7, %v3835_v10, %v3899_v13  ;;  %v7844_v4 = vrot.slane %v7125_v22, 1 }
 0x215   : > { %4089 = vst.msk [vmem:[%s7179_s19 + $0x54] sm:$0xf] %vm4067_vm11, %v4626_v12  ;;  %v3768_v46 = vmul.f32 %v7812_v17, %v3612_v7  ;;  %v3409_v45 = vadd.f32 %v3274_v23, %v7164_v6  ;;  %v4629_v49 = vpack.c.bf16 %v3931_v50, %v3931_v50  ;;  %vm3866_vm9 = vcmp.ge.f32.partialorder %v3834_v54, 0.0 }
 0x216   : > { %v3643_v35 = vsel %vm1559_vm3, %v3611_v14, %v7844_v4  ;;  %vm3865_vm8 = vcmp.ge.f32.partialorder %v3833_v16, 0.0  ;;  %v3897_v56 = vmul.f32 0.1, %v3833_v16  ;;  %v3898_v41 = vmul.f32 0.1, %v3834_v54 }
 0x217   : > { %v3797_v48 = vadd.f32 %v3765_v8, %v7391_v25  ;;  %v3769_v0 = vmul.f32 %v7813_v58, %v3643_v35  ;;  %v3800_v3 = vadd.f32 %v3768_v46, %v3410_v28  ;;  %4092 = vst.msk [vmem:[%s7179_s19 + $0x60] sm:$0xf] %vm4067_vm11, %v4629_v49  ;;  %v3609_v9 = vrot.slane %v7387_v34, 1 }
 0x218   : > { %v3929_v22 = vsel %vm3865_vm8, %v3833_v16, %v3897_v56  ;;  %v3930_v17 = vsel %vm3866_vm9, %v3834_v54, %v3898_v41 }
 0x219   : > { %v4627_v20 = vpack.c.bf16 %v3929_v22, %v3929_v22  ;;  %v3836_v6 = vadd.f32 %v7155_v44, %v3797_v48  ;;  %v3801_v23 = vadd.f32 %v3769_v0, %v3411_v30  ;;  %v4628_v59 = vpack.c.bf16 %v3930_v17, %v3930_v17 }
 0x21a   : > { %v3839_v63 = vadd.f32 %v7155_v44, %v3800_v3  ;;  %v3613_v25 = vsel %vm1559_vm3, %v3609_v9, %v3610_v61  ;;  %v3614_v58 = vsel %vm1559_vm3, %v3608_v18, %v3609_v9 }
 0x21b   : > { %4090 = vst.msk [vmem:[%s7179_s19 + $0x58] sm:$0xf] %vm4067_vm11, %v4627_v20  ;;  %vm3868_vm10 = vcmp.ge.f32.partialorder %v3836_v6, 0.0  ;;  %v3900_v33 = vmul.f32 0.1, %v3836_v6  ;;  %v3840_v34 = vadd.f32 %v7155_v44, %v3801_v23  ;;  %v3766_v29 = vmul.f32 %v7845_v21, %v3614_v58 }
 0x21c   : > { %4091 = vst.msk [vmem:[%s7179_s19 + $0x5c] sm:$0xf] %vm4067_vm11, %v4628_v59  ;;  %vm3871_vm12 = vcmp.ge.f32.partialorder %v3839_v63, 0.0  ;;  %v3903_v40 = vmul.f32 0.1, %v3839_v63  ;;  %v3767_v19 = vmul.f32 %v7808_v53, %v3613_v25 }
 0x21d   : > { %v3932_v32 = vsel %vm3868_vm10, %v3836_v6, %v3900_v33  ;;  %vm3872_vm13 = vcmp.ge.f32.partialorder %v3840_v34, 0.0  ;;  %v3904_v38 = vmul.f32 0.1, %v3840_v34  ;;  %v3798_v11 = vadd.f32 %v3766_v29, %v3408_v39 }
 0x21e   : > { %v4630_v51 = vpack.c.bf16 %v3932_v32, %v3932_v32  ;;  %v3935_v24 = vsel %vm3871_vm12, %v3839_v63, %v3903_v40  ;;  %v3799_v1 = vadd.f32 %v3767_v19, %v3409_v45 }
 0x21f   : > { %v3936_v62 = vsel %vm3872_vm13, %v3840_v34, %v3904_v38  ;;  %v4633_v28 = vpack.c.bf16 %v3935_v24, %v3935_v24  ;;  %v3837_v60 = vadd.f32 %v7155_v44, %v3798_v11 }
 0x220   : > { %4093 = vst.msk [vmem:[%s7179_s19 + $0x64] sm:$0xf] %vm4067_vm11, %v4630_v51  ;;  %v4634_v5 = vpack.c.bf16 %v3936_v62, %v3936_v62  ;;  %v3838_v36 = vadd.f32 %v7155_v44, %v3799_v1 }
 0x221   : > { %4096 = vst.msk [vmem:[%s7179_s19 + $0x70] sm:$0xf] %vm4067_vm11, %v4633_v28  ;;  %vm3869_vm3 = vcmp.ge.f32.partialorder %v3837_v60, 0.0  ;;  %v3901_v53 = vmul.f32 0.1, %v3837_v60 }
 0x222   : > { %4097 = vst.msk [vmem:[%s7179_s19 + $0x74] sm:$0xf] %vm4067_vm11, %v4634_v5  ;;  %vm3870_vm14 = vcmp.ge.f32.partialorder %v3838_v36, 0.0  ;;  %v3902_v61 = vmul.f32 0.1, %v3838_v36 }
 0x223   : > { %v3933_v31 = vsel %vm3869_vm3, %v3837_v60, %v3901_v53 }
 0x224   : > { %v3934_v26 = vsel %vm3870_vm14, %v3838_v36, %v3902_v61  ;;  %v4631_v15 = vpack.c.bf16 %v3933_v31, %v3933_v31 }
 0x225   : > { %v4632_v27 = vpack.c.bf16 %v3934_v26, %v3934_v26 }
 0x226   : > { %4094 = vst.msk [vmem:[%s7179_s19 + $0x68] sm:$0xf] %vm4067_vm11, %v4631_v15 }
 0x227   : > { %4095 = vst.msk [vmem:[%s7179_s19 + $0x6c] sm:$0xf] %vm4067_vm11, %v4632_v27 }
 0x228 PF: > { %s13_s14 = sadd.s32 1, %s5241_s14   ;;  %s7846_s12 = smov %s5237_s13 }
 0x229   : > { %p10_p5 = scmp.ge.s32.totalorder %s13_s14, 4   ;;  %s7847_s13 = smov %s7849_s15 }
 0x22b   :  { %12 = sbr.rel (!%p10_p5) target bundleno = 2 (0x2), region = 76 }

</bundles_post_ra>
